<compile_context>
chip_gen: v5e
topology: v5e:2x2
jax: 0.10.0
libtpu: 0.0.40
codegen_flags: <defaults>
</compile_context>

<pallas_src>
import functools

import jax
import jax.numpy as jnp
from jax import lax
from jax.experimental import pallas as pl
from jax.experimental.pallas import tpu as pltpu


# ----------------------------------------------------------------------------
# Pallas kernel: one block of Bb batch samples per grid step, time-major layout.
# ----------------------------------------------------------------------------
def _global_selector_kernel(
    x_ref,        # (S, Bb, F2)   time-major paired frames
    w1_ref,       # (F2, 3)       [w_a1 | w_sp_x | w_sp_g]   (fused N=1 heads)
    b_a1_ref,     # (1,)  SMEM
    b_sp_ref,     # (1,)  SMEM
    w2_ref,       # (F2, 4H+2)    [w_ih | w_tp_o | w_tp_g]   (fused N=1 heads)
    w_hh_ref,     # (H, 4H)
    b_lstm_ref,   # (1, 4H)
    w_a2_ref,     # (H, 1)
    b_a2_ref,     # (1,)  SMEM
    b_tp_ref,     # (1,)  SMEM
    w_cls_ref,    # (H, C)
    b_cls_ref,    # (1, C)
    out_ref,      # (S, Bb, C)    time-major
    gx_scr,       # scratch (S, Bb, 4H) : xb @ w_ih          (pre-cumsum)
    h_scr,        # scratch (S, Bb, H)  : LSTM hidden history
    tp_scr,       # scratch (S, Bb, 1)  : xb @ w_tp_o  -> overwritten with its prefix cumsum
    tg_scr,       # scratch (S, Bb, 1)  : xb @ w_tp_g  -> overwritten with its prefix cumsum
    *,
    mxu_dtype=jnp.float32,
):
    S, Bb, H = h_scr.shape
    F2 = x_ref.shape[2]
    C = out_ref.shape[2]
    H4 = 4 * H
    f32 = jnp.float32
    cdt = mxu_dtype

    x3 = x_ref[...]                                   # (S, Bb, F2)
    x2 = x3.reshape(S * Bb, F2)                       # free: Bb is a multiple of 8

    # ---- fused projection 1: [alpha logit | spatial-x term | w_sp_g term] ----
    pj1 = jnp.dot(x2.astype(cdt), w1_ref[...].astype(cdt),
                  preferred_element_type=f32)         # (S*Bb, 3)
    alpha3 = jax.nn.sigmoid(pj1[:, 0:1] + b_a1_ref[0]).reshape(S, Bb, 1)
    spx3 = pj1[:, 1:2].reshape(S, Bb, 1)
    spg3 = pj1[:, 2:3].reshape(S, Bb, 1)

    # global feature 1 folded through w_sp_g (gx1 itself is never materialized):
    #   gx1 @ w_sp_g = (sum_s (x_s @ w_sp_g) * alpha_s) / sum_s alpha_s
    den = jnp.sum(alpha3, axis=0)                                       # (Bb, 1)
    g1s = jnp.sum(spg3 * alpha3, axis=0) * pl.reciprocal(den, approx=True)

    beta3 = jax.nn.sigmoid(spx3 + g1s[None, :, :] + b_sp_ref[0])        # (S, Bb, 1)
    xb3 = x3 * beta3                                                    # (S, Bb, F2)
    xb2 = xb3.reshape(S * Bb, F2)

    # ---- fused, hoisted projection 2 (omega never materialized) ----
    # omega = cumsum_s(xb) is only ever used through linear maps, so project first
    # and cumsum the (much smaller) projections inside the recurrence instead.
    pj2 = jnp.dot(xb2.astype(cdt), w2_ref[...].astype(cdt),
                  preferred_element_type=f32)                            # (S*Bb, 4H+2)
    gx_scr[...] = pj2[:, 0:H4].reshape(S, Bb, H4)                        # xb @ w_ih
    tp_scr[...] = pj2[:, H4:H4 + 1].reshape(S, Bb, 1)                    # xb @ w_tp_o
    tg_scr[...] = pj2[:, H4 + 1:H4 + 2].reshape(S, Bb, 1)                # xb @ w_tp_g

    w_hh = w_hh_ref[...].astype(cdt)       # hoisted (cast once if bf16)
    b_lstm = b_lstm_ref[...]               # (1, 4H)

    # ---- single-layer LSTM over the sequence (serial critical path) ----
    def lstm_step(t, carry):
        h_prev, c_prev, ga_run, tp_run, tg_run = carry
        ga_run = ga_run + gx_scr[t]                    # = omega_t @ w_ih (running prefix)
        gates = ga_run + jnp.dot(h_prev.astype(cdt), w_hh,
                                 preferred_element_type=f32) + b_lstm    # (Bb, 4H)
        i_g = jax.nn.sigmoid(gates[:, 0:H])
        f_g = jax.nn.sigmoid(gates[:, H:2 * H])
        g_g = jnp.tanh(gates[:, 2 * H:3 * H])
        o_g = jax.nn.sigmoid(gates[:, 3 * H:4 * H])
        c_new = f_g * c_prev + i_g * g_g
        h_new = o_g * jnp.tanh(c_new)
        h_scr[t] = h_new                               # time-major store, no transpose
        tp_run = tp_run + tp_scr[t]                    # = omega_t @ w_tp_o
        tp_scr[t] = tp_run
        tg_run = tg_run + tg_scr[t]                    # = omega_t @ w_tp_g
        tg_scr[t] = tg_run
        return (h_new, c_new, ga_run, tp_run, tg_run)

    init = (jnp.zeros((Bb, H), f32), jnp.zeros((Bb, H), f32),
            jnp.zeros((Bb, H4), f32), jnp.zeros((Bb, 1), f32),
            jnp.zeros((Bb, 1), f32))
    lax.fori_loop(0, S, lstm_step, init, unroll=True)   # S static: full unroll

    h3 = h_scr[...]                                      # (S, Bb, H), already time-major
    h2 = h3.reshape(S * Bb, H)

    # ---- temporal attention (softmax over seq) ----
    scores3 = (jnp.dot(h2.astype(cdt), w_a2_ref[...].astype(cdt),
                       preferred_element_type=f32)
               + b_a2_ref[0]).reshape(S, Bb, 1)
    m = jnp.max(scores3, axis=0, keepdims=True)
    e = jnp.exp(scores3 - m)
    lamda3 = e * pl.reciprocal(jnp.sum(e, axis=0, keepdims=True), approx=True)

    # global feature 2 folded through w_tp_g (gx2 itself is never materialized):
    #   gx2 @ w_tp_g = sum_s lamda_s * (omega_s @ w_tp_g)    [sum_s lamda = 1]
    g2s = jnp.sum(lamda3 * tg_scr[...], axis=0)                          # (Bb, 1)
    gamma3 = jax.nn.sigmoid(tp_scr[...] + g2s[None, :, :] + b_tp_ref[0]) # (S, Bb, 1)

    # ---- classifier through the cumsum ----
    #   out_s = cumsum_s(h*gamma) @ w_cls + b = cumsum_s((h*gamma) @ w_cls) + b
    hg2 = (h3 * gamma3).reshape(S * Bb, H)
    p2 = jnp.dot(hg2.astype(cdt), w_cls_ref[...].astype(cdt),
                 preferred_element_type=f32)                             # (S*Bb, C)
    out_ref[...] = p2.reshape(S, Bb, C)                                  # raw per-step terms

    b_cls = b_cls_ref[...]                                               # (1, C)

    def out_prefix(t, acc):
        acc = acc + out_ref[t]                # read raw term, accumulate prefix
        out_ref[t] = acc + b_cls              # write final classified frame
        return acc

    lax.fori_loop(0, S, out_prefix, jnp.zeros((Bb, C), f32), unroll=True)


# ----------------------------------------------------------------------------
# Wrapper
# ----------------------------------------------------------------------------
def _vmem_limit_bytes(S, Bb, F2, H, C):
    f = 4  # f32 bytes
    resident = (
        2 * S * Bb * F2                       # x tile (double-buffered)
        + 2 * S * Bb * C                      # out tile (double-buffered)
        + S * Bb * (4 * H)                    # gx_scr
        + S * Bb * H                          # h_scr
        + 2 * S * Bb                          # tp/tg scratches
        + 3 * S * Bb * max(F2, 4 * H + 2)     # live temporaries (xb, pj2, p, ...)
        + 2 * (F2 * 3 + F2 * (4 * H + 2) + H * 4 * H + 4 * H + H + H * C + C)
    )
    est = 2 * f * resident                    # headroom for compiler scratch
    try:
        cap = int(0.75 * pltpu.get_tpu_info().vmem_capacity_bytes)
    except Exception:
        cap = 96 * 1024 * 1024
    return int(min(max(est, 32 * 1024 * 1024), cap))


def global_selector_forward(x, params, block_b=32, num_tensorcores=1,
                            mxu_dtype=jnp.float32):
    """x: (B, orig_seq, num_features). Returns (B, num_classes, orig_seq // 2).

    block_b: target batch-block size; pick so Bb*S >= 256 (MXU M width).
    num_tensorcores: set 2 on v7x so the parallel batch axis splits across both TCs.
    mxu_dtype: jnp.bfloat16 on v6e/v7x for 2x MXU throughput (f32 accumulation).
    """
    B, S0, F = x.shape
    assert S0 % 2 == 0
    S = S0 // 2
    F2 = 2 * F
    # generate_frame_pairs: pair consecutive frames along features (glue, plain JAX).
    x_pairs = x.reshape(B, S, F2).astype(jnp.float32)

    H = params["w_hh"].shape[0]            # hidden size from the recurrent weight
    H4 = 4 * H
    C = params["w_cls"].shape[1]
    assert params["w_ih"].shape == (F2, H4)

    # ---- batch blocking: Bb always a multiple of 8 (free leading-dim reshapes) ----
    Bb = min(block_b, max(B, 1))
    Bb = max(8, ((Bb + 7) // 8) * 8)
    if num_tensorcores > 1:                # v7x: guarantee >= num_tc grid steps if possible
        while Bb > 8 and (B + Bb - 1) // Bb < num_tensorcores:
            Bb -= 8
    B_pad = ((B + Bb - 1) // Bb) * Bb
    if B_pad != B:
        # zero-padded rows run the full computation but are numerically safe
        # (sigmoid(bias) > 0 avoids 0/0) and discarded at the end.
        x_pairs = jnp.pad(x_pairs, ((0, B_pad - B), (0, 0), (0, 0)))

    # time-major layout transform done once in plain XLA (layout plumbing).
    x_tm = jnp.transpose(x_pairs, (1, 0, 2))                      # (S, B_pad, F2)

    # ---- fused weight packing (removes three N=1 matmuls from the kernel) ----
    w1 = jnp.concatenate([params["w_a1"], params["w_sp_x"], params["w_sp_g"]],
                         axis=1)                                   # (F2, 3)
    w2 = jnp.concatenate([params["w_ih"], params["w_tp_o"], params["w_tp_g"]],
                         axis=1)                                   # (F2, 4H+2)

    def _const_spec(shape):
        n = len(shape)
        return pl.BlockSpec(shape, lambda b, n=n: (0,) * n)        # grid-invariant

    smem_scalar = pl.BlockSpec(memory_space=pltpu.MemorySpace.SMEM)

    kernel = pl.pallas_call(
        functools.partial(_global_selector_kernel, mxu_dtype=mxu_dtype),
        out_shape=jax.ShapeDtypeStruct((S, B_pad, C), jnp.float32),
        grid_spec=pltpu.PrefetchScalarGridSpec(
            num_scalar_prefetch=0,
            grid=(B_pad // Bb,),
            in_specs=[
                pl.BlockSpec((S, Bb, F2), lambda b: (0, b, 0)),    # x (time-major)
                _const_spec((F2, 3)),                              # [w_a1|w_sp_x|w_sp_g]
                smem_scalar, smem_scalar,                          # b_a1, b_sp
                _const_spec((F2, H4 + 2)),                         # [w_ih|w_tp_o|w_tp_g]
                _const_spec((H, H4)),                              # w_hh
                _const_spec((1, H4)),                              # b_lstm
                _const_spec((H, 1)),                               # w_a2
                smem_scalar, smem_scalar,                          # b_a2, b_tp
                _const_spec((H, C)),                               # w_cls
                _const_spec((1, C)),                               # b_cls
            ],
            out_specs=pl.BlockSpec((S, Bb, C), lambda b: (0, b, 0)),
            scratch_shapes=[
                pltpu.VMEM((S, Bb, H4), jnp.float32),              # xb @ w_ih
                pltpu.VMEM((S, Bb, H), jnp.float32),               # LSTM hidden history
                pltpu.VMEM((S, Bb, 1), jnp.float32),               # omega @ w_tp_o prefix
                pltpu.VMEM((S, Bb, 1), jnp.float32),               # omega @ w_tp_g prefix
            ],
        ),
        compiler_params=pltpu.CompilerParams(
            dimension_semantics=("parallel",),
            vmem_limit_bytes=_vmem_limit_bytes(S, Bb, F2, H, C),
        ),
    )

    out_tm = kernel(
        x_tm, w1,
        params["b_a1"].reshape(-1), params["b_sp"].reshape(-1),
        w2, params["w_hh"], params["b_lstm"].reshape(1, H4),
        params["w_a2"],
        params["b_a2"].reshape(-1), params["b_tp"].reshape(-1),
        params["w_cls"], params["b_cls"].reshape(1, C),
    )                                                              # (S, B_pad, C)
    # Final layout transpose (s, b, c) -> (b, c, s) in plain XLA.
    return jnp.transpose(out_tm[:, :B, :], (1, 2, 0))


# ----------------------------------------------------------------------------
# Pure-JAX reference (direct cumsum formulation, for correctness check)
# ----------------------------------------------------------------------------
def _lstm_ref(omega, w_ih, w_hh, b):
    H = w_hh.shape[0]

    def step(carry, x_t):
        h, c = carry
        gates = x_t @ w_ih + h @ w_hh + b[0]
        i = jax.nn.sigmoid(gates[:H])
        f = jax.nn.sigmoid(gates[H:2 * H])
        g = jnp.tanh(gates[2 * H:3 * H])
        o = jax.nn.sigmoid(gates[3 * H:4 * H])
        c_new = f * c + i * g
        h_new = o * jnp.tanh(c_new)
        return (h_new, c_new), h_new

    (_, _), hs = lax.scan(step, (jnp.zeros(H), jnp.zeros(H)), omega)
    return hs


def reference_forward(x, params):
    B, S0, F = x.shape
    S = S0 // 2
    xp = x.reshape(B, S, 2 * F).astype(jnp.float32)

    alpha = jax.nn.sigmoid(xp @ params["w_a1"] + params["b_a1"])
    gx1 = jnp.sum(xp * alpha, axis=1) / jnp.sum(alpha, axis=1)
    beta = jax.nn.sigmoid(
        xp @ params["w_sp_x"] + (gx1 @ params["w_sp_g"])[:, None, :] + params["b_sp"]
    )
    omega = jnp.cumsum(xp * beta, axis=1)
    h = jax.vmap(lambda om: _lstm_ref(om, params["w_ih"], params["w_hh"], params["b_lstm"]))(omega)
    scores = h @ params["w_a2"] + params["b_a2"]
    lamda = jax.nn.softmax(scores, axis=1)
    gx2 = jnp.sum(omega * lamda, axis=1) / jnp.sum(lamda, axis=1)
    gamma = jax.nn.sigmoid(
        omega @ params["w_tp_o"] + (gx2 @ params["w_tp_g"])[:, None, :] + params["b_tp"]
    )
    c = jnp.cumsum(h * gamma, axis=1)
    out = c @ params["w_cls"] + params["b_cls"]
    return jnp.transpose(out, (0, 2, 1))                            # (B, C, S)


# ----------------------------------------------------------------------------
# Main
# ----------------------------------------------------------------------------
if __name__ == "__main__":
    B, orig_seq, num_features, num_classes = 2, 16, 16, 8
    F2 = 2 * num_features
    H = F2

    key = jax.random.PRNGKey(0)
    ks = jax.random.split(key, 20)
    sc = 0.1

    params = {
        "w_a1":   sc * jax.random.normal(ks[0], (F2, 1), jnp.float32),
        "b_a1":   sc * jax.random.normal(ks[1], (1, 1), jnp.float32),
        "w_sp_x": sc * jax.random.normal(ks[2], (F2, 1), jnp.float32),
        "w_sp_g": sc * jax.random.normal(ks[3], (F2, 1), jnp.float32),
        "b_sp":   sc * jax.random.normal(ks[4], (1, 1), jnp.float32),
        "w_ih":   sc * jax.random.normal(ks[5], (F2, 4 * H), jnp.float32),
        "w_hh":   sc * jax.random.normal(ks[6], (H, 4 * H), jnp.float32),
        "b_lstm": sc * jax.random.normal(ks[7], (1, 4 * H), jnp.float32),
        "w_a2":   sc * jax.random.normal(ks[8], (H, 1), jnp.float32),
        "b_a2":   sc * jax.random.normal(ks[9], (1, 1), jnp.float32),
        "w_tp_o": sc * jax.random.normal(ks[10], (F2, 1), jnp.float32),
        "w_tp_g": sc * jax.random.normal(ks[11], (F2, 1), jnp.float32),
        "b_tp":   sc * jax.random.normal(ks[12], (1, 1), jnp.float32),
        "w_cls":  sc * jax.random.normal(ks[13], (H, num_classes), jnp.float32),
        "b_cls":  sc * jax.random.normal(ks[14], (1, num_classes), jnp.float32),
    }

    x = jax.random.normal(ks[15], (B, orig_seq, num_features), jnp.float32)

    out = jax.block_until_ready(global_selector_forward(x, params))
    ref = jax.block_until_ready(reference_forward(x, params))

    assert out.shape == (B, num_classes, orig_seq // 2), out.shape
    # tolerance loosened slightly for the EUP approximate reciprocals
    assert jnp.allclose(out, ref, rtol=2e-3, atol=2e-3), float(jnp.max(jnp.abs(out - ref)))

    print("KERNEL_OK")
</pallas_src>

<mosaic_0001>
module attributes {stable_mosaic.version = 11 : i64} {
  func.func @_global_selector_kernel(%arg0: i32, %arg1: memref<8x8x32xf32, #tpu.memory_space<vmem>>, %arg2: memref<32x3xf32, #tpu.memory_space<vmem>>, %arg3: memref<1xf32, #tpu.memory_space<smem>>, %arg4: memref<1xf32, #tpu.memory_space<smem>>, %arg5: memref<32x130xf32, #tpu.memory_space<vmem>>, %arg6: memref<32x128xf32, #tpu.memory_space<vmem>>, %arg7: memref<1x128xf32, #tpu.memory_space<vmem>>, %arg8: memref<32x1xf32, #tpu.memory_space<vmem>>, %arg9: memref<1xf32, #tpu.memory_space<smem>>, %arg10: memref<1xf32, #tpu.memory_space<smem>>, %arg11: memref<32x8xf32, #tpu.memory_space<vmem>>, %arg12: memref<1x8xf32, #tpu.memory_space<vmem>>, %arg13: memref<8x8x8xf32, #tpu.memory_space<vmem>>, %arg14: memref<8x8x128xf32, #tpu.memory_space<vmem>>, %arg15: memref<8x8x32xf32, #tpu.memory_space<vmem>>, %arg16: memref<8x8x1xf32, #tpu.memory_space<vmem>>, %arg17: memref<8x8x1xf32, #tpu.memory_space<vmem>>) attributes {dimension_semantics = [#tpu.dimension_semantics<parallel>], iteration_bounds = array<i64: 1>, scalar_prefetch = 0 : i64, scratch_operands = 4 : i64, tpu.core_type = #tpu.core_type<tc>, window_params = [{transform_indices = @transform_0, window_bounds = array<i64: 8, 8, 32>}, {pipeline_mode = #tpu.pipeline_mode<synchronous>, transform_indices = @transform_1, window_bounds = array<i64: 32, 3>}, {transform_indices = @transform_2, window_bounds = array<i64: 1>}, {transform_indices = @transform_3, window_bounds = array<i64: 1>}, {pipeline_mode = #tpu.pipeline_mode<synchronous>, transform_indices = @transform_4, window_bounds = array<i64: 32, 130>}, {pipeline_mode = #tpu.pipeline_mode<synchronous>, transform_indices = @transform_5, window_bounds = array<i64: 32, 128>}, {pipeline_mode = #tpu.pipeline_mode<synchronous>, transform_indices = @transform_6, window_bounds = array<i64: 1, 128>}, {pipeline_mode = #tpu.pipeline_mode<synchronous>, transform_indices = @transform_7, window_bounds = array<i64: 32, 1>}, {transform_indices = @transform_8, window_bounds = array<i64: 1>}, {transform_indices = @transform_9, window_bounds = array<i64: 1>}, {pipeline_mode = #tpu.pipeline_mode<synchronous>, transform_indices = @transform_10, window_bounds = array<i64: 32, 8>}, {pipeline_mode = #tpu.pipeline_mode<synchronous>, transform_indices = @transform_11, window_bounds = array<i64: 1, 8>}, {transform_indices = @transform_12, window_bounds = array<i64: 8, 8, 8>}]} {
    %c0 = arith.constant 0 : index
    %c0_0 = arith.constant 0 : index
    %c0_1 = arith.constant 0 : index
    %0 = vector.load %arg1[%c0, %c0_0, %c0_1] : memref<8x8x32xf32, #tpu.memory_space<vmem>>, vector<8x8x32xf32>
    %1 = vector.shape_cast %0 : vector<8x8x32xf32> to vector<64x32xf32>
    %c0_2 = arith.constant 0 : index
    %c0_3 = arith.constant 0 : index
    %2 = vector.load %arg2[%c0_2, %c0_3] : memref<32x3xf32, #tpu.memory_space<vmem>>, vector<32x3xf32>
    %cst = arith.constant dense<0.000000e+00> : vector<64x3xf32>
    %3 = tpu.matmul %1, %2, %cst {dimension_numbers = #tpu.dot_dimension_numbers<[1], [0], [0], [1], [0, 0, 1, 1], [], []>} : vector<64x32xf32>, vector<32x3xf32>, vector<64x3xf32> -> vector<64x3xf32>
    %4 = vector.extract_strided_slice %3 {offsets = [0, 0], sizes = [64, 1], strides = [1, 1]} : vector<64x3xf32> to vector<64x1xf32>
    %c0_4 = arith.constant 0 : index
    %5 = memref.load %arg3[%c0_4] : memref<1xf32, #tpu.memory_space<smem>>
    %6 = vector.broadcast %5 : f32 to vector<64x1xf32>
    %7 = arith.addf %4, %6 : vector<64x1xf32>
    %8 = arith.negf %7 : vector<64x1xf32>
    %9 = math.exp %8 : vector<64x1xf32>
    %cst_5 = arith.constant 1.000000e+00 : f32
    %10 = vector.broadcast %cst_5 : f32 to vector<64x1xf32>
    %11 = arith.addf %10, %9 : vector<64x1xf32>
    %12 = arith.divf %10, %11 : vector<64x1xf32>
    %13 = vector.shape_cast %12 : vector<64x1xf32> to vector<8x8x1xf32>
    %14 = vector.extract_strided_slice %3 {offsets = [0, 1], sizes = [64, 1], strides = [1, 1]} : vector<64x3xf32> to vector<64x1xf32>
    %15 = vector.shape_cast %14 : vector<64x1xf32> to vector<8x8x1xf32>
    %16 = vector.extract_strided_slice %3 {offsets = [0, 2], sizes = [64, 1], strides = [1, 1]} : vector<64x3xf32> to vector<64x1xf32>
    %17 = vector.shape_cast %16 : vector<64x1xf32> to vector<8x8x1xf32>
    %cst_6 = arith.constant dense<0.000000e+00> : vector<8x1xf32>
    %18 = vector.multi_reduction <add>, %13, %cst_6 [0] : vector<8x8x1xf32> to vector<8x1xf32>
    %19 = arith.mulf %17, %13 : vector<8x8x1xf32>
    %cst_7 = arith.constant dense<0.000000e+00> : vector<8x1xf32>
    %20 = vector.multi_reduction <add>, %19, %cst_7 [0] : vector<8x8x1xf32> to vector<8x1xf32>
    %21 = tpu.reciprocal %18 {approx = true} : vector<8x1xf32> -> vector<8x1xf32>
    %22 = arith.mulf %20, %21 : vector<8x1xf32>
    %23 = vector.shape_cast %22 : vector<8x1xf32> to vector<1x8x1xf32>
    %24 = vector.broadcast %23 : vector<1x8x1xf32> to vector<8x8x1xf32>
    %25 = arith.addf %15, %24 : vector<8x8x1xf32>
    %c0_8 = arith.constant 0 : index
    %26 = memref.load %arg4[%c0_8] : memref<1xf32, #tpu.memory_space<smem>>
    %27 = vector.broadcast %26 : f32 to vector<8x8x1xf32>
    %28 = arith.addf %25, %27 : vector<8x8x1xf32>
    %29 = arith.negf %28 : vector<8x8x1xf32>
    %30 = math.exp %29 : vector<8x8x1xf32>
    %cst_9 = arith.constant 1.000000e+00 : f32
    %31 = vector.broadcast %cst_9 : f32 to vector<8x8x1xf32>
    %32 = arith.addf %31, %30 : vector<8x8x1xf32>
    %33 = arith.divf %31, %32 : vector<8x8x1xf32>
    %34 = vector.broadcast %33 : vector<8x8x1xf32> to vector<8x8x32xf32>
    %35 = arith.mulf %0, %34 : vector<8x8x32xf32>
    %36 = vector.shape_cast %35 : vector<8x8x32xf32> to vector<64x32xf32>
    %c0_10 = arith.constant 0 : index
    %c0_11 = arith.constant 0 : index
    %37 = vector.load %arg5[%c0_10, %c0_11] : memref<32x130xf32, #tpu.memory_space<vmem>>, vector<32x130xf32>
    %cst_12 = arith.constant dense<0.000000e+00> : vector<64x130xf32>
    %38 = tpu.matmul %36, %37, %cst_12 {dimension_numbers = #tpu.dot_dimension_numbers<[1], [0], [0], [1], [0, 0, 1, 1], [], []>} : vector<64x32xf32>, vector<32x130xf32>, vector<64x130xf32> -> vector<64x130xf32>
    %39 = vector.extract_strided_slice %38 {offsets = [0, 0], sizes = [64, 128], strides = [1, 1]} : vector<64x130xf32> to vector<64x128xf32>
    %40 = vector.shape_cast %39 : vector<64x128xf32> to vector<8x8x128xf32>
    %c0_13 = arith.constant 0 : index
    %c0_14 = arith.constant 0 : index
    %c0_15 = arith.constant 0 : index
    %41 = vector.load %arg14[%c0_13, %c0_14, %c0_15] : memref<8x8x128xf32, #tpu.memory_space<vmem>>, vector<8x8x128xf32>
    tpu.vector_store %arg14[%c0_13, %c0_14, %c0_15], %40 {strides = array<i32>} : memref<8x8x128xf32, #tpu.memory_space<vmem>>, vector<8x8x128xf32>,
    %42 = vector.extract_strided_slice %38 {offsets = [0, 128], sizes = [64, 1], strides = [1, 1]} : vector<64x130xf32> to vector<64x1xf32>
    %43 = vector.shape_cast %42 : vector<64x1xf32> to vector<8x8x1xf32>
    %c0_16 = arith.constant 0 : index
    %c0_17 = arith.constant 0 : index
    %c0_18 = arith.constant 0 : index
    %44 = vector.load %arg16[%c0_16, %c0_17, %c0_18] : memref<8x8x1xf32, #tpu.memory_space<vmem>>, vector<8x8x1xf32>
    tpu.vector_store %arg16[%c0_16, %c0_17, %c0_18], %43 {strides = array<i32>} : memref<8x8x1xf32, #tpu.memory_space<vmem>>, vector<8x8x1xf32>,
    %45 = vector.extract_strided_slice %38 {offsets = [0, 129], sizes = [64, 1], strides = [1, 1]} : vector<64x130xf32> to vector<64x1xf32>
    %46 = vector.shape_cast %45 : vector<64x1xf32> to vector<8x8x1xf32>
    %c0_19 = arith.constant 0 : index
    %c0_20 = arith.constant 0 : index
    %c0_21 = arith.constant 0 : index
    %47 = vector.load %arg17[%c0_19, %c0_20, %c0_21] : memref<8x8x1xf32, #tpu.memory_space<vmem>>, vector<8x8x1xf32>
    tpu.vector_store %arg17[%c0_19, %c0_20, %c0_21], %46 {strides = array<i32>} : memref<8x8x1xf32, #tpu.memory_space<vmem>>, vector<8x8x1xf32>,
    %c0_22 = arith.constant 0 : index
    %c0_23 = arith.constant 0 : index
    %48 = vector.load %arg6[%c0_22, %c0_23] : memref<32x128xf32, #tpu.memory_space<vmem>>, vector<32x128xf32>
    %c0_24 = arith.constant 0 : index
    %c0_25 = arith.constant 0 : index
    %49 = vector.load %arg7[%c0_24, %c0_25] : memref<1x128xf32, #tpu.memory_space<vmem>>, vector<1x128xf32>
    %cst_26 = arith.constant 0.000000e+00 : f32
    %50 = vector.broadcast %cst_26 : f32 to vector<8x32xf32>
    %cst_27 = arith.constant 0.000000e+00 : f32
    %51 = vector.broadcast %cst_27 : f32 to vector<8x32xf32>
    %cst_28 = arith.constant 0.000000e+00 : f32
    %52 = vector.broadcast %cst_28 : f32 to vector<8x128xf32>
    %cst_29 = arith.constant 0.000000e+00 : f32
    %53 = vector.broadcast %cst_29 : f32 to vector<8x1xf32>
    %cst_30 = arith.constant 0.000000e+00 : f32
    %54 = vector.broadcast %cst_30 : f32 to vector<8x1xf32>
    %c0_i32 = arith.constant 0 : i32
    %55 = arith.index_cast %c0_i32 : i32 to index
    %c0_31 = arith.constant 0 : index
    %c0_32 = arith.constant 0 : index
    %56 = vector.load %arg14[%55, %c0_31, %c0_32] : memref<8x8x128xf32, #tpu.memory_space<vmem>>, vector<1x8x128xf32>
    %57 = vector.shape_cast %56 : vector<1x8x128xf32> to vector<8x128xf32>
    %58 = arith.addf %52, %57 : vector<8x128xf32>
    %cst_33 = arith.constant dense<0.000000e+00> : vector<8x128xf32>
    %59 = tpu.matmul %50, %48, %cst_33 {dimension_numbers = #tpu.dot_dimension_numbers<[1], [0], [0], [1], [0, 0, 1, 1], [], []>} : vector<8x32xf32>, vector<32x128xf32>, vector<8x128xf32> -> vector<8x128xf32>
    %60 = arith.addf %58, %59 : vector<8x128xf32>
    %61 = vector.broadcast %49 : vector<1x128xf32> to vector<8x128xf32>
    %62 = arith.addf %60, %61 : vector<8x128xf32>
    %63 = vector.extract_strided_slice %62 {offsets = [0, 0], sizes = [8, 32], strides = [1, 1]} : vector<8x128xf32> to vector<8x32xf32>
    %64 = arith.negf %63 : vector<8x32xf32>
    %65 = math.exp %64 : vector<8x32xf32>
    %cst_34 = arith.constant 1.000000e+00 : f32
    %66 = vector.broadcast %cst_34 : f32 to vector<8x32xf32>
    %67 = arith.addf %66, %65 : vector<8x32xf32>
    %68 = arith.divf %66, %67 : vector<8x32xf32>
    %69 = vector.extract_strided_slice %62 {offsets = [0, 32], sizes = [8, 32], strides = [1, 1]} : vector<8x128xf32> to vector<8x32xf32>
    %70 = arith.negf %69 : vector<8x32xf32>
    %71 = math.exp %70 : vector<8x32xf32>
    %cst_35 = arith.constant 1.000000e+00 : f32
    %72 = vector.broadcast %cst_35 : f32 to vector<8x32xf32>
    %73 = arith.addf %72, %71 : vector<8x32xf32>
    %74 = arith.divf %72, %73 : vector<8x32xf32>
    %75 = vector.extract_strided_slice %62 {offsets = [0, 64], sizes = [8, 32], strides = [1, 1]} : vector<8x128xf32> to vector<8x32xf32>
    %76 = math.tanh %75 : vector<8x32xf32>
    %77 = vector.extract_strided_slice %62 {offsets = [0, 96], sizes = [8, 32], strides = [1, 1]} : vector<8x128xf32> to vector<8x32xf32>
    %78 = arith.negf %77 : vector<8x32xf32>
    %79 = math.exp %78 : vector<8x32xf32>
    %cst_36 = arith.constant 1.000000e+00 : f32
    %80 = vector.broadcast %cst_36 : f32 to vector<8x32xf32>
    %81 = arith.addf %80, %79 : vector<8x32xf32>
    %82 = arith.divf %80, %81 : vector<8x32xf32>
    %83 = arith.mulf %74, %51 : vector<8x32xf32>
    %84 = arith.mulf %68, %76 : vector<8x32xf32>
    %85 = arith.addf %83, %84 : vector<8x32xf32>
    %86 = math.tanh %85 : vector<8x32xf32>
    %87 = arith.mulf %82, %86 : vector<8x32xf32>
    %88 = arith.index_cast %c0_i32 : i32 to index
    %c0_37 = arith.constant 0 : index
    %c0_38 = arith.constant 0 : index
    %89 = vector.load %arg15[%88, %c0_37, %c0_38] : memref<8x8x32xf32, #tpu.memory_space<vmem>>, vector<1x8x32xf32>
    %90 = vector.shape_cast %89 : vector<1x8x32xf32> to vector<8x32xf32>
    %91 = vector.shape_cast %87 : vector<8x32xf32> to vector<1x8x32xf32>
    tpu.vector_store %arg15[%88, %c0_37, %c0_38], %91 {strides = array<i32>} : memref<8x8x32xf32, #tpu.memory_space<vmem>>, vector<1x8x32xf32>,
    %92 = arith.index_cast %c0_i32 : i32 to index
    %c0_39 = arith.constant 0 : index
    %c0_40 = arith.constant 0 : index
    %93 = vector.load %arg16[%92, %c0_39, %c0_40] : memref<8x8x1xf32, #tpu.memory_space<vmem>>, vector<1x8x1xf32>
    %94 = vector.shape_cast %93 : vector<1x8x1xf32> to vector<8x1xf32>
    %95 = arith.addf %53, %94 : vector<8x1xf32>
    %96 = arith.index_cast %c0_i32 : i32 to index
    %c0_41 = arith.constant 0 : index
    %c0_42 = arith.constant 0 : index
    %97 = vector.load %arg16[%96, %c0_41, %c0_42] : memref<8x8x1xf32, #tpu.memory_space<vmem>>, vector<1x8x1xf32>
    %98 = vector.shape_cast %97 : vector<1x8x1xf32> to vector<8x1xf32>
    %99 = vector.shape_cast %95 : vector<8x1xf32> to vector<1x8x1xf32>
    tpu.vector_store %arg16[%96, %c0_41, %c0_42], %99 {strides = array<i32>} : memref<8x8x1xf32, #tpu.memory_space<vmem>>, vector<1x8x1xf32>,
    %100 = arith.index_cast %c0_i32 : i32 to index
    %c0_43 = arith.constant 0 : index
    %c0_44 = arith.constant 0 : index
    %101 = vector.load %arg17[%100, %c0_43, %c0_44] : memref<8x8x1xf32, #tpu.memory_space<vmem>>, vector<1x8x1xf32>
    %102 = vector.shape_cast %101 : vector<1x8x1xf32> to vector<8x1xf32>
    %103 = arith.addf %54, %102 : vector<8x1xf32>
    %104 = arith.index_cast %c0_i32 : i32 to index
    %c0_45 = arith.constant 0 : index
    %c0_46 = arith.constant 0 : index
    %105 = vector.load %arg17[%104, %c0_45, %c0_46] : memref<8x8x1xf32, #tpu.memory_space<vmem>>, vector<1x8x1xf32>
    %106 = vector.shape_cast %105 : vector<1x8x1xf32> to vector<8x1xf32>
    %107 = vector.shape_cast %103 : vector<8x1xf32> to vector<1x8x1xf32>
    tpu.vector_store %arg17[%104, %c0_45, %c0_46], %107 {strides = array<i32>} : memref<8x8x1xf32, #tpu.memory_space<vmem>>, vector<1x8x1xf32>,
    %c1_i32 = arith.constant 1 : i32
    %108 = arith.index_cast %c1_i32 : i32 to index
    %c0_47 = arith.constant 0 : index
    %c0_48 = arith.constant 0 : index
    %109 = vector.load %arg14[%108, %c0_47, %c0_48] : memref<8x8x128xf32, #tpu.memory_space<vmem>>, vector<1x8x128xf32>
    %110 = vector.shape_cast %109 : vector<1x8x128xf32> to vector<8x128xf32>
    %111 = arith.addf %58, %110 : vector<8x128xf32>
    %cst_49 = arith.constant dense<0.000000e+00> : vector<8x128xf32>
    %112 = tpu.matmul %87, %48, %cst_49 {dimension_numbers = #tpu.dot_dimension_numbers<[1], [0], [0], [1], [0, 0, 1, 1], [], []>} : vector<8x32xf32>, vector<32x128xf32>, vector<8x128xf32> -> vector<8x128xf32>
    %113 = arith.addf %111, %112 : vector<8x128xf32>
    %114 = vector.broadcast %49 : vector<1x128xf32> to vector<8x128xf32>
    %115 = arith.addf %113, %114 : vector<8x128xf32>
    %116 = vector.extract_strided_slice %115 {offsets = [0, 0], sizes = [8, 32], strides = [1, 1]} : vector<8x128xf32> to vector<8x32xf32>
    %117 = arith.negf %116 : vector<8x32xf32>
    %118 = math.exp %117 : vector<8x32xf32>
    %cst_50 = arith.constant 1.000000e+00 : f32
    %119 = vector.broadcast %cst_50 : f32 to vector<8x32xf32>
    %120 = arith.addf %119, %118 : vector<8x32xf32>
    %121 = arith.divf %119, %120 : vector<8x32xf32>
    %122 = vector.extract_strided_slice %115 {offsets = [0, 32], sizes = [8, 32], strides = [1, 1]} : vector<8x128xf32> to vector<8x32xf32>
    %123 = arith.negf %122 : vector<8x32xf32>
    %124 = math.exp %123 : vector<8x32xf32>
    %cst_51 = arith.constant 1.000000e+00 : f32
    %125 = vector.broadcast %cst_51 : f32 to vector<8x32xf32>
    %126 = arith.addf %125, %124 : vector<8x32xf32>
    %127 = arith.divf %125, %126 : vector<8x32xf32>
    %128 = vector.extract_strided_slice %115 {offsets = [0, 64], sizes = [8, 32], strides = [1, 1]} : vector<8x128xf32> to vector<8x32xf32>
    %129 = math.tanh %128 : vector<8x32xf32>
    %130 = vector.extract_strided_slice %115 {offsets = [0, 96], sizes = [8, 32], strides = [1, 1]} : vector<8x128xf32> to vector<8x32xf32>
    %131 = arith.negf %130 : vector<8x32xf32>
    %132 = math.exp %131 : vector<8x32xf32>
    %cst_52 = arith.constant 1.000000e+00 : f32
    %133 = vector.broadcast %cst_52 : f32 to vector<8x32xf32>
    %134 = arith.addf %133, %132 : vector<8x32xf32>
    %135 = arith.divf %133, %134 : vector<8x32xf32>
    %136 = arith.mulf %127, %85 : vector<8x32xf32>
    %137 = arith.mulf %121, %129 : vector<8x32xf32>
    %138 = arith.addf %136, %137 : vector<8x32xf32>
    %139 = math.tanh %138 : vector<8x32xf32>
    %140 = arith.mulf %135, %139 : vector<8x32xf32>
    %141 = arith.index_cast %c1_i32 : i32 to index
    %c0_53 = arith.constant 0 : index
    %c0_54 = arith.constant 0 : index
    %142 = vector.load %arg15[%141, %c0_53, %c0_54] : memref<8x8x32xf32, #tpu.memory_space<vmem>>, vector<1x8x32xf32>
    %143 = vector.shape_cast %142 : vector<1x8x32xf32> to vector<8x32xf32>
    %144 = vector.shape_cast %140 : vector<8x32xf32> to vector<1x8x32xf32>
    tpu.vector_store %arg15[%141, %c0_53, %c0_54], %144 {strides = array<i32>} : memref<8x8x32xf32, #tpu.memory_space<vmem>>, vector<1x8x32xf32>,
    %145 = arith.index_cast %c1_i32 : i32 to index
    %c0_55 = arith.constant 0 : index
    %c0_56 = arith.constant 0 : index
    %146 = vector.load %arg16[%145, %c0_55, %c0_56] : memref<8x8x1xf32, #tpu.memory_space<vmem>>, vector<1x8x1xf32>
    %147 = vector.shape_cast %146 : vector<1x8x1xf32> to vector<8x1xf32>
    %148 = arith.addf %95, %147 : vector<8x1xf32>
    %149 = arith.index_cast %c1_i32 : i32 to index
    %c0_57 = arith.constant 0 : index
    %c0_58 = arith.constant 0 : index
    %150 = vector.load %arg16[%149, %c0_57, %c0_58] : memref<8x8x1xf32, #tpu.memory_space<vmem>>, vector<1x8x1xf32>
    %151 = vector.shape_cast %150 : vector<1x8x1xf32> to vector<8x1xf32>
    %152 = vector.shape_cast %148 : vector<8x1xf32> to vector<1x8x1xf32>
    tpu.vector_store %arg16[%149, %c0_57, %c0_58], %152 {strides = array<i32>} : memref<8x8x1xf32, #tpu.memory_space<vmem>>, vector<1x8x1xf32>,
    %153 = arith.index_cast %c1_i32 : i32 to index
    %c0_59 = arith.constant 0 : index
    %c0_60 = arith.constant 0 : index
    %154 = vector.load %arg17[%153, %c0_59, %c0_60] : memref<8x8x1xf32, #tpu.memory_space<vmem>>, vector<1x8x1xf32>
    %155 = vector.shape_cast %154 : vector<1x8x1xf32> to vector<8x1xf32>
    %156 = arith.addf %103, %155 : vector<8x1xf32>
    %157 = arith.index_cast %c1_i32 : i32 to index
    %c0_61 = arith.constant 0 : index
    %c0_62 = arith.constant 0 : index
    %158 = vector.load %arg17[%157, %c0_61, %c0_62] : memref<8x8x1xf32, #tpu.memory_space<vmem>>, vector<1x8x1xf32>
    %159 = vector.shape_cast %158 : vector<1x8x1xf32> to vector<8x1xf32>
    %160 = vector.shape_cast %156 : vector<8x1xf32> to vector<1x8x1xf32>
    tpu.vector_store %arg17[%157, %c0_61, %c0_62], %160 {strides = array<i32>} : memref<8x8x1xf32, #tpu.memory_space<vmem>>, vector<1x8x1xf32>,
    %c2_i32 = arith.constant 2 : i32
    %161 = arith.index_cast %c2_i32 : i32 to index
    %c0_63 = arith.constant 0 : index
    %c0_64 = arith.constant 0 : index
    %162 = vector.load %arg14[%161, %c0_63, %c0_64] : memref<8x8x128xf32, #tpu.memory_space<vmem>>, vector<1x8x128xf32>
    %163 = vector.shape_cast %162 : vector<1x8x128xf32> to vector<8x128xf32>
    %164 = arith.addf %111, %163 : vector<8x128xf32>
    %cst_65 = arith.constant dense<0.000000e+00> : vector<8x128xf32>
    %165 = tpu.matmul %140, %48, %cst_65 {dimension_numbers = #tpu.dot_dimension_numbers<[1], [0], [0], [1], [0, 0, 1, 1], [], []>} : vector<8x32xf32>, vector<32x128xf32>, vector<8x128xf32> -> vector<8x128xf32>
    %166 = arith.addf %164, %165 : vector<8x128xf32>
    %167 = vector.broadcast %49 : vector<1x128xf32> to vector<8x128xf32>
    %168 = arith.addf %166, %167 : vector<8x128xf32>
    %169 = vector.extract_strided_slice %168 {offsets = [0, 0], sizes = [8, 32], strides = [1, 1]} : vector<8x128xf32> to vector<8x32xf32>
    %170 = arith.negf %169 : vector<8x32xf32>
    %171 = math.exp %170 : vector<8x32xf32>
    %cst_66 = arith.constant 1.000000e+00 : f32
    %172 = vector.broadcast %cst_66 : f32 to vector<8x32xf32>
    %173 = arith.addf %172, %171 : vector<8x32xf32>
    %174 = arith.divf %172, %173 : vector<8x32xf32>
    %175 = vector.extract_strided_slice %168 {offsets = [0, 32], sizes = [8, 32], strides = [1, 1]} : vector<8x128xf32> to vector<8x32xf32>
    %176 = arith.negf %175 : vector<8x32xf32>
    %177 = math.exp %176 : vector<8x32xf32>
    %cst_67 = arith.constant 1.000000e+00 : f32
    %178 = vector.broadcast %cst_67 : f32 to vector<8x32xf32>
    %179 = arith.addf %178, %177 : vector<8x32xf32>
    %180 = arith.divf %178, %179 : vector<8x32xf32>
    %181 = vector.extract_strided_slice %168 {offsets = [0, 64], sizes = [8, 32], strides = [1, 1]} : vector<8x128xf32> to vector<8x32xf32>
    %182 = math.tanh %181 : vector<8x32xf32>
    %183 = vector.extract_strided_slice %168 {offsets = [0, 96], sizes = [8, 32], strides = [1, 1]} : vector<8x128xf32> to vector<8x32xf32>
    %184 = arith.negf %183 : vector<8x32xf32>
    %185 = math.exp %184 : vector<8x32xf32>
    %cst_68 = arith.constant 1.000000e+00 : f32
    %186 = vector.broadcast %cst_68 : f32 to vector<8x32xf32>
    %187 = arith.addf %186, %185 : vector<8x32xf32>
    %188 = arith.divf %186, %187 : vector<8x32xf32>
    %189 = arith.mulf %180, %138 : vector<8x32xf32>
    %190 = arith.mulf %174, %182 : vector<8x32xf32>
    %191 = arith.addf %189, %190 : vector<8x32xf32>
    %192 = math.tanh %191 : vector<8x32xf32>
    %193 = arith.mulf %188, %192 : vector<8x32xf32>
    %194 = arith.index_cast %c2_i32 : i32 to index
    %c0_69 = arith.constant 0 : index
    %c0_70 = arith.constant 0 : index
    %195 = vector.load %arg15[%194, %c0_69, %c0_70] : memref<8x8x32xf32, #tpu.memory_space<vmem>>, vector<1x8x32xf32>
    %196 = vector.shape_cast %195 : vector<1x8x32xf32> to vector<8x32xf32>
    %197 = vector.shape_cast %193 : vector<8x32xf32> to vector<1x8x32xf32>
    tpu.vector_store %arg15[%194, %c0_69, %c0_70], %197 {strides = array<i32>} : memref<8x8x32xf32, #tpu.memory_space<vmem>>, vector<1x8x32xf32>,
    %198 = arith.index_cast %c2_i32 : i32 to index
    %c0_71 = arith.constant 0 : index
    %c0_72 = arith.constant 0 : index
    %199 = vector.load %arg16[%198, %c0_71, %c0_72] : memref<8x8x1xf32, #tpu.memory_space<vmem>>, vector<1x8x1xf32>
    %200 = vector.shape_cast %199 : vector<1x8x1xf32> to vector<8x1xf32>
    %201 = arith.addf %148, %200 : vector<8x1xf32>
    %202 = arith.index_cast %c2_i32 : i32 to index
    %c0_73 = arith.constant 0 : index
    %c0_74 = arith.constant 0 : index
    %203 = vector.load %arg16[%202, %c0_73, %c0_74] : memref<8x8x1xf32, #tpu.memory_space<vmem>>, vector<1x8x1xf32>
    %204 = vector.shape_cast %203 : vector<1x8x1xf32> to vector<8x1xf32>
    %205 = vector.shape_cast %201 : vector<8x1xf32> to vector<1x8x1xf32>
    tpu.vector_store %arg16[%202, %c0_73, %c0_74], %205 {strides = array<i32>} : memref<8x8x1xf32, #tpu.memory_space<vmem>>, vector<1x8x1xf32>,
    %206 = arith.index_cast %c2_i32 : i32 to index
    %c0_75 = arith.constant 0 : index
    %c0_76 = arith.constant 0 : index
    %207 = vector.load %arg17[%206, %c0_75, %c0_76] : memref<8x8x1xf32, #tpu.memory_space<vmem>>, vector<1x8x1xf32>
    %208 = vector.shape_cast %207 : vector<1x8x1xf32> to vector<8x1xf32>
    %209 = arith.addf %156, %208 : vector<8x1xf32>
    %210 = arith.index_cast %c2_i32 : i32 to index
    %c0_77 = arith.constant 0 : index
    %c0_78 = arith.constant 0 : index
    %211 = vector.load %arg17[%210, %c0_77, %c0_78] : memref<8x8x1xf32, #tpu.memory_space<vmem>>, vector<1x8x1xf32>
    %212 = vector.shape_cast %211 : vector<1x8x1xf32> to vector<8x1xf32>
    %213 = vector.shape_cast %209 : vector<8x1xf32> to vector<1x8x1xf32>
    tpu.vector_store %arg17[%210, %c0_77, %c0_78], %213 {strides = array<i32>} : memref<8x8x1xf32, #tpu.memory_space<vmem>>, vector<1x8x1xf32>,
    %c3_i32 = arith.constant 3 : i32
    %214 = arith.index_cast %c3_i32 : i32 to index
    %c0_79 = arith.constant 0 : index
    %c0_80 = arith.constant 0 : index
    %215 = vector.load %arg14[%214, %c0_79, %c0_80] : memref<8x8x128xf32, #tpu.memory_space<vmem>>, vector<1x8x128xf32>
    %216 = vector.shape_cast %215 : vector<1x8x128xf32> to vector<8x128xf32>
    %217 = arith.addf %164, %216 : vector<8x128xf32>
    %cst_81 = arith.constant dense<0.000000e+00> : vector<8x128xf32>
    %218 = tpu.matmul %193, %48, %cst_81 {dimension_numbers = #tpu.dot_dimension_numbers<[1], [0], [0], [1], [0, 0, 1, 1], [], []>} : vector<8x32xf32>, vector<32x128xf32>, vector<8x128xf32> -> vector<8x128xf32>
    %219 = arith.addf %217, %218 : vector<8x128xf32>
    %220 = vector.broadcast %49 : vector<1x128xf32> to vector<8x128xf32>
    %221 = arith.addf %219, %220 : vector<8x128xf32>
    %222 = vector.extract_strided_slice %221 {offsets = [0, 0], sizes = [8, 32], strides = [1, 1]} : vector<8x128xf32> to vector<8x32xf32>
    %223 = arith.negf %222 : vector<8x32xf32>
    %224 = math.exp %223 : vector<8x32xf32>
    %cst_82 = arith.constant 1.000000e+00 : f32
    %225 = vector.broadcast %cst_82 : f32 to vector<8x32xf32>
    %226 = arith.addf %225, %224 : vector<8x32xf32>
    %227 = arith.divf %225, %226 : vector<8x32xf32>
    %228 = vector.extract_strided_slice %221 {offsets = [0, 32], sizes = [8, 32], strides = [1, 1]} : vector<8x128xf32> to vector<8x32xf32>
    %229 = arith.negf %228 : vector<8x32xf32>
    %230 = math.exp %229 : vector<8x32xf32>
    %cst_83 = arith.constant 1.000000e+00 : f32
    %231 = vector.broadcast %cst_83 : f32 to vector<8x32xf32>
    %232 = arith.addf %231, %230 : vector<8x32xf32>
    %233 = arith.divf %231, %232 : vector<8x32xf32>
    %234 = vector.extract_strided_slice %221 {offsets = [0, 64], sizes = [8, 32], strides = [1, 1]} : vector<8x128xf32> to vector<8x32xf32>
    %235 = math.tanh %234 : vector<8x32xf32>
    %236 = vector.extract_strided_slice %221 {offsets = [0, 96], sizes = [8, 32], strides = [1, 1]} : vector<8x128xf32> to vector<8x32xf32>
    %237 = arith.negf %236 : vector<8x32xf32>
    %238 = math.exp %237 : vector<8x32xf32>
    %cst_84 = arith.constant 1.000000e+00 : f32
    %239 = vector.broadcast %cst_84 : f32 to vector<8x32xf32>
    %240 = arith.addf %239, %238 : vector<8x32xf32>
    %241 = arith.divf %239, %240 : vector<8x32xf32>
    %242 = arith.mulf %233, %191 : vector<8x32xf32>
    %243 = arith.mulf %227, %235 : vector<8x32xf32>
    %244 = arith.addf %242, %243 : vector<8x32xf32>
    %245 = math.tanh %244 : vector<8x32xf32>
    %246 = arith.mulf %241, %245 : vector<8x32xf32>
    %247 = arith.index_cast %c3_i32 : i32 to index
    %c0_85 = arith.constant 0 : index
    %c0_86 = arith.constant 0 : index
    %248 = vector.load %arg15[%247, %c0_85, %c0_86] : memref<8x8x32xf32, #tpu.memory_space<vmem>>, vector<1x8x32xf32>
    %249 = vector.shape_cast %248 : vector<1x8x32xf32> to vector<8x32xf32>
    %250 = vector.shape_cast %246 : vector<8x32xf32> to vector<1x8x32xf32>
    tpu.vector_store %arg15[%247, %c0_85, %c0_86], %250 {strides = array<i32>} : memref<8x8x32xf32, #tpu.memory_space<vmem>>, vector<1x8x32xf32>,
    %251 = arith.index_cast %c3_i32 : i32 to index
    %c0_87 = arith.constant 0 : index
    %c0_88 = arith.constant 0 : index
    %252 = vector.load %arg16[%251, %c0_87, %c0_88] : memref<8x8x1xf32, #tpu.memory_space<vmem>>, vector<1x8x1xf32>
    %253 = vector.shape_cast %252 : vector<1x8x1xf32> to vector<8x1xf32>
    %254 = arith.addf %201, %253 : vector<8x1xf32>
    %255 = arith.index_cast %c3_i32 : i32 to index
    %c0_89 = arith.constant 0 : index
    %c0_90 = arith.constant 0 : index
    %256 = vector.load %arg16[%255, %c0_89, %c0_90] : memref<8x8x1xf32, #tpu.memory_space<vmem>>, vector<1x8x1xf32>
    %257 = vector.shape_cast %256 : vector<1x8x1xf32> to vector<8x1xf32>
    %258 = vector.shape_cast %254 : vector<8x1xf32> to vector<1x8x1xf32>
    tpu.vector_store %arg16[%255, %c0_89, %c0_90], %258 {strides = array<i32>} : memref<8x8x1xf32, #tpu.memory_space<vmem>>, vector<1x8x1xf32>,
    %259 = arith.index_cast %c3_i32 : i32 to index
    %c0_91 = arith.constant 0 : index
    %c0_92 = arith.constant 0 : index
    %260 = vector.load %arg17[%259, %c0_91, %c0_92] : memref<8x8x1xf32, #tpu.memory_space<vmem>>, vector<1x8x1xf32>
    %261 = vector.shape_cast %260 : vector<1x8x1xf32> to vector<8x1xf32>
    %262 = arith.addf %209, %261 : vector<8x1xf32>
    %263 = arith.index_cast %c3_i32 : i32 to index
    %c0_93 = arith.constant 0 : index
    %c0_94 = arith.constant 0 : index
    %264 = vector.load %arg17[%263, %c0_93, %c0_94] : memref<8x8x1xf32, #tpu.memory_space<vmem>>, vector<1x8x1xf32>
    %265 = vector.shape_cast %264 : vector<1x8x1xf32> to vector<8x1xf32>
    %266 = vector.shape_cast %262 : vector<8x1xf32> to vector<1x8x1xf32>
    tpu.vector_store %arg17[%263, %c0_93, %c0_94], %266 {strides = array<i32>} : memref<8x8x1xf32, #tpu.memory_space<vmem>>, vector<1x8x1xf32>,
    %c4_i32 = arith.constant 4 : i32
    %267 = arith.index_cast %c4_i32 : i32 to index
    %c0_95 = arith.constant 0 : index
    %c0_96 = arith.constant 0 : index
    %268 = vector.load %arg14[%267, %c0_95, %c0_96] : memref<8x8x128xf32, #tpu.memory_space<vmem>>, vector<1x8x128xf32>
    %269 = vector.shape_cast %268 : vector<1x8x128xf32> to vector<8x128xf32>
    %270 = arith.addf %217, %269 : vector<8x128xf32>
    %cst_97 = arith.constant dense<0.000000e+00> : vector<8x128xf32>
    %271 = tpu.matmul %246, %48, %cst_97 {dimension_numbers = #tpu.dot_dimension_numbers<[1], [0], [0], [1], [0, 0, 1, 1], [], []>} : vector<8x32xf32>, vector<32x128xf32>, vector<8x128xf32> -> vector<8x128xf32>
    %272 = arith.addf %270, %271 : vector<8x128xf32>
    %273 = vector.broadcast %49 : vector<1x128xf32> to vector<8x128xf32>
    %274 = arith.addf %272, %273 : vector<8x128xf32>
    %275 = vector.extract_strided_slice %274 {offsets = [0, 0], sizes = [8, 32], strides = [1, 1]} : vector<8x128xf32> to vector<8x32xf32>
    %276 = arith.negf %275 : vector<8x32xf32>
    %277 = math.exp %276 : vector<8x32xf32>
    %cst_98 = arith.constant 1.000000e+00 : f32
    %278 = vector.broadcast %cst_98 : f32 to vector<8x32xf32>
    %279 = arith.addf %278, %277 : vector<8x32xf32>
    %280 = arith.divf %278, %279 : vector<8x32xf32>
    %281 = vector.extract_strided_slice %274 {offsets = [0, 32], sizes = [8, 32], strides = [1, 1]} : vector<8x128xf32> to vector<8x32xf32>
    %282 = arith.negf %281 : vector<8x32xf32>
    %283 = math.exp %282 : vector<8x32xf32>
    %cst_99 = arith.constant 1.000000e+00 : f32
    %284 = vector.broadcast %cst_99 : f32 to vector<8x32xf32>
    %285 = arith.addf %284, %283 : vector<8x32xf32>
    %286 = arith.divf %284, %285 : vector<8x32xf32>
    %287 = vector.extract_strided_slice %274 {offsets = [0, 64], sizes = [8, 32], strides = [1, 1]} : vector<8x128xf32> to vector<8x32xf32>
    %288 = math.tanh %287 : vector<8x32xf32>
    %289 = vector.extract_strided_slice %274 {offsets = [0, 96], sizes = [8, 32], strides = [1, 1]} : vector<8x128xf32> to vector<8x32xf32>
    %290 = arith.negf %289 : vector<8x32xf32>
    %291 = math.exp %290 : vector<8x32xf32>
    %cst_100 = arith.constant 1.000000e+00 : f32
    %292 = vector.broadcast %cst_100 : f32 to vector<8x32xf32>
    %293 = arith.addf %292, %291 : vector<8x32xf32>
    %294 = arith.divf %292, %293 : vector<8x32xf32>
    %295 = arith.mulf %286, %244 : vector<8x32xf32>
    %296 = arith.mulf %280, %288 : vector<8x32xf32>
    %297 = arith.addf %295, %296 : vector<8x32xf32>
    %298 = math.tanh %297 : vector<8x32xf32>
    %299 = arith.mulf %294, %298 : vector<8x32xf32>
    %300 = arith.index_cast %c4_i32 : i32 to index
    %c0_101 = arith.constant 0 : index
    %c0_102 = arith.constant 0 : index
    %301 = vector.load %arg15[%300, %c0_101, %c0_102] : memref<8x8x32xf32, #tpu.memory_space<vmem>>, vector<1x8x32xf32>
    %302 = vector.shape_cast %301 : vector<1x8x32xf32> to vector<8x32xf32>
    %303 = vector.shape_cast %299 : vector<8x32xf32> to vector<1x8x32xf32>
    tpu.vector_store %arg15[%300, %c0_101, %c0_102], %303 {strides = array<i32>} : memref<8x8x32xf32, #tpu.memory_space<vmem>>, vector<1x8x32xf32>,
    %304 = arith.index_cast %c4_i32 : i32 to index
    %c0_103 = arith.constant 0 : index
    %c0_104 = arith.constant 0 : index
    %305 = vector.load %arg16[%304, %c0_103, %c0_104] : memref<8x8x1xf32, #tpu.memory_space<vmem>>, vector<1x8x1xf32>
    %306 = vector.shape_cast %305 : vector<1x8x1xf32> to vector<8x1xf32>
    %307 = arith.addf %254, %306 : vector<8x1xf32>
    %308 = arith.index_cast %c4_i32 : i32 to index
    %c0_105 = arith.constant 0 : index
    %c0_106 = arith.constant 0 : index
    %309 = vector.load %arg16[%308, %c0_105, %c0_106] : memref<8x8x1xf32, #tpu.memory_space<vmem>>, vector<1x8x1xf32>
    %310 = vector.shape_cast %309 : vector<1x8x1xf32> to vector<8x1xf32>
    %311 = vector.shape_cast %307 : vector<8x1xf32> to vector<1x8x1xf32>
    tpu.vector_store %arg16[%308, %c0_105, %c0_106], %311 {strides = array<i32>} : memref<8x8x1xf32, #tpu.memory_space<vmem>>, vector<1x8x1xf32>,
    %312 = arith.index_cast %c4_i32 : i32 to index
    %c0_107 = arith.constant 0 : index
    %c0_108 = arith.constant 0 : index
    %313 = vector.load %arg17[%312, %c0_107, %c0_108] : memref<8x8x1xf32, #tpu.memory_space<vmem>>, vector<1x8x1xf32>
    %314 = vector.shape_cast %313 : vector<1x8x1xf32> to vector<8x1xf32>
    %315 = arith.addf %262, %314 : vector<8x1xf32>
    %316 = arith.index_cast %c4_i32 : i32 to index
    %c0_109 = arith.constant 0 : index
    %c0_110 = arith.constant 0 : index
    %317 = vector.load %arg17[%316, %c0_109, %c0_110] : memref<8x8x1xf32, #tpu.memory_space<vmem>>, vector<1x8x1xf32>
    %318 = vector.shape_cast %317 : vector<1x8x1xf32> to vector<8x1xf32>
    %319 = vector.shape_cast %315 : vector<8x1xf32> to vector<1x8x1xf32>
    tpu.vector_store %arg17[%316, %c0_109, %c0_110], %319 {strides = array<i32>} : memref<8x8x1xf32, #tpu.memory_space<vmem>>, vector<1x8x1xf32>,
    %c5_i32 = arith.constant 5 : i32
    %320 = arith.index_cast %c5_i32 : i32 to index
    %c0_111 = arith.constant 0 : index
    %c0_112 = arith.constant 0 : index
    %321 = vector.load %arg14[%320, %c0_111, %c0_112] : memref<8x8x128xf32, #tpu.memory_space<vmem>>, vector<1x8x128xf32>
    %322 = vector.shape_cast %321 : vector<1x8x128xf32> to vector<8x128xf32>
    %323 = arith.addf %270, %322 : vector<8x128xf32>
    %cst_113 = arith.constant dense<0.000000e+00> : vector<8x128xf32>
    %324 = tpu.matmul %299, %48, %cst_113 {dimension_numbers = #tpu.dot_dimension_numbers<[1], [0], [0], [1], [0, 0, 1, 1], [], []>} : vector<8x32xf32>, vector<32x128xf32>, vector<8x128xf32> -> vector<8x128xf32>
    %325 = arith.addf %323, %324 : vector<8x128xf32>
    %326 = vector.broadcast %49 : vector<1x128xf32> to vector<8x128xf32>
    %327 = arith.addf %325, %326 : vector<8x128xf32>
    %328 = vector.extract_strided_slice %327 {offsets = [0, 0], sizes = [8, 32], strides = [1, 1]} : vector<8x128xf32> to vector<8x32xf32>
    %329 = arith.negf %328 : vector<8x32xf32>
    %330 = math.exp %329 : vector<8x32xf32>
    %cst_114 = arith.constant 1.000000e+00 : f32
    %331 = vector.broadcast %cst_114 : f32 to vector<8x32xf32>
    %332 = arith.addf %331, %330 : vector<8x32xf32>
    %333 = arith.divf %331, %332 : vector<8x32xf32>
    %334 = vector.extract_strided_slice %327 {offsets = [0, 32], sizes = [8, 32], strides = [1, 1]} : vector<8x128xf32> to vector<8x32xf32>
    %335 = arith.negf %334 : vector<8x32xf32>
    %336 = math.exp %335 : vector<8x32xf32>
    %cst_115 = arith.constant 1.000000e+00 : f32
    %337 = vector.broadcast %cst_115 : f32 to vector<8x32xf32>
    %338 = arith.addf %337, %336 : vector<8x32xf32>
    %339 = arith.divf %337, %338 : vector<8x32xf32>
    %340 = vector.extract_strided_slice %327 {offsets = [0, 64], sizes = [8, 32], strides = [1, 1]} : vector<8x128xf32> to vector<8x32xf32>
    %341 = math.tanh %340 : vector<8x32xf32>
    %342 = vector.extract_strided_slice %327 {offsets = [0, 96], sizes = [8, 32], strides = [1, 1]} : vector<8x128xf32> to vector<8x32xf32>
    %343 = arith.negf %342 : vector<8x32xf32>
    %344 = math.exp %343 : vector<8x32xf32>
    %cst_116 = arith.constant 1.000000e+00 : f32
    %345 = vector.broadcast %cst_116 : f32 to vector<8x32xf32>
    %346 = arith.addf %345, %344 : vector<8x32xf32>
    %347 = arith.divf %345, %346 : vector<8x32xf32>
    %348 = arith.mulf %339, %297 : vector<8x32xf32>
    %349 = arith.mulf %333, %341 : vector<8x32xf32>
    %350 = arith.addf %348, %349 : vector<8x32xf32>
    %351 = math.tanh %350 : vector<8x32xf32>
    %352 = arith.mulf %347, %351 : vector<8x32xf32>
    %353 = arith.index_cast %c5_i32 : i32 to index
    %c0_117 = arith.constant 0 : index
    %c0_118 = arith.constant 0 : index
    %354 = vector.load %arg15[%353, %c0_117, %c0_118] : memref<8x8x32xf32, #tpu.memory_space<vmem>>, vector<1x8x32xf32>
    %355 = vector.shape_cast %354 : vector<1x8x32xf32> to vector<8x32xf32>
    %356 = vector.shape_cast %352 : vector<8x32xf32> to vector<1x8x32xf32>
    tpu.vector_store %arg15[%353, %c0_117, %c0_118], %356 {strides = array<i32>} : memref<8x8x32xf32, #tpu.memory_space<vmem>>, vector<1x8x32xf32>,
    %357 = arith.index_cast %c5_i32 : i32 to index
    %c0_119 = arith.constant 0 : index
    %c0_120 = arith.constant 0 : index
    %358 = vector.load %arg16[%357, %c0_119, %c0_120] : memref<8x8x1xf32, #tpu.memory_space<vmem>>, vector<1x8x1xf32>
    %359 = vector.shape_cast %358 : vector<1x8x1xf32> to vector<8x1xf32>
    %360 = arith.addf %307, %359 : vector<8x1xf32>
    %361 = arith.index_cast %c5_i32 : i32 to index
    %c0_121 = arith.constant 0 : index
    %c0_122 = arith.constant 0 : index
    %362 = vector.load %arg16[%361, %c0_121, %c0_122] : memref<8x8x1xf32, #tpu.memory_space<vmem>>, vector<1x8x1xf32>
    %363 = vector.shape_cast %362 : vector<1x8x1xf32> to vector<8x1xf32>
    %364 = vector.shape_cast %360 : vector<8x1xf32> to vector<1x8x1xf32>
    tpu.vector_store %arg16[%361, %c0_121, %c0_122], %364 {strides = array<i32>} : memref<8x8x1xf32, #tpu.memory_space<vmem>>, vector<1x8x1xf32>,
    %365 = arith.index_cast %c5_i32 : i32 to index
    %c0_123 = arith.constant 0 : index
    %c0_124 = arith.constant 0 : index
    %366 = vector.load %arg17[%365, %c0_123, %c0_124] : memref<8x8x1xf32, #tpu.memory_space<vmem>>, vector<1x8x1xf32>
    %367 = vector.shape_cast %366 : vector<1x8x1xf32> to vector<8x1xf32>
    %368 = arith.addf %315, %367 : vector<8x1xf32>
    %369 = arith.index_cast %c5_i32 : i32 to index
    %c0_125 = arith.constant 0 : index
    %c0_126 = arith.constant 0 : index
    %370 = vector.load %arg17[%369, %c0_125, %c0_126] : memref<8x8x1xf32, #tpu.memory_space<vmem>>, vector<1x8x1xf32>
    %371 = vector.shape_cast %370 : vector<1x8x1xf32> to vector<8x1xf32>
    %372 = vector.shape_cast %368 : vector<8x1xf32> to vector<1x8x1xf32>
    tpu.vector_store %arg17[%369, %c0_125, %c0_126], %372 {strides = array<i32>} : memref<8x8x1xf32, #tpu.memory_space<vmem>>, vector<1x8x1xf32>,
    %c6_i32 = arith.constant 6 : i32
    %373 = arith.index_cast %c6_i32 : i32 to index
    %c0_127 = arith.constant 0 : index
    %c0_128 = arith.constant 0 : index
    %374 = vector.load %arg14[%373, %c0_127, %c0_128] : memref<8x8x128xf32, #tpu.memory_space<vmem>>, vector<1x8x128xf32>
    %375 = vector.shape_cast %374 : vector<1x8x128xf32> to vector<8x128xf32>
    %376 = arith.addf %323, %375 : vector<8x128xf32>
    %cst_129 = arith.constant dense<0.000000e+00> : vector<8x128xf32>
    %377 = tpu.matmul %352, %48, %cst_129 {dimension_numbers = #tpu.dot_dimension_numbers<[1], [0], [0], [1], [0, 0, 1, 1], [], []>} : vector<8x32xf32>, vector<32x128xf32>, vector<8x128xf32> -> vector<8x128xf32>
    %378 = arith.addf %376, %377 : vector<8x128xf32>
    %379 = vector.broadcast %49 : vector<1x128xf32> to vector<8x128xf32>
    %380 = arith.addf %378, %379 : vector<8x128xf32>
    %381 = vector.extract_strided_slice %380 {offsets = [0, 0], sizes = [8, 32], strides = [1, 1]} : vector<8x128xf32> to vector<8x32xf32>
    %382 = arith.negf %381 : vector<8x32xf32>
    %383 = math.exp %382 : vector<8x32xf32>
    %cst_130 = arith.constant 1.000000e+00 : f32
    %384 = vector.broadcast %cst_130 : f32 to vector<8x32xf32>
    %385 = arith.addf %384, %383 : vector<8x32xf32>
    %386 = arith.divf %384, %385 : vector<8x32xf32>
    %387 = vector.extract_strided_slice %380 {offsets = [0, 32], sizes = [8, 32], strides = [1, 1]} : vector<8x128xf32> to vector<8x32xf32>
    %388 = arith.negf %387 : vector<8x32xf32>
    %389 = math.exp %388 : vector<8x32xf32>
    %cst_131 = arith.constant 1.000000e+00 : f32
    %390 = vector.broadcast %cst_131 : f32 to vector<8x32xf32>
    %391 = arith.addf %390, %389 : vector<8x32xf32>
    %392 = arith.divf %390, %391 : vector<8x32xf32>
    %393 = vector.extract_strided_slice %380 {offsets = [0, 64], sizes = [8, 32], strides = [1, 1]} : vector<8x128xf32> to vector<8x32xf32>
    %394 = math.tanh %393 : vector<8x32xf32>
    %395 = vector.extract_strided_slice %380 {offsets = [0, 96], sizes = [8, 32], strides = [1, 1]} : vector<8x128xf32> to vector<8x32xf32>
    %396 = arith.negf %395 : vector<8x32xf32>
    %397 = math.exp %396 : vector<8x32xf32>
    %cst_132 = arith.constant 1.000000e+00 : f32
    %398 = vector.broadcast %cst_132 : f32 to vector<8x32xf32>
    %399 = arith.addf %398, %397 : vector<8x32xf32>
    %400 = arith.divf %398, %399 : vector<8x32xf32>
    %401 = arith.mulf %392, %350 : vector<8x32xf32>
    %402 = arith.mulf %386, %394 : vector<8x32xf32>
    %403 = arith.addf %401, %402 : vector<8x32xf32>
    %404 = math.tanh %403 : vector<8x32xf32>
    %405 = arith.mulf %400, %404 : vector<8x32xf32>
    %406 = arith.index_cast %c6_i32 : i32 to index
    %c0_133 = arith.constant 0 : index
    %c0_134 = arith.constant 0 : index
    %407 = vector.load %arg15[%406, %c0_133, %c0_134] : memref<8x8x32xf32, #tpu.memory_space<vmem>>, vector<1x8x32xf32>
    %408 = vector.shape_cast %407 : vector<1x8x32xf32> to vector<8x32xf32>
    %409 = vector.shape_cast %405 : vector<8x32xf32> to vector<1x8x32xf32>
    tpu.vector_store %arg15[%406, %c0_133, %c0_134], %409 {strides = array<i32>} : memref<8x8x32xf32, #tpu.memory_space<vmem>>, vector<1x8x32xf32>,
    %410 = arith.index_cast %c6_i32 : i32 to index
    %c0_135 = arith.constant 0 : index
    %c0_136 = arith.constant 0 : index
    %411 = vector.load %arg16[%410, %c0_135, %c0_136] : memref<8x8x1xf32, #tpu.memory_space<vmem>>, vector<1x8x1xf32>
    %412 = vector.shape_cast %411 : vector<1x8x1xf32> to vector<8x1xf32>
    %413 = arith.addf %360, %412 : vector<8x1xf32>
    %414 = arith.index_cast %c6_i32 : i32 to index
    %c0_137 = arith.constant 0 : index
    %c0_138 = arith.constant 0 : index
    %415 = vector.load %arg16[%414, %c0_137, %c0_138] : memref<8x8x1xf32, #tpu.memory_space<vmem>>, vector<1x8x1xf32>
    %416 = vector.shape_cast %415 : vector<1x8x1xf32> to vector<8x1xf32>
    %417 = vector.shape_cast %413 : vector<8x1xf32> to vector<1x8x1xf32>
    tpu.vector_store %arg16[%414, %c0_137, %c0_138], %417 {strides = array<i32>} : memref<8x8x1xf32, #tpu.memory_space<vmem>>, vector<1x8x1xf32>,
    %418 = arith.index_cast %c6_i32 : i32 to index
    %c0_139 = arith.constant 0 : index
    %c0_140 = arith.constant 0 : index
    %419 = vector.load %arg17[%418, %c0_139, %c0_140] : memref<8x8x1xf32, #tpu.memory_space<vmem>>, vector<1x8x1xf32>
    %420 = vector.shape_cast %419 : vector<1x8x1xf32> to vector<8x1xf32>
    %421 = arith.addf %368, %420 : vector<8x1xf32>
    %422 = arith.index_cast %c6_i32 : i32 to index
    %c0_141 = arith.constant 0 : index
    %c0_142 = arith.constant 0 : index
    %423 = vector.load %arg17[%422, %c0_141, %c0_142] : memref<8x8x1xf32, #tpu.memory_space<vmem>>, vector<1x8x1xf32>
    %424 = vector.shape_cast %423 : vector<1x8x1xf32> to vector<8x1xf32>
    %425 = vector.shape_cast %421 : vector<8x1xf32> to vector<1x8x1xf32>
    tpu.vector_store %arg17[%422, %c0_141, %c0_142], %425 {strides = array<i32>} : memref<8x8x1xf32, #tpu.memory_space<vmem>>, vector<1x8x1xf32>,
    %c7_i32 = arith.constant 7 : i32
    %426 = arith.index_cast %c7_i32 : i32 to index
    %c0_143 = arith.constant 0 : index
    %c0_144 = arith.constant 0 : index
    %427 = vector.load %arg14[%426, %c0_143, %c0_144] : memref<8x8x128xf32, #tpu.memory_space<vmem>>, vector<1x8x128xf32>
    %428 = vector.shape_cast %427 : vector<1x8x128xf32> to vector<8x128xf32>
    %429 = arith.addf %376, %428 : vector<8x128xf32>
    %cst_145 = arith.constant dense<0.000000e+00> : vector<8x128xf32>
    %430 = tpu.matmul %405, %48, %cst_145 {dimension_numbers = #tpu.dot_dimension_numbers<[1], [0], [0], [1], [0, 0, 1, 1], [], []>} : vector<8x32xf32>, vector<32x128xf32>, vector<8x128xf32> -> vector<8x128xf32>
    %431 = arith.addf %429, %430 : vector<8x128xf32>
    %432 = vector.broadcast %49 : vector<1x128xf32> to vector<8x128xf32>
    %433 = arith.addf %431, %432 : vector<8x128xf32>
    %434 = vector.extract_strided_slice %433 {offsets = [0, 0], sizes = [8, 32], strides = [1, 1]} : vector<8x128xf32> to vector<8x32xf32>
    %435 = arith.negf %434 : vector<8x32xf32>
    %436 = math.exp %435 : vector<8x32xf32>
    %cst_146 = arith.constant 1.000000e+00 : f32
    %437 = vector.broadcast %cst_146 : f32 to vector<8x32xf32>
    %438 = arith.addf %437, %436 : vector<8x32xf32>
    %439 = arith.divf %437, %438 : vector<8x32xf32>
    %440 = vector.extract_strided_slice %433 {offsets = [0, 32], sizes = [8, 32], strides = [1, 1]} : vector<8x128xf32> to vector<8x32xf32>
    %441 = arith.negf %440 : vector<8x32xf32>
    %442 = math.exp %441 : vector<8x32xf32>
    %cst_147 = arith.constant 1.000000e+00 : f32
    %443 = vector.broadcast %cst_147 : f32 to vector<8x32xf32>
    %444 = arith.addf %443, %442 : vector<8x32xf32>
    %445 = arith.divf %443, %444 : vector<8x32xf32>
    %446 = vector.extract_strided_slice %433 {offsets = [0, 64], sizes = [8, 32], strides = [1, 1]} : vector<8x128xf32> to vector<8x32xf32>
    %447 = math.tanh %446 : vector<8x32xf32>
    %448 = vector.extract_strided_slice %433 {offsets = [0, 96], sizes = [8, 32], strides = [1, 1]} : vector<8x128xf32> to vector<8x32xf32>
    %449 = arith.negf %448 : vector<8x32xf32>
    %450 = math.exp %449 : vector<8x32xf32>
    %cst_148 = arith.constant 1.000000e+00 : f32
    %451 = vector.broadcast %cst_148 : f32 to vector<8x32xf32>
    %452 = arith.addf %451, %450 : vector<8x32xf32>
    %453 = arith.divf %451, %452 : vector<8x32xf32>
    %454 = arith.mulf %445, %403 : vector<8x32xf32>
    %455 = arith.mulf %439, %447 : vector<8x32xf32>
    %456 = arith.addf %454, %455 : vector<8x32xf32>
    %457 = math.tanh %456 : vector<8x32xf32>
    %458 = arith.mulf %453, %457 : vector<8x32xf32>
    %459 = arith.index_cast %c7_i32 : i32 to index
    %c0_149 = arith.constant 0 : index
    %c0_150 = arith.constant 0 : index
    %460 = vector.load %arg15[%459, %c0_149, %c0_150] : memref<8x8x32xf32, #tpu.memory_space<vmem>>, vector<1x8x32xf32>
    %461 = vector.shape_cast %460 : vector<1x8x32xf32> to vector<8x32xf32>
    %462 = vector.shape_cast %458 : vector<8x32xf32> to vector<1x8x32xf32>
    tpu.vector_store %arg15[%459, %c0_149, %c0_150], %462 {strides = array<i32>} : memref<8x8x32xf32, #tpu.memory_space<vmem>>, vector<1x8x32xf32>,
    %463 = arith.index_cast %c7_i32 : i32 to index
    %c0_151 = arith.constant 0 : index
    %c0_152 = arith.constant 0 : index
    %464 = vector.load %arg16[%463, %c0_151, %c0_152] : memref<8x8x1xf32, #tpu.memory_space<vmem>>, vector<1x8x1xf32>
    %465 = vector.shape_cast %464 : vector<1x8x1xf32> to vector<8x1xf32>
    %466 = arith.addf %413, %465 : vector<8x1xf32>
    %467 = arith.index_cast %c7_i32 : i32 to index
    %c0_153 = arith.constant 0 : index
    %c0_154 = arith.constant 0 : index
    %468 = vector.load %arg16[%467, %c0_153, %c0_154] : memref<8x8x1xf32, #tpu.memory_space<vmem>>, vector<1x8x1xf32>
    %469 = vector.shape_cast %468 : vector<1x8x1xf32> to vector<8x1xf32>
    %470 = vector.shape_cast %466 : vector<8x1xf32> to vector<1x8x1xf32>
    tpu.vector_store %arg16[%467, %c0_153, %c0_154], %470 {strides = array<i32>} : memref<8x8x1xf32, #tpu.memory_space<vmem>>, vector<1x8x1xf32>,
    %471 = arith.index_cast %c7_i32 : i32 to index
    %c0_155 = arith.constant 0 : index
    %c0_156 = arith.constant 0 : index
    %472 = vector.load %arg17[%471, %c0_155, %c0_156] : memref<8x8x1xf32, #tpu.memory_space<vmem>>, vector<1x8x1xf32>
    %473 = vector.shape_cast %472 : vector<1x8x1xf32> to vector<8x1xf32>
    %474 = arith.addf %421, %473 : vector<8x1xf32>
    %475 = arith.index_cast %c7_i32 : i32 to index
    %c0_157 = arith.constant 0 : index
    %c0_158 = arith.constant 0 : index
    %476 = vector.load %arg17[%475, %c0_157, %c0_158] : memref<8x8x1xf32, #tpu.memory_space<vmem>>, vector<1x8x1xf32>
    %477 = vector.shape_cast %476 : vector<1x8x1xf32> to vector<8x1xf32>
    %478 = vector.shape_cast %474 : vector<8x1xf32> to vector<1x8x1xf32>
    tpu.vector_store %arg17[%475, %c0_157, %c0_158], %478 {strides = array<i32>} : memref<8x8x1xf32, #tpu.memory_space<vmem>>, vector<1x8x1xf32>,
    %c8_i32 = arith.constant 8 : i32
    %c0_159 = arith.constant 0 : index
    %c0_160 = arith.constant 0 : index
    %c0_161 = arith.constant 0 : index
    %479 = vector.load %arg15[%c0_159, %c0_160, %c0_161] : memref<8x8x32xf32, #tpu.memory_space<vmem>>, vector<8x8x32xf32>
    %480 = vector.shape_cast %479 : vector<8x8x32xf32> to vector<64x32xf32>
    %c0_162 = arith.constant 0 : index
    %c0_163 = arith.constant 0 : index
    %481 = vector.load %arg8[%c0_162, %c0_163] : memref<32x1xf32, #tpu.memory_space<vmem>>, vector<32x1xf32>
    %cst_164 = arith.constant dense<0.000000e+00> : vector<64x1xf32>
    %482 = tpu.matmul %480, %481, %cst_164 {dimension_numbers = #tpu.dot_dimension_numbers<[1], [0], [0], [1], [0, 0, 1, 1], [], []>} : vector<64x32xf32>, vector<32x1xf32>, vector<64x1xf32> -> vector<64x1xf32>
    %c0_165 = arith.constant 0 : index
    %483 = memref.load %arg9[%c0_165] : memref<1xf32, #tpu.memory_space<smem>>
    %484 = vector.broadcast %483 : f32 to vector<64x1xf32>
    %485 = arith.addf %482, %484 : vector<64x1xf32>
    %486 = vector.shape_cast %485 : vector<64x1xf32> to vector<8x8x1xf32>
    %cst_166 = arith.constant dense<0xFF800000> : vector<8x1xf32>
    %487 = vector.multi_reduction <maximumf>, %486, %cst_166 [0] : vector<8x8x1xf32> to vector<8x1xf32>
    %488 = vector.shape_cast %487 : vector<8x1xf32> to vector<1x8x1xf32>
    %489 = vector.broadcast %488 : vector<1x8x1xf32> to vector<8x8x1xf32>
    %490 = arith.subf %486, %489 : vector<8x8x1xf32>
    %491 = math.exp %490 : vector<8x8x1xf32>
    %cst_167 = arith.constant dense<0.000000e+00> : vector<8x1xf32>
    %492 = vector.multi_reduction <add>, %491, %cst_167 [0] : vector<8x8x1xf32> to vector<8x1xf32>
    %493 = vector.shape_cast %492 : vector<8x1xf32> to vector<1x8x1xf32>
    %494 = tpu.reciprocal %493 {approx = true} : vector<1x8x1xf32> -> vector<1x8x1xf32>
    %495 = vector.broadcast %494 : vector<1x8x1xf32> to vector<8x8x1xf32>
    %496 = arith.mulf %491, %495 : vector<8x8x1xf32>
    %c0_168 = arith.constant 0 : index
    %c0_169 = arith.constant 0 : index
    %c0_170 = arith.constant 0 : index
    %497 = vector.load %arg17[%c0_168, %c0_169, %c0_170] : memref<8x8x1xf32, #tpu.memory_space<vmem>>, vector<8x8x1xf32>
    %498 = arith.mulf %496, %497 : vector<8x8x1xf32>
    %cst_171 = arith.constant dense<0.000000e+00> : vector<8x1xf32>
    %499 = vector.multi_reduction <add>, %498, %cst_171 [0] : vector<8x8x1xf32> to vector<8x1xf32>
    %c0_172 = arith.constant 0 : index
    %c0_173 = arith.constant 0 : index
    %c0_174 = arith.constant 0 : index
    %500 = vector.load %arg16[%c0_172, %c0_173, %c0_174] : memref<8x8x1xf32, #tpu.memory_space<vmem>>, vector<8x8x1xf32>
    %501 = vector.shape_cast %499 : vector<8x1xf32> to vector<1x8x1xf32>
    %502 = vector.broadcast %501 : vector<1x8x1xf32> to vector<8x8x1xf32>
    %503 = arith.addf %500, %502 : vector<8x8x1xf32>
    %c0_175 = arith.constant 0 : index
    %504 = memref.load %arg10[%c0_175] : memref<1xf32, #tpu.memory_space<smem>>
    %505 = vector.broadcast %504 : f32 to vector<8x8x1xf32>
    %506 = arith.addf %503, %505 : vector<8x8x1xf32>
    %507 = arith.negf %506 : vector<8x8x1xf32>
    %508 = math.exp %507 : vector<8x8x1xf32>
    %cst_176 = arith.constant 1.000000e+00 : f32
    %509 = vector.broadcast %cst_176 : f32 to vector<8x8x1xf32>
    %510 = arith.addf %509, %508 : vector<8x8x1xf32>
    %511 = arith.divf %509, %510 : vector<8x8x1xf32>
    %512 = vector.broadcast %511 : vector<8x8x1xf32> to vector<8x8x32xf32>
    %513 = arith.mulf %479, %512 : vector<8x8x32xf32>
    %514 = vector.shape_cast %513 : vector<8x8x32xf32> to vector<64x32xf32>
    %c0_177 = arith.constant 0 : index
    %c0_178 = arith.constant 0 : index
    %515 = vector.load %arg11[%c0_177, %c0_178] : memref<32x8xf32, #tpu.memory_space<vmem>>, vector<32x8xf32>
    %cst_179 = arith.constant dense<0.000000e+00> : vector<64x8xf32>
    %516 = tpu.matmul %514, %515, %cst_179 {dimension_numbers = #tpu.dot_dimension_numbers<[1], [0], [0], [1], [0, 0, 1, 1], [], []>} : vector<64x32xf32>, vector<32x8xf32>, vector<64x8xf32> -> vector<64x8xf32>
    %517 = vector.shape_cast %516 : vector<64x8xf32> to vector<8x8x8xf32>
    %c0_180 = arith.constant 0 : index
    %c0_181 = arith.constant 0 : index
    %c0_182 = arith.constant 0 : index
    %518 = vector.load %arg13[%c0_180, %c0_181, %c0_182] : memref<8x8x8xf32, #tpu.memory_space<vmem>>, vector<8x8x8xf32>
    tpu.vector_store %arg13[%c0_180, %c0_181, %c0_182], %517 {strides = array<i32>} : memref<8x8x8xf32, #tpu.memory_space<vmem>>, vector<8x8x8xf32>,
    %c0_183 = arith.constant 0 : index
    %c0_184 = arith.constant 0 : index
    %519 = vector.load %arg12[%c0_183, %c0_184] : memref<1x8xf32, #tpu.memory_space<vmem>>, vector<1x8xf32>
    %cst_185 = arith.constant 0.000000e+00 : f32
    %520 = vector.broadcast %cst_185 : f32 to vector<8x8xf32>
    %c0_i32_186 = arith.constant 0 : i32
    %521 = arith.index_cast %c0_i32_186 : i32 to index
    %c0_187 = arith.constant 0 : index
    %c0_188 = arith.constant 0 : index
    %522 = vector.load %arg13[%521, %c0_187, %c0_188] : memref<8x8x8xf32, #tpu.memory_space<vmem>>, vector<1x8x8xf32>
    %523 = vector.shape_cast %522 : vector<1x8x8xf32> to vector<8x8xf32>
    %524 = arith.addf %520, %523 : vector<8x8xf32>
    %525 = vector.broadcast %519 : vector<1x8xf32> to vector<8x8xf32>
    %526 = arith.addf %524, %525 : vector<8x8xf32>
    %527 = arith.index_cast %c0_i32_186 : i32 to index
    %c0_189 = arith.constant 0 : index
    %c0_190 = arith.constant 0 : index
    %528 = vector.load %arg13[%527, %c0_189, %c0_190] : memref<8x8x8xf32, #tpu.memory_space<vmem>>, vector<1x8x8xf32>
    %529 = vector.shape_cast %528 : vector<1x8x8xf32> to vector<8x8xf32>
    %530 = vector.shape_cast %526 : vector<8x8xf32> to vector<1x8x8xf32>
    tpu.vector_store %arg13[%527, %c0_189, %c0_190], %530 {strides = array<i32>} : memref<8x8x8xf32, #tpu.memory_space<vmem>>, vector<1x8x8xf32>,
    %c1_i32_191 = arith.constant 1 : i32
    %531 = arith.index_cast %c1_i32_191 : i32 to index
    %c0_192 = arith.constant 0 : index
    %c0_193 = arith.constant 0 : index
    %532 = vector.load %arg13[%531, %c0_192, %c0_193] : memref<8x8x8xf32, #tpu.memory_space<vmem>>, vector<1x8x8xf32>
    %533 = vector.shape_cast %532 : vector<1x8x8xf32> to vector<8x8xf32>
    %534 = arith.addf %524, %533 : vector<8x8xf32>
    %535 = vector.broadcast %519 : vector<1x8xf32> to vector<8x8xf32>
    %536 = arith.addf %534, %535 : vector<8x8xf32>
    %537 = arith.index_cast %c1_i32_191 : i32 to index
    %c0_194 = arith.constant 0 : index
    %c0_195 = arith.constant 0 : index
    %538 = vector.load %arg13[%537, %c0_194, %c0_195] : memref<8x8x8xf32, #tpu.memory_space<vmem>>, vector<1x8x8xf32>
    %539 = vector.shape_cast %538 : vector<1x8x8xf32> to vector<8x8xf32>
    %540 = vector.shape_cast %536 : vector<8x8xf32> to vector<1x8x8xf32>
    tpu.vector_store %arg13[%537, %c0_194, %c0_195], %540 {strides = array<i32>} : memref<8x8x8xf32, #tpu.memory_space<vmem>>, vector<1x8x8xf32>,
    %c2_i32_196 = arith.constant 2 : i32
    %541 = arith.index_cast %c2_i32_196 : i32 to index
    %c0_197 = arith.constant 0 : index
    %c0_198 = arith.constant 0 : index
    %542 = vector.load %arg13[%541, %c0_197, %c0_198] : memref<8x8x8xf32, #tpu.memory_space<vmem>>, vector<1x8x8xf32>
    %543 = vector.shape_cast %542 : vector<1x8x8xf32> to vector<8x8xf32>
    %544 = arith.addf %534, %543 : vector<8x8xf32>
    %545 = vector.broadcast %519 : vector<1x8xf32> to vector<8x8xf32>
    %546 = arith.addf %544, %545 : vector<8x8xf32>
    %547 = arith.index_cast %c2_i32_196 : i32 to index
    %c0_199 = arith.constant 0 : index
    %c0_200 = arith.constant 0 : index
    %548 = vector.load %arg13[%547, %c0_199, %c0_200] : memref<8x8x8xf32, #tpu.memory_space<vmem>>, vector<1x8x8xf32>
    %549 = vector.shape_cast %548 : vector<1x8x8xf32> to vector<8x8xf32>
    %550 = vector.shape_cast %546 : vector<8x8xf32> to vector<1x8x8xf32>
    tpu.vector_store %arg13[%547, %c0_199, %c0_200], %550 {strides = array<i32>} : memref<8x8x8xf32, #tpu.memory_space<vmem>>, vector<1x8x8xf32>,
    %c3_i32_201 = arith.constant 3 : i32
    %551 = arith.index_cast %c3_i32_201 : i32 to index
    %c0_202 = arith.constant 0 : index
    %c0_203 = arith.constant 0 : index
    %552 = vector.load %arg13[%551, %c0_202, %c0_203] : memref<8x8x8xf32, #tpu.memory_space<vmem>>, vector<1x8x8xf32>
    %553 = vector.shape_cast %552 : vector<1x8x8xf32> to vector<8x8xf32>
    %554 = arith.addf %544, %553 : vector<8x8xf32>
    %555 = vector.broadcast %519 : vector<1x8xf32> to vector<8x8xf32>
    %556 = arith.addf %554, %555 : vector<8x8xf32>
    %557 = arith.index_cast %c3_i32_201 : i32 to index
    %c0_204 = arith.constant 0 : index
    %c0_205 = arith.constant 0 : index
    %558 = vector.load %arg13[%557, %c0_204, %c0_205] : memref<8x8x8xf32, #tpu.memory_space<vmem>>, vector<1x8x8xf32>
    %559 = vector.shape_cast %558 : vector<1x8x8xf32> to vector<8x8xf32>
    %560 = vector.shape_cast %556 : vector<8x8xf32> to vector<1x8x8xf32>
    tpu.vector_store %arg13[%557, %c0_204, %c0_205], %560 {strides = array<i32>} : memref<8x8x8xf32, #tpu.memory_space<vmem>>, vector<1x8x8xf32>,
    %c4_i32_206 = arith.constant 4 : i32
    %561 = arith.index_cast %c4_i32_206 : i32 to index
    %c0_207 = arith.constant 0 : index
    %c0_208 = arith.constant 0 : index
    %562 = vector.load %arg13[%561, %c0_207, %c0_208] : memref<8x8x8xf32, #tpu.memory_space<vmem>>, vector<1x8x8xf32>
    %563 = vector.shape_cast %562 : vector<1x8x8xf32> to vector<8x8xf32>
    %564 = arith.addf %554, %563 : vector<8x8xf32>
    %565 = vector.broadcast %519 : vector<1x8xf32> to vector<8x8xf32>
    %566 = arith.addf %564, %565 : vector<8x8xf32>
    %567 = arith.index_cast %c4_i32_206 : i32 to index
    %c0_209 = arith.constant 0 : index
    %c0_210 = arith.constant 0 : index
    %568 = vector.load %arg13[%567, %c0_209, %c0_210] : memref<8x8x8xf32, #tpu.memory_space<vmem>>, vector<1x8x8xf32>
    %569 = vector.shape_cast %568 : vector<1x8x8xf32> to vector<8x8xf32>
    %570 = vector.shape_cast %566 : vector<8x8xf32> to vector<1x8x8xf32>
    tpu.vector_store %arg13[%567, %c0_209, %c0_210], %570 {strides = array<i32>} : memref<8x8x8xf32, #tpu.memory_space<vmem>>, vector<1x8x8xf32>,
    %c5_i32_211 = arith.constant 5 : i32
    %571 = arith.index_cast %c5_i32_211 : i32 to index
    %c0_212 = arith.constant 0 : index
    %c0_213 = arith.constant 0 : index
    %572 = vector.load %arg13[%571, %c0_212, %c0_213] : memref<8x8x8xf32, #tpu.memory_space<vmem>>, vector<1x8x8xf32>
    %573 = vector.shape_cast %572 : vector<1x8x8xf32> to vector<8x8xf32>
    %574 = arith.addf %564, %573 : vector<8x8xf32>
    %575 = vector.broadcast %519 : vector<1x8xf32> to vector<8x8xf32>
    %576 = arith.addf %574, %575 : vector<8x8xf32>
    %577 = arith.index_cast %c5_i32_211 : i32 to index
    %c0_214 = arith.constant 0 : index
    %c0_215 = arith.constant 0 : index
    %578 = vector.load %arg13[%577, %c0_214, %c0_215] : memref<8x8x8xf32, #tpu.memory_space<vmem>>, vector<1x8x8xf32>
    %579 = vector.shape_cast %578 : vector<1x8x8xf32> to vector<8x8xf32>
    %580 = vector.shape_cast %576 : vector<8x8xf32> to vector<1x8x8xf32>
    tpu.vector_store %arg13[%577, %c0_214, %c0_215], %580 {strides = array<i32>} : memref<8x8x8xf32, #tpu.memory_space<vmem>>, vector<1x8x8xf32>,
    %c6_i32_216 = arith.constant 6 : i32
    %581 = arith.index_cast %c6_i32_216 : i32 to index
    %c0_217 = arith.constant 0 : index
    %c0_218 = arith.constant 0 : index
    %582 = vector.load %arg13[%581, %c0_217, %c0_218] : memref<8x8x8xf32, #tpu.memory_space<vmem>>, vector<1x8x8xf32>
    %583 = vector.shape_cast %582 : vector<1x8x8xf32> to vector<8x8xf32>
    %584 = arith.addf %574, %583 : vector<8x8xf32>
    %585 = vector.broadcast %519 : vector<1x8xf32> to vector<8x8xf32>
    %586 = arith.addf %584, %585 : vector<8x8xf32>
    %587 = arith.index_cast %c6_i32_216 : i32 to index
    %c0_219 = arith.constant 0 : index
    %c0_220 = arith.constant 0 : index
    %588 = vector.load %arg13[%587, %c0_219, %c0_220] : memref<8x8x8xf32, #tpu.memory_space<vmem>>, vector<1x8x8xf32>
    %589 = vector.shape_cast %588 : vector<1x8x8xf32> to vector<8x8xf32>
    %590 = vector.shape_cast %586 : vector<8x8xf32> to vector<1x8x8xf32>
    tpu.vector_store %arg13[%587, %c0_219, %c0_220], %590 {strides = array<i32>} : memref<8x8x8xf32, #tpu.memory_space<vmem>>, vector<1x8x8xf32>,
    %c7_i32_221 = arith.constant 7 : i32
    %591 = arith.index_cast %c7_i32_221 : i32 to index
    %c0_222 = arith.constant 0 : index
    %c0_223 = arith.constant 0 : index
    %592 = vector.load %arg13[%591, %c0_222, %c0_223] : memref<8x8x8xf32, #tpu.memory_space<vmem>>, vector<1x8x8xf32>
    %593 = vector.shape_cast %592 : vector<1x8x8xf32> to vector<8x8xf32>
    %594 = arith.addf %584, %593 : vector<8x8xf32>
    %595 = vector.broadcast %519 : vector<1x8xf32> to vector<8x8xf32>
    %596 = arith.addf %594, %595 : vector<8x8xf32>
    %597 = arith.index_cast %c7_i32_221 : i32 to index
    %c0_224 = arith.constant 0 : index
    %c0_225 = arith.constant 0 : index
    %598 = vector.load %arg13[%597, %c0_224, %c0_225] : memref<8x8x8xf32, #tpu.memory_space<vmem>>, vector<1x8x8xf32>
    %599 = vector.shape_cast %598 : vector<1x8x8xf32> to vector<8x8xf32>
    %600 = vector.shape_cast %596 : vector<8x8xf32> to vector<1x8x8xf32>
    tpu.vector_store %arg13[%597, %c0_224, %c0_225], %600 {strides = array<i32>} : memref<8x8x8xf32, #tpu.memory_space<vmem>>, vector<1x8x8xf32>,
    %c8_i32_226 = arith.constant 8 : i32
    return
  }
  func.func @transform_0(%arg0: i32) -> (i32, i32, i32) {
    %c0_i32 = arith.constant 0 : i32
    %c0_i32_0 = arith.constant 0 : i32
    %c0_i32_1 = arith.constant 0 : i32
    return %c0_i32, %arg0, %c0_i32_0 : i32, i32, i32
  }
  func.func @transform_1(%arg0: i32) -> (i32, i32) {
    %c0_i32 = arith.constant 0 : i32
    %c0_i32_0 = arith.constant 0 : i32
    %c0_i32_1 = arith.constant 0 : i32
    return %c0_i32, %c0_i32_0 : i32, i32
  }
  func.func @transform_2(%arg0: i32) -> i32 {
    %c0_i32 = arith.constant 0 : i32
    %c0_i32_0 = arith.constant 0 : i32
    return %c0_i32 : i32
  }
  func.func @transform_3(%arg0: i32) -> i32 {
    %c0_i32 = arith.constant 0 : i32
    %c0_i32_0 = arith.constant 0 : i32
    return %c0_i32 : i32
  }
  func.func @transform_4(%arg0: i32) -> (i32, i32) {
    %c0_i32 = arith.constant 0 : i32
    %c0_i32_0 = arith.constant 0 : i32
    %c0_i32_1 = arith.constant 0 : i32
    return %c0_i32, %c0_i32_0 : i32, i32
  }
  func.func @transform_5(%arg0: i32) -> (i32, i32) {
    %c0_i32 = arith.constant 0 : i32
    %c0_i32_0 = arith.constant 0 : i32
    %c0_i32_1 = arith.constant 0 : i32
    return %c0_i32, %c0_i32_0 : i32, i32
  }
  func.func @transform_6(%arg0: i32) -> (i32, i32) {
    %c0_i32 = arith.constant 0 : i32
    %c0_i32_0 = arith.constant 0 : i32
    %c0_i32_1 = arith.constant 0 : i32
    return %c0_i32, %c0_i32_0 : i32, i32
  }
  func.func @transform_7(%arg0: i32) -> (i32, i32) {
    %c0_i32 = arith.constant 0 : i32
    %c0_i32_0 = arith.constant 0 : i32
    %c0_i32_1 = arith.constant 0 : i32
    return %c0_i32, %c0_i32_0 : i32, i32
  }
  func.func @transform_8(%arg0: i32) -> i32 {
    %c0_i32 = arith.constant 0 : i32
    %c0_i32_0 = arith.constant 0 : i32
    return %c0_i32 : i32
  }
  func.func @transform_9(%arg0: i32) -> i32 {
    %c0_i32 = arith.constant 0 : i32
    %c0_i32_0 = arith.constant 0 : i32
    return %c0_i32 : i32
  }
  func.func @transform_10(%arg0: i32) -> (i32, i32) {
    %c0_i32 = arith.constant 0 : i32
    %c0_i32_0 = arith.constant 0 : i32
    %c0_i32_1 = arith.constant 0 : i32
    return %c0_i32, %c0_i32_0 : i32, i32
  }
  func.func @transform_11(%arg0: i32) -> (i32, i32) {
    %c0_i32 = arith.constant 0 : i32
    %c0_i32_0 = arith.constant 0 : i32
    %c0_i32_1 = arith.constant 0 : i32
    return %c0_i32, %c0_i32_0 : i32, i32
  }
  func.func @transform_12(%arg0: i32) -> (i32, i32, i32) {
    %c0_i32 = arith.constant 0 : i32
    %c0_i32_0 = arith.constant 0 : i32
    %c0_i32_1 = arith.constant 0 : i32
    return %c0_i32, %arg0, %c0_i32_0 : i32, i32, i32
  }
}

</mosaic_0001>

<bundles_post_ra>
// kernel: tpu_custom_call.1
= control target key start
LH: loop header
LB: loop body
LE: loop exit
PB: predicated region body
PF: predicated region fallthrough
CT: control target
= control target key end

     0   :  { %21 = vsyncpa [#allocation11], 0  ;;  %s3104_s0 = inlined_call_operand.vmem [shape: f32[8,8,32], index: 0, kind: input, shape index: {}]   ;;  %s3105_s1 = inlined_call_operand.vmem [shape: f32[32,3], index: 1, kind: input, shape index: {}]   ;;  %s3106_s2 = inlined_call_operand.<no memory space> [shape: f32[1], index: 2, kind: input, shape index: {}]   ;;  %s3107_s3 = inlined_call_operand.<no memory space> [shape: f32[1], index: 3, kind: input, shape index: {}]   ;;  %s3108_s4 = inlined_call_operand.hbm [shape: f32[32,130], index: 4, kind: input, shape index: {}]   ;;  %s3109_s5 = inlined_call_operand.vmem [shape: f32[32,128], index: 5, kind: input, shape index: {}]   ;;  %s3110_s6 = inlined_call_operand.vmem [shape: f32[1,128], index: 6, kind: input, shape index: {}]   ;;  %s3111_s7 = inlined_call_operand.vmem [shape: f32[32,1], index: 7, kind: input, shape index: {}]   ;;  %s3112_s8 = inlined_call_operand.<no memory space> [shape: f32[1], index: 8, kind: input, shape index: {}]   ;;  %s3113_s9 = inlined_call_operand.<no memory space> [shape: f32[1], index: 9, kind: input, shape index: {}]   ;;  %s3114_s10 = inlined_call_operand.vmem [shape: f32[32,8], index: 10, kind: input, shape index: {}]   ;;  %s3115_s11 = inlined_call_operand.vmem [shape: f32[1,8], index: 11, kind: input, shape index: {}]   ;;  %s3116_s12 = inlined_call_operand.hbm [shape: f32[8,8,8], index: 12, kind: output, shape index: {}]  }
   0x1   :  { %22 = vsyncpa [#allocation12], 0  ;;  %s35_s23 = sshll.u32 %s3108_s4, 4  ;;  %s2286_s24 = smov [#allocation10]   ;;  %s36_s23 = int_to_ptr.hbm [resolvable:$true] %s35_s23 }
   0x2   :  { %s37_s25 = sshll.u32 %s2286_s24, 4  ;;  %s2287_s26 = smov 256   ;;  %s38_s25 = int_to_ptr.vmem [resolvable:$true] %s37_s25 }
   0x3   :  { %s2288_s27 = smov 16  }
   0x4   :  { %43 = dma.hbm_to_vmem [thread:$0]  %s36_s23, 1024, %s38_s25, [#allocation11], %s2287_s26, %s2287_s26, %s2288_s27  }
   0x5   :  { %2282 = dma.done.wait [#allocation11], 1024  }
   0x6   :  { %2283 = vsyncadd [#allocation11], 4294966272  ;;  %v73_v0 = vld [vmem:[%s3105_s1 + $0x18] sm:$0xff]  ;;  %v72_v1 = vld [vmem:[%s3105_s1 + $0x10] sm:$0xff]  ;;  %vm74_vm0 = vcmask 261120   ;;  %v2432_v12 = vstv %s3106_s2  ;;  %s2289_s2 = smov 2  }
   0x7   :  { %111 = vmatpush.msra.mxu0 %v73_v0  ;;  %2019 = vmatpush.msra.mxu2 %v73_v0  ;;  %v71_v2 = vld [vmem:[%s3105_s1 + $0x8] sm:$0xff]  ;;  %v70_v3 = vld [vmem:[%s3105_s1] sm:$0xff]  ;;  %v64_v8 = vld [vmem:[%s3104_s0 + $0x10] sm:$0xff]  ;;  %s2290_s15 = smov 127   ;;  %s2293_s25 = smov 64  }
   0x8   :  { %v2382_v4 = vld [vmem:[%s3104_s0] sm:$0xff]  ;;  %v2396_v6 = vld [vmem:[%s3104_s0 + $0x8] sm:$0xff]  ;;  %v2413_v9 = vld [vmem:[%s3104_s0 + $0x30] sm:$0xff]  ;;  %s1927_s26 = sshll.u32 %s3116_s12, 4  ;;  %s2297_s27 = smov 128   ;;  %s1928_s26 = int_to_ptr.hbm [resolvable:$true] %s1927_s26 }
   0x9   :  { %112 = vmatpush.msra.mxu0 %v72_v1  ;;  %2020 = vmatpush.msra.mxu2 %v72_v1  ;;  %v2387_v5 = vld [vmem:[%s3104_s0 + $0x20] sm:$0xff]  ;;  %v2401_v7 = vld [vmem:[%s3104_s0 + $0x28] sm:$0xff]  ;;  %v65_v10 = vld [vmem:[%s3104_s0 + $0x18] sm:$0xff]  ;;  %s2298_s28 = smov 8  }
   0xa   :  { %v2424_v11 = vld [vmem:[%s3104_s0 + $0x38] sm:$0xff] }
   0xb   :  { %113 = vmatpush.msra.mxu0 %v71_v2  ;;  %2021 = vmatpush.msra.mxu2 %v71_v2 }
   0xd   :  { %114 = vmatpush.msra.mxu0 %v70_v3  ;;  %2022 = vmatpush.msra.mxu2 %v70_v3 }
   0xe   :  { %1940 = vmatmul.msk.f32.vlgmr.msra.gmra.mxu0 %vm74_vm0, %v2382_v4  ;;  %1944 = vmatmul.msk.f32.vlgmr.msra.gmra.mxu2 %vm74_vm0, %v2387_v5 }
  0x16   :  { %1941 = vmatmul.msk.f32.gmra.mxu0 %vm74_vm0, %v2396_v6  ;;  %1945 = vmatmul.msk.f32.gmra.mxu2 %vm74_vm0, %v2401_v7 }
  0x1e   :  { %1942 = vmatmul.msk.f32.gmra.mxu0 %vm74_vm0, %v64_v8  ;;  %1946 = vmatmul.msk.f32.gmra.mxu2 %vm74_vm0, %v2413_v9 }
  0x26   :  { %1943 = vmatmul.msk.f32.gmra.mxu0 %vm74_vm0, %v65_v10  ;;  %1947 = vmatmul.msk.f32.gmra.mxu2 %vm74_vm0, %v2424_v11 }
  0x8b   :  { %v2434_v13 = vpop.f32.mrf.mxu0 }
  0x8c   :  { %v142_v14 = vadd.f32 %v2432_v12, %v2434_v13 }
  0x8e   :  { %v1948_v15 = vmul.f32 -1.442695, %v142_v14 }
  0x90   :  { %2048 = vpow2.f32 %v1948_v15 }
  0x91   :  { %v2438_v16 = vpop.f32.mrf.mxu2 }
  0x92   :  { %v146_v17 = vadd.f32 %v2432_v12, %v2438_v16 }
  0x93   :  { %v2442_v18 = vpop.f32.mrf.mxu0 }
  0x94   :  { %v1952_v19 = vmul.f32 -1.442695, %v146_v17  ;;  %v143_v20 = vadd.f32 %v2432_v12, %v2442_v18 }
  0x96   :  { %v2049_v21 = vpop.eup %2048  ;;  %2050 = vpow2.f32 %v1952_v19  ;;  %v1949_v22 = vmul.f32 -1.442695, %v143_v20 }
  0x97   :  { %v174_v23 = vadd.f32 1.0, %v2049_v21 }
  0x98   :  { %2052 = vpow2.f32 %v1949_v22 }
  0x99   :  { %2054 = vrcp.f32 %v174_v23  ;;  %v2446_v24 = vpop.f32.mrf.mxu2  ;;  %v191_v40 = vand.u32 2147483647, %v174_v23  ;;  %v193_v41 = vand.u32 2147483648, %v174_v23  ;;  %vm187_vm2 = vweird.f32 %v174_v23 }
  0x9a   :  { %v147_v25 = vadd.f32 %v2432_v12, %v2446_v24 }
  0x9b   :  { %v2450_v26 = vpop.f32.mrf.mxu0  ;;  %vm192_vm4 = vcmp.eq.f32.partialorder %v191_v40, 8.507059e+37  ;;  %v194_v54 = vor.u32 1.1754944e-38, %v193_v41 }
  0x9c   :  { %v2051_v27 = vpop.eup %2050  ;;  %v1953_v28 = vmul.f32 -1.442695, %v147_v25  ;;  %v144_v29 = vadd.f32 %v2432_v12, %v2450_v26 }
  0x9d   :  { %v178_v30 = vadd.f32 1.0, %v2051_v27 }
  0x9e   :  { %v2053_v31 = vpop.eup %2052  ;;  %2056 = vpow2.f32 %v1953_v28  ;;  %v1950_v32 = vmul.f32 -1.442695, %v144_v29 }
  0x9f   :  { %v2055_v33 = vpop.eup %2054  ;;  %2058 = vrcp.f32 %v178_v30  ;;  %v2454_v34 = vadd.f32 1.0, %v2053_v31  ;;  %v251_v60 = vand.u32 2147483647, %v178_v30  ;;  %v253_v61 = vand.u32 2147483648, %v178_v30 }
  0xa0   :  { %2060 = vpow2.f32 %v1950_v32  ;;  %v183_v35 = vmul.f32 %v2055_v33, %v174_v23  ;;  %vm188_vm1 = vweird.f32 %v2055_v33  ;;  %vm247_vm6 = vweird.f32 %v178_v30 }
  0xa1   :  { %2062 = vrcp.f32 %v2454_v34  ;;  %v2457_v36 = vpop.f32.mrf.mxu2  ;;  %vm189_vm3 = vmor %vm187_vm2, %vm188_vm1  ;;  %v206_v1 = vand.u32 2147483647, %v2454_v34  ;;  %v208_v2 = vand.u32 2147483648, %v2454_v34  ;;  %vm252_vm9 = vcmp.eq.f32.partialorder %v251_v60, 8.507059e+37 }
  0xa2   :  { %v148_v37 = vadd.f32 %v2432_v12, %v2457_v36  ;;  %v184_v38 = vsub.f32 1.0, %v183_v35  ;;  %vm202_vm10 = vweird.f32 %v2454_v34 }
  0xa3   :  { %v2461_v39 = vpop.f32.mrf.mxu0  ;;  %v209_v28 = vor.u32 1.1754944e-38, %v208_v2  ;;  %vm207_vm12 = vcmp.eq.f32.partialorder %v206_v1, 8.507059e+37 }
  0xa4   :  { %v2057_v42 = vpop.eup %2056  ;;  %v1954_v43 = vmul.f32 -1.442695, %v148_v37  ;;  %v145_v44 = vadd.f32 %v2432_v12, %v2461_v39  ;;  %v185_v45 = vmul.f32 %v2055_v33, %v184_v38 }
  0xa5   :  { %v2059_v46 = vpop.eup %2058  ;;  %v2465_v47 = vadd.f32 1.0, %v2057_v42 }
  0xa6   :  { %v2061_v48 = vpop.eup %2060  ;;  %2064 = vpow2.f32 %v1954_v43  ;;  %v1951_v49 = vmul.f32 -1.442695, %v145_v44  ;;  %v186_v50 = vadd.f32 %v2055_v33, %v185_v45  ;;  %v243_v51 = vmul.f32 %v2059_v46, %v178_v30 }
  0xa7   :  { %v2063_v52 = vpop.eup %2062  ;;  %2066 = vrcp.f32 %v2465_v47  ;;  %v2468_v53 = vadd.f32 1.0, %v2061_v48  ;;  %vm248_vm5 = vweird.f32 %v2059_v46  ;;  %vm262_vm14 = vweird.f32 %v2465_v47 }
  0xa8   :  { %2068 = vpow2.f32 %v1951_v49  ;;  %v190_v55 = vsel %vm189_vm3, %v2055_v33, %v186_v50  ;;  %v244_v56 = vsub.f32 1.0, %v243_v51  ;;  %v198_v57 = vmul.f32 %v2063_v52, %v2454_v34  ;;  %vm249_vm8 = vmor %vm247_vm6, %vm248_vm5 }
  0xa9   :  { %2070 = vrcp.f32 %v2468_v53  ;;  %v2472_v58 = vpop.f32.mrf.mxu2  ;;  %v2474_v59 = vsel %vm192_vm4, %v194_v54, %v190_v55  ;;  %vm203_vm7 = vweird.f32 %v2063_v52  ;;  %v266_v33 = vand.u32 2147483647, %v2465_v47 }
  0xaa   :  { %v149_v62 = vadd.f32 %v2432_v12, %v2472_v58  ;;  %326 = vrot.lane.b32.xlu0 %v2474_v59, %s2289_s2  ;;  %v245_v63 = vmul.f32 %v2059_v46, %v244_v56  ;;  %v199_v0 = vsub.f32 1.0, %v198_v57  ;;  %v254_v12 = vor.u32 1.1754944e-38, %v253_v61  ;;  %vm204_vm11 = vmor %vm202_vm10, %vm203_vm7 }
  0xab   :  { %v268_v34 = vand.u32 2147483648, %v2465_v47  ;;  %v223_v38 = vand.u32 2147483648, %v2468_v53  ;;  %v221_v43 = vand.u32 2147483647, %v2468_v53  ;;  %vm267_vm2 = vcmp.eq.f32.partialorder %v266_v33, 8.507059e+37 }
  0xac   :  { %v2065_v3 = vpop.eup %2064  ;;  %v1955_v8 = vmul.f32 -1.442695, %v149_v62  ;;  %v246_v10 = vadd.f32 %v2059_v46, %v245_v63  ;;  %v200_v14 = vmul.f32 %v2063_v52, %v199_v0  ;;  %vm217_vm3 = vweird.f32 %v2468_v53 }
  0xad   :  { %v2067_v15 = vpop.eup %2066  ;;  %v2482_v17 = vadd.f32 1.0, %v2065_v3  ;;  %vm222_vm5 = vcmp.eq.f32.partialorder %v221_v43, 8.507059e+37  ;;  %vm302_vm6 = vcmask 7168  }
  0xae   :  { %v2069_v19 = vpop.eup %2068  ;;  %2072 = vpow2.f32 %v1955_v8  ;;  %v250_v20 = vsel %vm249_vm8, %v2059_v46, %v246_v10  ;;  %v201_v21 = vadd.f32 %v2063_v52, %v200_v14  ;;  %v258_v22 = vmul.f32 %v2067_v15, %v2465_v47 }
  0xaf   :  { %v2071_v23 = vpop.eup %2070  ;;  %2074 = vrcp.f32 %v2482_v17  ;;  %v2487_v25 = vadd.f32 1.0, %v2069_v19  ;;  %v2489_v27 = vsel %vm252_vm9, %v254_v12, %v250_v20  ;;  %vm263_vm13 = vweird.f32 %v2067_v15 }
  0xb0   :  { %334 = vrot.lane.b32.xlu2 %v2489_v27, %s2289_s2  ;;  %v205_v29 = vsel %vm204_vm11, %v2063_v52, %v201_v21  ;;  %v259_v30 = vsub.f32 1.0, %v258_v22  ;;  %v213_v31 = vmul.f32 %v2071_v23, %v2468_v53  ;;  %vm218_vm15 = vweird.f32 %v2071_v23  ;;  %vm264_vm1 = vmor %vm262_vm14, %vm263_vm13 }
  0xb1   :  { %2076 = vrcp.f32 %v2487_v25  ;;  %v210_v32 = vsel %vm207_vm12, %v209_v28, %v205_v29  ;;  %v269_v46 = vor.u32 1.1754944e-38, %v268_v34  ;;  %vm219_vm4 = vmor %vm217_vm3, %vm218_vm15  ;;  %v224_v52 = vor.u32 1.1754944e-38, %v223_v38 }
  0xb2   :  { %328 = vrot.lane.b32.xlu0 %v210_v32, %s2289_s2  ;;  %v260_v35 = vmul.f32 %v2067_v15, %v259_v30  ;;  %v214_v37 = vsub.f32 1.0, %v213_v31  ;;  %v281_v60 = vand.u32 2147483647, %v2482_v17  ;;  %v283_v53 = vand.u32 2147483648, %v2482_v17 }
  0xb3   :  { %v304_v63 = vsel %vm302_vm6, %v210_v32, 0.0  ;;  %vm277_vm8 = vweird.f32 %v2482_v17  ;;  %v238_v0 = vand.u32 2147483648, %v2487_v25  ;;  %v236_v3 = vand.u32 2147483647, %v2487_v25 }
  0xb4   :  { %v2073_v40 = vpop.eup %2072  ;;  %v261_v41 = vadd.f32 %v2067_v15, %v260_v35  ;;  %v215_v42 = vmul.f32 %v2071_v23, %v214_v37  ;;  %v303_v10 = vsel %vm302_vm6, %v2474_v59, 0.0  ;;  %vm282_vm11 = vcmp.eq.f32.partialorder %v281_v60, 8.507059e+37 }
  0xb5   :  { %v2075_v44 = vpop.eup %2074  ;;  %v2502_v45 = vadd.f32 1.0, %v2073_v40  ;;  %v284_v14 = vor.u32 1.1754944e-38, %v283_v53  ;;  %vm232_vm12 = vweird.f32 %v2487_v25  ;;  %v305_v20 = vadd.f32 %v304_v63, %v303_v10 }
  0xb6   :  { %v265_v48 = vsel %vm264_vm1, %v2067_v15, %v261_v41  ;;  %v216_v49 = vadd.f32 %v2071_v23, %v215_v42  ;;  %v273_v47 = vmul.f32 %v2075_v44, %v2482_v17  ;;  %vm278_vm7 = vweird.f32 %v2075_v44 }
  0xb7   :  { %v2077_v50 = vpop.eup %2076  ;;  %2078 = vrcp.f32 %v2502_v45  ;;  %v270_v51 = vsel %vm267_vm2, %v269_v46, %v265_v48  ;;  %vm279_vm10 = vmor %vm277_vm8, %vm278_vm7  ;;  %v239_v22 = vor.u32 1.1754944e-38, %v238_v0  ;;  %vm237_vm14 = vcmp.eq.f32.partialorder %v236_v3, 8.507059e+37 }
  0xb8   :  { %336 = vrot.lane.b32.xlu2 %v270_v51, %s2289_s2  ;;  %v220_v54 = vsel %vm219_vm4, %v2071_v23, %v216_v49  ;;  %v274_v55 = vsub.f32 1.0, %v273_v47  ;;  %v228_v56 = vmul.f32 %v2077_v50, %v2487_v25  ;;  %vm233_vm9 = vweird.f32 %v2077_v50 }
  0xb9   :  { %v225_v57 = vsel %vm222_vm5, %v224_v52, %v220_v54  ;;  %vm234_vm13 = vmor %vm232_vm12, %vm233_vm9  ;;  %v298_v30 = vand.u32 2147483648, %v2502_v45  ;;  %v296_v32 = vand.u32 2147483647, %v2502_v45  ;;  %v310_v34 = vsel %vm302_vm6, %v2489_v27, 0.0 }
  0xba   :  { %330 = vrot.lane.b32.xlu1 %v225_v57, %s2289_s2  ;;  %v275_v61 = vmul.f32 %v2075_v44, %v274_v55  ;;  %v229_v62 = vsub.f32 1.0, %v228_v56  ;;  %v306_v15 = vsel %vm302_vm6, %v225_v57, 0.0  ;;  %vm292_vm1 = vweird.f32 %v2502_v45 }
  0xbb   :  { %v307_v28 = vadd.f32 %v306_v15, %v305_v20  ;;  %v299_v38 = vor.u32 1.1754944e-38, %v298_v30  ;;  %v312_v40 = vsel %vm302_vm6, %v270_v51, 0.0  ;;  %vm297_vm3 = vcmp.eq.f32.partialorder %v296_v32, 8.507059e+37 }
  0xbc   :  { %v276_v1 = vadd.f32 %v2075_v44, %v275_v61  ;;  %v230_v2 = vmul.f32 %v2077_v50, %v229_v62  ;;  %vm358_vm4 = vcmask 23568   ;;  %v2556_v32 = vstv %s3107_s3 }
  0xbd   :  { %v2079_v8 = vpop.eup %2078 }
  0xbe   :  { %v280_v12 = vsel %vm279_vm10, %v2075_v44, %v276_v1  ;;  %v231_v17 = vadd.f32 %v2077_v50, %v230_v2  ;;  %v288_v19 = vmul.f32 %v2079_v8, %v2502_v45  ;;  %vm293_vm15 = vweird.f32 %v2079_v8 }
  0xbf   :  { %v285_v21 = vsel %vm282_vm11, %v284_v14, %v280_v12  ;;  %vm294_vm2 = vmor %vm292_vm1, %vm293_vm15 }
  0xc0   :  { %338 = vrot.lane.b32.xlu0 %v285_v21, %s2289_s2  ;;  %v235_v23 = vsel %vm234_vm13, %v2077_v50, %v231_v17  ;;  %v289_v59 = vsub.f32 1.0, %v288_v19  ;;  %v314_v44 = vsel %vm302_vm6, %v285_v21, 0.0 }
  0xc1   :  { %v240_v29 = vsel %vm237_vm14, %v239_v22, %v235_v23 }
  0xc2   :  { %332 = vrot.lane.b32.xlu1 %v240_v29, %s2289_s2  ;;  %v308_v25 = vsel %vm302_vm6, %v240_v29, 0.0  ;;  %v290_v31 = vmul.f32 %v2079_v8, %v289_v59 }
  0xc3   :  { %v309_v33 = vadd.f32 %v308_v25, %v307_v28  ;;  %v2291_v25 = vmov 1  }
  0xc4   :  { %v291_v35 = vadd.f32 %v2079_v8, %v290_v31  ;;  %2042 = vset.pattern.permute.xlu0 %v2291_v25  ;;  %2041 = vset.pattern.permute.xlu2 %v2291_v25 }
  0xc5   :  { %v311_v37 = vadd.f32 %v310_v34, %v309_v33  ;;  %2040 = vset.pattern.permute.xlu1 %v2291_v25 }
  0xc6   :  { %v295_v41 = vsel %vm294_vm2, %v2079_v8, %v291_v35 }
  0xc7   :  { %v300_v42 = vsel %vm297_vm3, %v299_v38, %v295_v41  ;;  %v313_v43 = vadd.f32 %v312_v40, %v311_v37 }
  0xc8   :  { %v316_v48 = vsel %vm302_vm6, %v300_v42, 0.0 }
  0xc9   :  { %v315_v46 = vadd.f32 %v314_v44, %v313_v43 }
  0xca   :  { %340 = vrot.lane.b32.xlu1 %v300_v42, %s2289_s2 }
  0xcb   :  { %v317_v27 = vadd.f32 %v316_v48, %v315_v46 }
  0xcd   :  { %2080 = vrcp.f32 %v317_v27 }
  0xd3   :  { %v2081_v49 = vpop.eup %2080 }
  0xd4   :  { %376 = vrot.lane.b32.xlu2 %v2081_v49, %s2289_s2 }
 0x10a   :  { %v335_v47 = vpop.permute.xlu2 %334 }
 0x10b   :  { %v354_v63 = vmul.f32 %v335_v47, %v2438_v16 }
 0x10d   :  { %v366_v14 = vsel %vm358_vm4, %v354_v63, 0.0 }
 0x112   :  { %v337_v53 = vpop.permute.xlu2 %336 }
 0x113   :  { %v355_v3 = vmul.f32 %v337_v53, %v2446_v24 }
 0x115   :  { %v368_v17 = vsel %vm358_vm4, %v355_v3, 0.0 }
 0x11c   :  { %v327_v45 = vpop.permute.xlu0 %326 }
 0x11d   :  { %v350_v54 = vmul.f32 %v327_v45, %v2434_v13 }
 0x11f   :  { %v359_v57 = vsel %vm358_vm4, %v350_v54, 0.0 }
 0x124   :  { %v329_v50 = vpop.permute.xlu0 %328 }
 0x125   :  { %v351_v52 = vmul.f32 %v329_v50, %v2442_v18 }
 0x127   :  { %v360_v56 = vsel %vm358_vm4, %v351_v52, 0.0 }
 0x128   :  { %v361_v61 = vadd.f32 %v360_v56, %v359_v57 }
 0x12c   :  { %v331_v51 = vpop.permute.xlu1 %330 }
 0x12d   :  { %v352_v55 = vmul.f32 %v331_v51, %v2450_v26 }
 0x12e   :  { %v377_v29 = vpop.permute.xlu2 %376 }
 0x12f   :  { %v362_v60 = vsel %vm358_vm4, %v352_v55, 0.0 }
 0x130   :  { %v363_v1 = vadd.f32 %v362_v60, %v361_v61 }
 0x132   :  { %v339_v2 = vpop.permute.xlu0 %338 }
 0x133   :  { %v356_v15 = vmul.f32 %v339_v2, %v2457_v36 }
 0x134   :  { %v333_v62 = vpop.permute.xlu1 %332 }
 0x135   :  { %v353_v0 = vmul.f32 %v333_v62, %v2461_v39  ;;  %v370_v21 = vsel %vm358_vm4, %v356_v15, 0.0 }
 0x137   :  { %v364_v8 = vsel %vm358_vm4, %v353_v0, 0.0 }
 0x138   :  { %v365_v10 = vadd.f32 %v364_v8, %v363_v1 }
 0x13a   :  { %v367_v12 = vadd.f32 %v366_v14, %v365_v10 }
 0x13c   :  { %v369_v19 = vadd.f32 %v368_v17, %v367_v12  ;;  %v341_v20 = vpop.permute.xlu1 %340 }
 0x13d   :  { %v357_v22 = vmul.f32 %v341_v20, %v2472_v58 }
 0x13e   :  { %v371_v23 = vadd.f32 %v370_v21, %v369_v19 }
 0x13f   :  { %v372_v59 = vsel %vm358_vm4, %v357_v22, 0.0 }
 0x140   :  { %v373_v28 = vadd.f32 %v372_v59, %v371_v23 }
 0x142   :  { %v379_v30 = vmul.f32 %v377_v29, %v373_v28 }
 0x144   :  { %381 = vrot.lane.b32.xlu0 %v379_v30, %s2290_s15 }
 0x1b6   :  { %v2551_v31 = vpop.permute.xlu0 %381 }
 0x1b7   :  { %v384_v33 = vadd.f32 %v2551_v31, %v2434_v13  ;;  %v388_v34 = vadd.f32 %v2551_v31, %v2438_v16  ;;  %v389_v35 = vadd.f32 %v2551_v31, %v2446_v24  ;;  %v390_v37 = vadd.f32 %v2551_v31, %v2457_v36 }
 0x1b8   :  { %v391_v38 = vadd.f32 %v2551_v31, %v2472_v58 }
 0x1b9   :  { %v394_v40 = vadd.f32 %v2556_v32, %v384_v33  ;;  %v400_v41 = vadd.f32 %v2556_v32, %v390_v37  ;;  %v399_v42 = vadd.f32 %v2556_v32, %v389_v35  ;;  %v398_v13 = vadd.f32 %v2556_v32, %v388_v34 }
 0x1ba   :  { %v401_v43 = vadd.f32 %v2556_v32, %v391_v38 }
 0x1bb   :  { %v1956_v16 = vmul.f32 -1.442695, %v394_v40  ;;  %v1962_v44 = vmul.f32 -1.442695, %v400_v41  ;;  %v1961_v46 = vmul.f32 -1.442695, %v399_v42 }
 0x1bc   :  { %v1960_v24 = vmul.f32 -1.442695, %v398_v13  ;;  %v1963_v48 = vmul.f32 -1.442695, %v401_v43 }
 0x1bd   :  { %2082 = vpow2.f32 %v1956_v16 }
 0x1be   :  { %2084 = vpow2.f32 %v1962_v44 }
 0x1bf   :  { %2086 = vpow2.f32 %v1961_v46 }
 0x1c0   :  { %2088 = vpow2.f32 %v1960_v24 }
 0x1c1   :  { %2090 = vpow2.f32 %v1963_v48 }
 0x1c3   :  { %v2083_v36 = vpop.eup %2082 }
 0x1c4   :  { %v2085_v58 = vpop.eup %2084  ;;  %v2573_v27 = vadd.f32 1.0, %v2083_v36 }
 0x1c5   :  { %v2087_v49 = vpop.eup %2086  ;;  %v432_v45 = vadd.f32 1.0, %v2085_v58 }
 0x1c6   :  { %v2089_v47 = vpop.eup %2088  ;;  %v431_v50 = vadd.f32 1.0, %v2087_v49  ;;  %2092 = vrcp.f32 %v2573_v27  ;;  %v445_v44 = vand.u32 2147483648, %v2573_v27  ;;  %vm439_vm4 = vweird.f32 %v2573_v27 }
 0x1c7   :  { %v2091_v51 = vpop.eup %2090  ;;  %2094 = vrcp.f32 %v432_v45  ;;  %v430_v52 = vadd.f32 1.0, %v2089_v47  ;;  %v533_v61 = vand.u32 2147483647, %v432_v45  ;;  %v535_v0 = vand.u32 2147483648, %v432_v45 }
 0x1c8   :  { %2096 = vrcp.f32 %v431_v50  ;;  %v2576_v54 = vadd.f32 1.0, %v2091_v51  ;;  %v520_v1 = vand.u32 2147483648, %v431_v50  ;;  %vm529_vm5 = vweird.f32 %v432_v45 }
 0x1c9   :  { %2098 = vrcp.f32 %v430_v52  ;;  %vm514_vm7 = vweird.f32 %v431_v50  ;;  %v518_v15 = vand.u32 2147483647, %v431_v50  ;;  %vm2583_vm9 = vcmp.eq.f32.partialorder %v533_v61, 8.507059e+37  ;;  %v603_v61 = vld [vmem:[#allocation10 + $0x8] sm:$0xff] }
 0x1ca   :  { %2100 = vrcp.f32 %v2576_v54  ;;  %v536_v22 = vor.u32 1.1754944e-38, %v535_v0  ;;  %v521_v23 = vor.u32 1.1754944e-38, %v520_v1  ;;  %v505_v29 = vand.u32 2147483648, %v430_v52  ;;  %v2611_v0 = vld [vmem:[%s3109_s5 + $0x10] sm:$0xff] }
 0x1cb   :  { %v503_v35 = vand.u32 2147483647, %v430_v52  ;;  %vm519_vm14 = vcmp.eq.f32.partialorder %v518_v15, 8.507059e+37  ;;  %vm499_vm15 = vweird.f32 %v430_v52  ;;  %v443_v24 = vand.u32 2147483647, %v2573_v27 }
 0x1cc   :  { %v2578_v55 = vpop.eup %2092  ;;  %v506_v13 = vor.u32 1.1754944e-38, %v505_v29  ;;  %v550_v36 = vand.u32 2147483648, %v2576_v54  ;;  %v548_v49 = vand.u32 2147483647, %v2576_v54 }
 0x1cd   :  { %v2095_v56 = vpop.eup %2094  ;;  %v435_v57 = vmul.f32 %v2578_v55, %v2573_v27  ;;  %vm440_vm2 = vweird.f32 %v2578_v55  ;;  %vm504_vm3 = vcmp.eq.f32.partialorder %v503_v35, 8.507059e+37 }
 0x1ce   :  { %v2097_v60 = vpop.eup %2096  ;;  %v525_v53 = vmul.f32 %v2095_v56, %v432_v45  ;;  %vm530_vm8 = vweird.f32 %v2095_v56  ;;  %v446_v45 = vor.u32 1.1754944e-38, %v445_v44  ;;  %v551_v51 = vor.u32 1.1754944e-38, %v550_v36 }
 0x1cf   :  { %v510_v62 = vmul.f32 %v2097_v60, %v431_v50  ;;  %v2099_v2 = vpop.eup %2098  ;;  %v436_v8 = vsub.f32 1.0, %v435_v57  ;;  %vm515_vm10 = vweird.f32 %v2097_v60  ;;  %vm531_vm11 = vmor %vm529_vm5, %vm530_vm8  ;;  %vm544_vm8 = vweird.f32 %v2576_v54  ;;  %v606_v57 = vld [vmem:[#allocation10 + $0x20] sm:$0xff] }
 0x1d0   :  { %v526_v63 = vsub.f32 1.0, %v525_v53  ;;  %v2101_v10 = vpop.eup %2100  ;;  %v495_v12 = vmul.f32 %v2099_v2, %v430_v52  ;;  %vm516_vm12 = vmor %vm514_vm7, %vm515_vm10  ;;  %vm500_vm13 = vweird.f32 %v2099_v2  ;;  %vm444_vm10 = vcmp.eq.f32.partialorder %v443_v24, 8.507059e+37  ;;  %v608_v52 = vld [vmem:[#allocation10 + $0x30] sm:$0xff]  ;;  %v605_v53 = vld [vmem:[#allocation10 + $0x18] sm:$0xff] }
 0x1d1   :  { %v511_v3 = vsub.f32 1.0, %v510_v62  ;;  %v540_v20 = vmul.f32 %v2101_v10, %v2576_v54  ;;  %v437_v25 = vmul.f32 %v2578_v55, %v436_v8  ;;  %vm501_vm1 = vmor %vm499_vm15, %vm500_vm13  ;;  %vm545_vm5 = vweird.f32 %v2101_v10  ;;  %646 = vmatpush.msra.mxu1 %v608_v52  ;;  %2023 = vmatpush.msra.mxu3 %v608_v52  ;;  %v602_v54 = vld [vmem:[#allocation10] sm:$0xff]  ;;  %v2605_v62 = vld [vmem:[%s3109_s5 + $0x18] sm:$0xff] }
 0x1d2   :  { %v527_v14 = vmul.f32 %v2095_v56, %v526_v63  ;;  %v496_v59 = vsub.f32 1.0, %v495_v12  ;;  %vm441_vm7 = vmor %vm439_vm4, %vm440_vm2  ;;  %v2626_v8 = vld [vmem:[%s3109_s5] sm:$0xff] }
 0x1d3   :  { %v512_v19 = vmul.f32 %v2097_v60, %v511_v3  ;;  %v541_v30 = vsub.f32 1.0, %v540_v20  ;;  %v438_v43 = vadd.f32 %v2578_v55, %v437_v25  ;;  %647 = vmatpush.msra.mxu1 %v606_v57  ;;  %2024 = vmatpush.msra.mxu3 %v606_v57  ;;  %v2620_v3 = vld [vmem:[%s3109_s5 + $0x8] sm:$0xff] }
 0x1d4   :  { %v528_v21 = vadd.f32 %v2095_v56, %v527_v14  ;;  %v497_v34 = vmul.f32 %v2099_v2, %v496_v59 }
 0x1d5   :  { %v513_v28 = vadd.f32 %v2097_v60, %v512_v19  ;;  %v542_v42 = vmul.f32 %v2101_v10, %v541_v30  ;;  %v442_v58 = vsel %vm441_vm7, %v2578_v55, %v438_v43  ;;  %v607_v55 = vld [vmem:[#allocation10 + $0x28] sm:$0xff] }
 0x1d6   :  { %v532_v33 = vsel %vm531_vm11, %v2095_v56, %v528_v21  ;;  %v498_v41 = vadd.f32 %v2099_v2, %v497_v34  ;;  %v447_v50 = vsel %vm444_vm10, %v446_v45, %v442_v58  ;;  %vm549_vm11 = vcmp.eq.f32.partialorder %v548_v49, 8.507059e+37  ;;  %v609_v56 = vld [vmem:[#allocation10 + $0x38] sm:$0xff] }
 0x1d7   :  { %v537_v37 = vsel %vm2583_vm9, %v536_v22, %v532_v33  ;;  %v517_v38 = vsel %vm516_vm12, %v2097_v60, %v513_v28  ;;  %v543_v48 = vadd.f32 %v2101_v10, %v542_v42  ;;  %vm546_vm9 = vmor %vm544_vm8, %vm545_vm5  ;;  %687 = vmatpush.msrb.mxu2 %v609_v56  ;;  %v604_v60 = vld [vmem:[#allocation10 + $0x10] sm:$0xff]  ;;  %v385_v34 = vadd.f32 %v2551_v31, %v2442_v18 }
 0x1d8   :  { %586 = vperm.xlu0 %2042, %v537_v37   ;;  %v522_v40 = vsel %vm519_vm14, %v521_v23, %v517_v38  ;;  %v502_v16 = vsel %vm501_vm1, %v2099_v2, %v498_v41  ;;  %648 = vmatpush.msra.mxu1 %v604_v60  ;;  %v2676_v23 = vld [vmem:[%s3110_s6] ss:$0 sm:$0xff]  ;;  %s2294_s6 = smov 32  }
 0x1d9   :  { %581 = vperm.xlu2 %2041, %v522_v40   ;;  %v507_v46 = vsel %vm504_vm3, %v506_v13, %v502_v16  ;;  %v547_v47 = vsel %vm546_vm9, %v2101_v10, %v543_v48  ;;  %688 = vmatpush.msrb.mxu2 %v607_v55  ;;  %v395_v35 = vadd.f32 %v2556_v32, %v385_v34 }
 0x1da   :  { %576 = vperm.xlu1 %2040, %v507_v46   ;;  %v552_v27 = vsel %vm549_vm11, %v551_v51, %v547_v47  ;;  %2025 = vmatpush.msra.mxu3 %v604_v60 }
 0x1db   :  { %689 = vmatpush.msrb.mxu2 %v605_v53  ;;  %649 = vmatpush.msra.mxu1 %v602_v54  ;;  %v1957_v38 = vmul.f32 -1.442695, %v395_v35 }
 0x1dc   :  { %2026 = vmatpush.msra.mxu3 %v602_v54 }
 0x1dd   :  { %690 = vmatpush.msrb.mxu2 %v603_v61 }
 0x1de   :  { %794 = vmatpush.msrb.mxu3 %v2605_v62 }
 0x1e0   :  { %795 = vmatpush.msrb.mxu3 %v2611_v0 }
 0x1e1   :  { %556 = vperm.xlu2 %2041, %v447_v50  }
 0x1e2   :  { %591 = vperm.xlu1 %2040, %v552_v27   ;;  %796 = vmatpush.msrb.mxu3 %v2620_v3 }
 0x1e4   :  { %797 = vmatpush.msrb.mxu3 %v2626_v8 }
 0x233   :  { %v582_v63 = vpop.permute.xlu2 %581 }
 0x234   :  { %v2638_v14 = vmul.f32 %v582_v63, %v2401_v7  ;;  %v2292_v7 = vmov 0.0  }
 0x23b   :  { %v557_v1 = vpop.permute.xlu2 %556 }
 0x23c   :  { %v594_v2 = vmul.f32 %v557_v1, %v2382_v4 }
 0x23e   :  { %1964 = vmatmul.msk.f32.vlgmr.msra.gmra.mxu1 %vm74_vm0, %v594_v2  ;;  %1972 = vmatmul.msk.f32.vlgmr.msrb.gmra.mxu2 %vm74_vm0, %v594_v2 }
 0x24a   :  { %v587_v15 = vpop.permute.xlu0 %586 }
 0x24c   :  { %v577_v10 = vpop.permute.xlu1 %576 }
 0x24d   :  { %v2630_v4 = vmul.f32 %v577_v10, %v2387_v5  ;;  %v2644_v5 = vmul.f32 %v587_v15, %v2413_v9 }
 0x24f   :  { %1968 = vmatmul.msk.f32.vlgmr.msra.gmra.mxu3 %vm74_vm0, %v2630_v4 }
 0x250   :  { %872 = vmatpush.msra.mxu3 %v2605_v62 }
 0x252   :  { %873 = vmatpush.msra.mxu3 %v2611_v0 }
 0x254   :  { %874 = vmatpush.msra.mxu3 %v2620_v3  ;;  %v592_v12 = vpop.permute.xlu1 %591 }
 0x255   :  { %v2649_v17 = vmul.f32 %v592_v12, %v2424_v11 }
 0x256   :  { %875 = vmatpush.msra.mxu3 %v2626_v8 }
 0x257   :  { %1969 = vmatmul.msk.f32.gmra.mxu3 %vm74_vm0, %v2638_v14 }
 0x25f   :  { %1970 = vmatmul.msk.f32.gmra.mxu3 %vm74_vm0, %v2644_v5 }
 0x267   :  { %1971 = vmatmul.msk.f32.gmra.mxu3 %vm74_vm0, %v2649_v17 }
 0x26f   :  { %798 = vmatmul.f32.vlgmr.msrb.gmra.mxu3 %v2292_v7 }
 0x270   :  { %950 = vmatpush.msrb.mxu3 %v2605_v62 }
 0x272   :  { %951 = vmatpush.msrb.mxu3 %v2611_v0 }
 0x274   :  { %952 = vmatpush.msrb.mxu3 %v2620_v3 }
 0x276   :  { %953 = vmatpush.msrb.mxu3 %v2626_v8 }
 0x2bb   :  { %v2678_v59 = vpop.f32.mrf.mxu1 }
 0x2c1   :  { %v2657_v9 = vpop.f32.mrf.mxu2 }
 0x2c2   :  { %724 = vst.msk [vmem:[#allocation4] sm:$0xff] %vm302_vm6, %v2657_v9 }
 0x2c9   :  { %v2661_v11 = vld [vmem:[#allocation4] sm:$0xff] }
 0x2ca   :  { %851 = vst.msk [vmem:[#allocation4] sm:$0xff] %vm302_vm6, %v2661_v11 }
 0x2d2   :  { %v2665_v19 = vpop.f32.mrf.mxu3 }
 0x2da   :  { %v2667_v20 = vpop.f32.mrf.mxu3 }
 0x2e2   :  { %v2669_v21 = vpop.f32.mrf.mxu3 }
 0x2ea   :  { %v2671_v22 = vpop.f32.mrf.mxu3 }
 0x2f2   :  { %v799_v28 = vpop.f32.mrf.mxu3 }
 0x2f3   :  { %v802_v29 = vadd.f32 %v799_v28, %v2678_v59 }
 0x2f5   :  { %v806_v30 = vadd.f32 %v2676_v23, %v802_v29 }
 0x2f7   :  { %2102 = vtanh.f32 %v806_v30  ;;  %v1980_v33 = vmul.f32 -1.442695, %v806_v30  ;;  %v1411_v30 = vld [vmem:[%s3111_s7 + $0x10] sm:$0xff] }
 0x2f9   :  { %2104 = vpow2.f32 %v1980_v33 }
 0x2fa   :  { %2106 = vpow2.f32 %v1957_v38 }
 0x2fd   :  { %v2103_v25 = vpop.eup %2102 }
 0x2fe   :  { %829 = vrot.lane.b32.xlu1 %v2103_v25, %s2293_s25  ;;  %v1410_v25 = vld [vmem:[%s3111_s7 + $0x8] sm:$0xff] }
 0x2ff   :  { %v2105_v37 = vpop.eup %2104 }
 0x300   :  { %v810_v40 = vadd.f32 1.0, %v2105_v37  ;;  %v2107_v41 = vpop.eup %2106 }
 0x301   :  { %v427_v13 = vadd.f32 1.0, %v2107_v41 }
 0x302   :  { %2108 = vrcp.f32 %v810_v40  ;;  %v822_v18 = vand.u32 2147483648, %v810_v40  ;;  %vm816_vm13 = vweird.f32 %v810_v40  ;;  %v820_v36 = vand.u32 2147483647, %v810_v40 }
 0x303   :  { %2110 = vrcp.f32 %v427_v13  ;;  %v460_v56 = vand.u32 2147483648, %v427_v13  ;;  %vm454_vm2 = vweird.f32 %v427_v13  ;;  %v458_v57 = vand.u32 2147483647, %v427_v13 }
 0x304   :  { %v823_v45 = vor.u32 1.1754944e-38, %v822_v18  ;;  %vm821_vm15 = vcmp.eq.f32.partialorder %v820_v36, 8.507059e+37 }
 0x305   :  { %v461_v60 = vor.u32 1.1754944e-38, %v460_v56  ;;  %vm459_vm4 = vcmp.eq.f32.partialorder %v458_v57, 8.507059e+37 }
 0x308   :  { %v2109_v42 = vpop.eup %2108 }
 0x309   :  { %v812_v43 = vmul.f32 %v2109_v42, %v810_v40  ;;  %v2111_v44 = vpop.eup %2110  ;;  %vm817_vm12 = vweird.f32 %v2109_v42 }
 0x30a   :  { %v450_v24 = vmul.f32 %v2111_v44, %v427_v13  ;;  %vm818_vm14 = vmor %vm816_vm13, %vm817_vm12  ;;  %vm455_vm1 = vweird.f32 %v2111_v44 }
 0x30b   :  { %v813_v16 = vsub.f32 1.0, %v812_v43  ;;  %vm456_vm3 = vmor %vm454_vm2, %vm455_vm1  ;;  %v386_v43 = vadd.f32 %v2551_v31, %v2450_v26 }
 0x30c   :  { %v451_v58 = vsub.f32 1.0, %v450_v24 }
 0x30d   :  { %v814_v46 = vmul.f32 %v2109_v42, %v813_v16  ;;  %v396_v16 = vadd.f32 %v2556_v32, %v386_v43 }
 0x30e   :  { %v452_v47 = vmul.f32 %v2111_v44, %v451_v58 }
 0x30f   :  { %v815_v48 = vadd.f32 %v2109_v42, %v814_v46  ;;  %v1958_v46 = vmul.f32 -1.442695, %v396_v16 }
 0x310   :  { %v453_v52 = vadd.f32 %v2111_v44, %v452_v47 }
 0x311   :  { %v819_v49 = vsel %vm818_vm14, %v2109_v42, %v815_v48 }
 0x312   :  { %v824_v51 = vsel %vm821_vm15, %v823_v45, %v819_v49  ;;  %v457_v55 = vsel %vm456_vm3, %v2111_v44, %v453_v52 }
 0x313   :  { %v462_v53 = vsel %vm459_vm4, %v461_v60, %v457_v55  ;;  %v827_v54 = vmul.f32 0.0, %v824_v51 }
 0x370   :  { %v830_v50 = vpop.permute.xlu1 %829 }
 0x371   :  { %v832_v27 = vmul.f32 %v830_v50, %v824_v51 }
 0x373   :  { %834 = vrot.lane.b32.xlu2 %v832_v27, %s2294_s6 }
 0x37b   :  { %561 = vperm.xlu2 %2041, %v462_v53  }
 0x3cd   :  { %v835_v61 = vpop.permute.xlu2 %834 }
 0x3ce   :  { %v2687_v63 = vadd.f32 %v835_v61, %v827_v54 }
 0x3d0   :  { %2112 = vtanh.f32 %v2687_v63 }
 0x3d5   :  { %v562_v1 = vpop.permute.xlu2 %561 }
 0x3d6   :  { %v2113_v2 = vpop.eup %2112  ;;  %v595_v10 = vmul.f32 %v562_v1, %v2396_v6  ;;  %v1412_v6 = vld [vmem:[%s3111_s7 + $0x18] sm:$0xff] }
 0x3d7   :  { %840 = vrot.lane.b32.xlu0 %v2113_v2, %s2293_s25  ;;  %1451 = vmatpush.msrb.mxu0 %v1412_v6 }
 0x3d8   :  { %1965 = vmatmul.msk.f32.gmra.mxu1 %vm74_vm0, %v595_v10  ;;  %1973 = vmatmul.msk.f32.gmra.mxu2 %vm74_vm0, %v595_v10 }
 0x3d9   :  { %1452 = vmatpush.msrb.mxu0 %v1411_v30 }
 0x3db   :  { %1453 = vmatpush.msrb.mxu0 %v1410_v25 }
 0x449   :  { %v841_v15 = vpop.permute.xlu0 %840 }
 0x44a   :  { %v843_v12 = vmul.f32 %v841_v15, %v824_v51 }
 0x44c   :  { %845 = vrot.lane.b32.xlu1 %v843_v12, %s2294_s6 }
 0x455   :  { %v654_v35 = vpop.f32.mrf.mxu1 }
 0x456   :  { %v2724_v37 = vadd.f32 %v654_v35, %v2678_v59 }
 0x45b   :  { %v2695_v7 = vpop.f32.mrf.mxu2 }
 0x45c   :  { %725 = vst.msk [vmem:[#allocation4 + $0x8] sm:$0xff] %vm302_vm6, %v2695_v7 }
 0x463   :  { %v926_v28 = vld [vmem:[#allocation4 + $0x8] sm:$0xff] }
 0x464   :  { %v2700_v29 = vadd.f32 %v926_v28, %v2661_v11  ;;  %v1409_v11 = vld [vmem:[%s3111_s7] sm:$0xff] }
 0x465   :  { %1454 = vmatpush.msrb.mxu0 %v1409_v11  ;;  %v2228_v11 = vld [vmem:[%s3104_s0 + $0x10] sm:$0xff] }
 0x466   :  { %928 = vst.msk [vmem:[#allocation4 + $0x8] sm:$0xff] %vm302_vm6, %v2700_v29 }
 0x4be   :  { %v846_v33 = vpop.permute.xlu1 %845 }
 0x4bf   :  { %848 = vst.msk [vmem:[#allocation3] sm:$0xff] %vm74_vm0, %v846_v33  ;;  %1981 = vmatmul.msk.f32.vlgmr.msra.gmra.mxu3 %vm74_vm0, %v846_v33 }
 0x4c0   :  { %1028 = vmatpush.msra.mxu3 %v2605_v62 }
 0x4c2   :  { %1029 = vmatpush.msra.mxu3 %v2611_v0 }
 0x4c4   :  { %1030 = vmatpush.msra.mxu3 %v2620_v3 }
 0x4c6   :  { %v1401_v34 = vld [vmem:[#allocation3] sm:$0xff]  ;;  %1031 = vmatpush.msra.mxu3 %v2626_v8 }
 0x4c7   :  { %1995 = vmatmul.msk.f32.vlgmr.msrb.gmra.mxu0 %vm74_vm0, %v1401_v34 }
 0x542   :  { %v877_v38 = vpop.f32.mrf.mxu3 }
 0x543   :  { %v880_v40 = vadd.f32 %v877_v38, %v2724_v37 }
 0x545   :  { %v881_v41 = vadd.f32 %v2676_v23, %v880_v40 }
 0x547   :  { %2114 = vtanh.f32 %v881_v41  ;;  %v1982_v13 = vmul.f32 -1.442695, %v881_v41 }
 0x549   :  { %2116 = vpow2.f32 %v1982_v13 }
 0x54a   :  { %2118 = vpow2.f32 %v1958_v46 }
 0x54d   :  { %v2115_v42 = vpop.eup %2114 }
 0x54e   :  { %904 = vrot.lane.b32.xlu0 %v2115_v42, %s2293_s25 }
 0x54f   :  { %v2117_v44 = vpop.eup %2116 }
 0x550   :  { %v885_v59 = vadd.f32 1.0, %v2117_v44  ;;  %v2119_v24 = vpop.eup %2118 }
 0x551   :  { %v428_v18 = vadd.f32 1.0, %v2119_v24  ;;  %v387_v24 = vadd.f32 %v2551_v31, %v2461_v39 }
 0x552   :  { %2120 = vrcp.f32 %v885_v59  ;;  %v897_v26 = vand.u32 2147483648, %v885_v59  ;;  %vm891_vm7 = vweird.f32 %v885_v59  ;;  %v895_v51 = vand.u32 2147483647, %v885_v59 }
 0x553   :  { %2122 = vrcp.f32 %v428_v18  ;;  %v475_v61 = vand.u32 2147483648, %v428_v18  ;;  %vm469_vm11 = vweird.f32 %v428_v18  ;;  %v473_v1 = vand.u32 2147483647, %v428_v18 }
 0x554   :  { %v898_v56 = vor.u32 1.1754944e-38, %v897_v26  ;;  %vm896_vm9 = vcmp.eq.f32.partialorder %v895_v51, 8.507059e+37 }
 0x555   :  { %v476_v10 = vor.u32 1.1754944e-38, %v475_v61  ;;  %vm474_vm13 = vcmp.eq.f32.partialorder %v473_v1, 8.507059e+37 }
 0x558   :  { %v2121_v48 = vpop.eup %2120 }
 0x559   :  { %v887_v36 = vmul.f32 %v2121_v48, %v885_v59  ;;  %v2123_v49 = vpop.eup %2122  ;;  %vm892_vm5 = vweird.f32 %v2121_v48 }
 0x55a   :  { %v465_v47 = vmul.f32 %v2123_v49, %v428_v18  ;;  %vm893_vm8 = vmor %vm891_vm7, %vm892_vm5  ;;  %vm470_vm10 = vweird.f32 %v2123_v49 }
 0x55b   :  { %v888_v58 = vsub.f32 1.0, %v887_v36  ;;  %vm471_vm12 = vmor %vm469_vm11, %vm470_vm10 }
 0x55c   :  { %v466_v27 = vsub.f32 1.0, %v465_v47 }
 0x55d   :  { %v889_v45 = vmul.f32 %v2121_v48, %v888_v58 }
 0x55e   :  { %v467_v57 = vmul.f32 %v2123_v49, %v466_v27 }
 0x55f   :  { %v890_v50 = vadd.f32 %v2121_v48, %v889_v45 }
 0x560   :  { %v468_v54 = vadd.f32 %v2123_v49, %v467_v57 }
 0x561   :  { %v894_v52 = vsel %vm893_vm8, %v2121_v48, %v890_v50  ;;  %v397_v48 = vadd.f32 %v2556_v32, %v387_v24 }
 0x562   :  { %v899_v60 = vsel %vm896_vm9, %v898_v56, %v894_v52  ;;  %v472_v2 = vsel %vm471_vm12, %v2123_v49, %v468_v54 }
 0x563   :  { %v477_v15 = vsel %vm474_vm13, %v476_v10, %v472_v2  ;;  %v902_v12 = vmul.f32 %v899_v60, %v2687_v63  ;;  %v1959_v36 = vmul.f32 -1.442695, %v397_v48 }
 0x5c0   :  { %v905_v55 = vpop.permute.xlu0 %904 }
 0x5c1   :  { %v907_v53 = vmul.f32 %v905_v55, %v899_v60 }
 0x5c3   :  { %909 = vrot.lane.b32.xlu1 %v907_v53, %s2294_s6 }
 0x5cb   :  { %566 = vperm.xlu1 %2040, %v477_v15  }
 0x635   :  { %v910_v28 = vpop.permute.xlu1 %909 }
 0x636   :  { %v2734_v6 = vadd.f32 %v910_v28, %v902_v12 }
 0x638   :  { %2124 = vtanh.f32 %v2734_v6 }
 0x63d   :  { %v567_v30 = vpop.permute.xlu1 %566 }
 0x63e   :  { %v2125_v25 = vpop.eup %2124  ;;  %v596_v33 = vmul.f32 %v2228_v11, %v567_v30 }
 0x63f   :  { %915 = vrot.lane.b32.xlu2 %v2125_v25, %s2293_s25 }
 0x640   :  { %1966 = vmatmul.msk.f32.gmra.mxu1 %vm74_vm0, %v596_v33  ;;  %1974 = vmatmul.msk.f32.gmra.mxu2 %vm74_vm0, %v596_v33 }
 0x699   :  { %v916_v34 = vpop.permute.xlu2 %915 }
 0x69a   :  { %v918_v63 = vmul.f32 %v916_v34, %v899_v60  ;;  %v2229_v34 = vld [vmem:[%s3104_s0 + $0x18] sm:$0xff] }
 0x69c   :  { %920 = vrot.lane.b32.xlu0 %v918_v63, %s2294_s6 }
 0x6c3   :  { %v2744_v35 = vpop.f32.mrf.mxu2 }
 0x6c4   :  { %726 = vst.msk [vmem:[#allocation4 + $0x10] sm:$0xff] %vm302_vm6, %v2744_v35 }
 0x6cb   :  { %v1004_v38 = vld [vmem:[#allocation4 + $0x10] sm:$0xff] }
 0x6cc   :  { %v2749_v40 = vadd.f32 %v1004_v38, %v2700_v29  ;;  %v657_v29 = vpop.f32.mrf.mxu1 }
 0x6cd   :  { %v2761_v13 = vadd.f32 %v2724_v37, %v657_v29 }
 0x6ce   :  { %1006 = vst.msk [vmem:[#allocation4 + $0x10] sm:$0xff] %vm302_vm6, %v2749_v40 }
 0x70e   :  { %v921_v41 = vpop.permute.xlu0 %920 }
 0x70f   :  { %924 = vst.msk [vmem:[#allocation3 + $0x8] sm:$0xff] %vm74_vm0, %v921_v41  ;;  %1983 = vmatmul.msk.f32.vlgmr.msrb.gmra.mxu3 %vm74_vm0, %v921_v41 }
 0x710   :  { %1106 = vmatpush.msrb.mxu3 %v2605_v62 }
 0x712   :  { %1107 = vmatpush.msrb.mxu3 %v2611_v0 }
 0x714   :  { %1108 = vmatpush.msrb.mxu3 %v2620_v3 }
 0x716   :  { %v1402_v42 = vld [vmem:[#allocation3 + $0x8] sm:$0xff]  ;;  %1109 = vmatpush.msrb.mxu3 %v2626_v8 }
 0x717   :  { %1996 = vmatmul.msk.f32.gmra.mxu0 %vm74_vm0, %v1402_v42 }
 0x792   :  { %v955_v43 = vpop.f32.mrf.mxu3 }
 0x793   :  { %v958_v16 = vadd.f32 %v955_v43, %v2761_v13 }
 0x795   :  { %v959_v44 = vadd.f32 %v2676_v23, %v958_v16 }
 0x797   :  { %2126 = vtanh.f32 %v959_v44  ;;  %v1984_v59 = vmul.f32 -1.442695, %v959_v44 }
 0x799   :  { %2128 = vpow2.f32 %v1984_v59 }
 0x79a   :  { %2130 = vpow2.f32 %v1959_v36 }
 0x79d   :  { %v2127_v46 = vpop.eup %2126 }
 0x79e   :  { %982 = vrot.lane.b32.xlu2 %v2127_v46, %s2293_s25 }
 0x79f   :  { %v2129_v18 = vpop.eup %2128 }
 0x7a0   :  { %v963_v37 = vadd.f32 1.0, %v2129_v18  ;;  %v2131_v58 = vpop.eup %2130 }
 0x7a1   :  { %v429_v45 = vadd.f32 1.0, %v2131_v58 }
 0x7a2   :  { %2132 = vrcp.f32 %v963_v37  ;;  %v975_v39 = vand.u32 2147483648, %v963_v37  ;;  %vm969_vm15 = vweird.f32 %v963_v37  ;;  %v973_v31 = vand.u32 2147483647, %v963_v37 }
 0x7a3   :  { %2134 = vrcp.f32 %v429_v45  ;;  %v490_v1 = vand.u32 2147483648, %v429_v45  ;;  %vm484_vm4 = vweird.f32 %v429_v45  ;;  %v488_v2 = vand.u32 2147483647, %v429_v45 }
 0x7a4   :  { %v976_v57 = vor.u32 1.1754944e-38, %v975_v39  ;;  %vm974_vm2 = vcmp.eq.f32.partialorder %v973_v31, 8.507059e+37 }
 0x7a5   :  { %v491_v15 = vor.u32 1.1754944e-38, %v490_v1  ;;  %vm489_vm7 = vcmp.eq.f32.partialorder %v488_v2, 8.507059e+37 }
 0x7a8   :  { %v2133_v49 = vpop.eup %2132 }
 0x7a9   :  { %v965_v47 = vmul.f32 %v2133_v49, %v963_v37  ;;  %v2135_v26 = vpop.eup %2134  ;;  %vm970_vm14 = vweird.f32 %v2133_v49 }
 0x7aa   :  { %v480_v27 = vmul.f32 %v2135_v26, %v429_v45  ;;  %vm971_vm1 = vmor %vm969_vm15, %vm970_vm14  ;;  %vm485_vm3 = vweird.f32 %v2135_v26 }
 0x7ab   :  { %v966_v50 = vsub.f32 1.0, %v965_v47  ;;  %vm486_vm5 = vmor %vm484_vm4, %vm485_vm3 }
 0x7ac   :  { %v481_v32 = vsub.f32 1.0, %v480_v27 }
 0x7ad   :  { %v967_v51 = vmul.f32 %v2133_v49, %v966_v50 }
 0x7ae   :  { %v482_v55 = vmul.f32 %v2135_v26, %v481_v32 }
 0x7af   :  { %v968_v52 = vadd.f32 %v2133_v49, %v967_v51 }
 0x7b0   :  { %v483_v61 = vadd.f32 %v2135_v26, %v482_v55 }
 0x7b1   :  { %v972_v56 = vsel %vm971_vm1, %v2133_v49, %v968_v52 }
 0x7b2   :  { %v977_v53 = vsel %vm974_vm2, %v976_v57, %v972_v56  ;;  %v487_v10 = vsel %vm486_vm5, %v2135_v26, %v483_v61 }
 0x7b3   :  { %v492_v12 = vsel %vm489_vm7, %v491_v15, %v487_v10  ;;  %v980_v28 = vmul.f32 %v977_v53, %v2734_v6 }
 0x7f8   :  { %v983_v60 = vpop.permute.xlu2 %982 }
 0x7f9   :  { %v985_v54 = vmul.f32 %v983_v60, %v977_v53 }
 0x7fb   :  { %987 = vrot.lane.b32.xlu0 %v985_v54, %s2294_s6 }
 0x803   :  { %571 = vperm.xlu0 %2042, %v492_v12  }
 0x86d   :  { %v988_v30 = vpop.permute.xlu0 %987 }
 0x86e   :  { %v2771_v25 = vadd.f32 %v988_v30, %v980_v28 }
 0x870   :  { %2136 = vtanh.f32 %v2771_v25 }
 0x875   :  { %v572_v11 = vpop.permute.xlu0 %571 }
 0x876   :  { %v2137_v33 = vpop.eup %2136  ;;  %v597_v63 = vmul.f32 %v2229_v34, %v572_v11 }
 0x877   :  { %993 = vrot.lane.b32.xlu1 %v2137_v33, %s2293_s25 }
 0x878   :  { %1967 = vmatmul.msk.f32.gmra.mxu1 %vm74_vm0, %v597_v63  ;;  %1975 = vmatmul.msk.f32.gmra.mxu2 %vm74_vm0, %v597_v63 }
 0x880   :  { %1976 = vmatmul.msk.f32.gmra.mxu2 %vm74_vm0, %v2630_v4 }
 0x888   :  { %1977 = vmatmul.msk.f32.gmra.mxu2 %vm74_vm0, %v2638_v14 }
 0x890   :  { %1978 = vmatmul.msk.f32.gmra.mxu2 %vm74_vm0, %v2644_v5 }
 0x898   :  { %1979 = vmatmul.msk.f32.gmra.mxu2 %vm74_vm0, %v2649_v17 }
 0x8e9   :  { %v994_v6 = vpop.permute.xlu1 %993 }
 0x8ea   :  { %v996_v38 = vmul.f32 %v994_v6, %v977_v53 }
 0x8ec   :  { %998 = vrot.lane.b32.xlu2 %v996_v38, %s2294_s6 }
 0x8f5   :  { %v660_v37 = vpop.f32.mrf.mxu1 }
 0x8f6   :  { %v1013_v58 = vadd.f32 %v2761_v13, %v660_v37 }
 0x8f8   :  { %v1091_v11 = vadd.f32 %v1013_v58, %v2665_v19 }
 0x8fb   :  { %v2789_v41 = vpop.f32.mrf.mxu2 }
 0x8fc   :  { %727 = vst.msk [vmem:[#allocation4 + $0x18] sm:$0xff] %vm302_vm6, %v2789_v41 }
 0x903   :  { %v1082_v42 = vld [vmem:[#allocation4 + $0x18] sm:$0xff]  ;;  %v2793_v4 = vpop.f32.mrf.mxu2 }
 0x904   :  { %v1083_v14 = vadd.f32 %v1082_v42, %v2749_v40  ;;  %728 = vst.msk [vmem:[#allocation4 + $0x20] sm:$0xff] %vm302_vm6, %v2793_v4 }
 0x906   :  { %1084 = vst.msk [vmem:[#allocation4 + $0x18] sm:$0xff] %vm302_vm6, %v1083_v14 }
 0x90b   :  { %v1160_v5 = vld [vmem:[#allocation4 + $0x20] sm:$0xff]  ;;  %v2799_v17 = vpop.f32.mrf.mxu2 }
 0x90c   :  { %v1161_v29 = vadd.f32 %v1160_v5, %v1083_v14  ;;  %729 = vst.msk [vmem:[#allocation4 + $0x28] sm:$0xff] %vm302_vm6, %v2799_v17 }
 0x90e   :  { %1162 = vst.msk [vmem:[#allocation4 + $0x20] sm:$0xff] %vm302_vm6, %v1161_v29 }
 0x913   :  { %v1238_v43 = vld [vmem:[#allocation4 + $0x28] sm:$0xff]  ;;  %v2804_v16 = vpop.f32.mrf.mxu2 }
 0x914   :  { %v1239_v44 = vadd.f32 %v1238_v43, %v1161_v29  ;;  %730 = vst.msk [vmem:[#allocation4 + $0x30] sm:$0xff] %vm302_vm6, %v2804_v16 }
 0x916   :  { %1240 = vst.msk [vmem:[#allocation4 + $0x28] sm:$0xff] %vm302_vm6, %v1239_v44 }
 0x91b   :  { %v1316_v40 = vld [vmem:[#allocation4 + $0x30] sm:$0xff]  ;;  %v2809_v46 = vpop.f32.mrf.mxu2 }
 0x91c   :  { %v1317_v59 = vadd.f32 %v1316_v40, %v1239_v44  ;;  %731 = vst.msk [vmem:[#allocation4 + $0x38] sm:$0xff] %vm302_vm6, %v2809_v46 }
 0x91e   :  { %1318 = vst.msk [vmem:[#allocation4 + $0x30] sm:$0xff] %vm302_vm6, %v1317_v59 }
 0x923   :  { %v1394_v24 = vld [vmem:[#allocation4 + $0x38] sm:$0xff] }
 0x924   :  { %v1395_v48 = vadd.f32 %v1394_v24, %v1317_v59 }
 0x926   :  { %1396 = vst.msk [vmem:[#allocation4 + $0x38] sm:$0xff] %vm302_vm6, %v1395_v48 }
 0x946   :  { %v999_v18 = vpop.permute.xlu2 %998 }
 0x947   :  { %1002 = vst.msk [vmem:[#allocation3 + $0x10] sm:$0xff] %vm74_vm0, %v999_v18  ;;  %1985 = vmatmul.msk.f32.vlgmr.msra.gmra.mxu3 %vm74_vm0, %v999_v18 }
 0x948   :  { %1184 = vmatpush.msra.mxu3 %v2605_v62 }
 0x94a   :  { %1185 = vmatpush.msra.mxu3 %v2611_v0 }
 0x94c   :  { %1186 = vmatpush.msra.mxu3 %v2620_v3 }
 0x94e   :  { %v1403_v36 = vld [vmem:[#allocation3 + $0x10] sm:$0xff]  ;;  %1187 = vmatpush.msra.mxu3 %v2626_v8 }
 0x94f   :  { %1997 = vmatmul.msk.f32.gmra.mxu0 %vm74_vm0, %v1403_v36 }
 0x9ca   :  { %v1033_v49 = vpop.f32.mrf.mxu3 }
 0x9cb   :  { %v1036_v45 = vadd.f32 %v1033_v49, %v1013_v58 }
 0x9cd   :  { %v1037_v47 = vadd.f32 %v2676_v23, %v1036_v45 }
 0x9cf   :  { %2138 = vtanh.f32 %v1037_v47  ;;  %v1986_v26 = vmul.f32 -1.442695, %v1037_v47 }
 0x9d1   :  { %2140 = vpow2.f32 %v1986_v26 }
 0x9d5   :  { %v2139_v50 = vpop.eup %2138 }
 0x9d6   :  { %1060 = vrot.lane.b32.xlu1 %v2139_v50, %s2293_s25 }
 0x9d7   :  { %v2141_v51 = vpop.eup %2140 }
 0x9d8   :  { %v1041_v27 = vadd.f32 1.0, %v2141_v51 }
 0x9da   :  { %2142 = vrcp.f32 %v1041_v27  ;;  %v1053_v13 = vand.u32 2147483648, %v1041_v27  ;;  %vm1047_vm9 = vweird.f32 %v1041_v27  ;;  %v1051_v57 = vand.u32 2147483647, %v1041_v27 }
 0x9dc   :  { %v1054_v60 = vor.u32 1.1754944e-38, %v1053_v13  ;;  %vm1052_vm11 = vcmp.eq.f32.partialorder %v1051_v57, 8.507059e+37 }
 0x9e0   :  { %v2143_v52 = vpop.eup %2142 }
 0x9e1   :  { %v1043_v39 = vmul.f32 %v2143_v52, %v1041_v27  ;;  %vm1048_vm8 = vweird.f32 %v2143_v52 }
 0x9e2   :  { %vm1049_vm10 = vmor %vm1047_vm9, %vm1048_vm8 }
 0x9e3   :  { %v1044_v31 = vsub.f32 1.0, %v1043_v39 }
 0x9e5   :  { %v1045_v32 = vmul.f32 %v2143_v52, %v1044_v31 }
 0x9e7   :  { %v1046_v56 = vadd.f32 %v2143_v52, %v1045_v32 }
 0x9e9   :  { %v1050_v55 = vsel %vm1049_vm10, %v2143_v52, %v1046_v56  ;;  %v1169_v52 = vadd.f32 %v1091_v11, %v2667_v20 }
 0x9ea   :  { %v1055_v54 = vsel %vm1052_vm11, %v1054_v60, %v1050_v55 }
 0x9eb   :  { %v1058_v1 = vmul.f32 %v1055_v54, %v2771_v25 }
 0xa48   :  { %v1061_v53 = vpop.permute.xlu1 %1060 }
 0xa49   :  { %v1063_v61 = vmul.f32 %v1061_v53, %v1055_v54 }
 0xa4b   :  { %1065 = vrot.lane.b32.xlu2 %v1063_v61, %s2294_s6 }
 0xaa5   :  { %v1066_v2 = vpop.permute.xlu2 %1065 }
 0xaa6   :  { %v1068_v10 = vadd.f32 %v1066_v2, %v1058_v1 }
 0xaa8   :  { %2144 = vtanh.f32 %v1068_v10 }
 0xaae   :  { %v2145_v15 = vpop.eup %2144 }
 0xaaf   :  { %1071 = vrot.lane.b32.xlu0 %v2145_v15, %s2293_s25 }
 0xb21   :  { %v1072_v12 = vpop.permute.xlu0 %1071 }
 0xb22   :  { %v1074_v28 = vmul.f32 %v1072_v12, %v1055_v54 }
 0xb24   :  { %1076 = vrot.lane.b32.xlu1 %v1074_v28, %s2294_s6 }
 0xb96   :  { %v1077_v30 = vpop.permute.xlu1 %1076 }
 0xb97   :  { %1080 = vst.msk [vmem:[#allocation3 + $0x18] sm:$0xff] %vm74_vm0, %v1077_v30  ;;  %1987 = vmatmul.msk.f32.vlgmr.msrb.gmra.mxu3 %vm74_vm0, %v1077_v30 }
 0xb98   :  { %1262 = vmatpush.msrb.mxu3 %v2605_v62 }
 0xb9a   :  { %1263 = vmatpush.msrb.mxu3 %v2611_v0 }
 0xb9c   :  { %1264 = vmatpush.msrb.mxu3 %v2620_v3 }
 0xb9e   :  { %v1404_v25 = vld [vmem:[#allocation3 + $0x18] sm:$0xff]  ;;  %1265 = vmatpush.msrb.mxu3 %v2626_v8 }
 0xb9f   :  { %1998 = vmatmul.msk.f32.gmra.mxu0 %vm74_vm0, %v1404_v25 }
 0xc1a   :  { %v1111_v33 = vpop.f32.mrf.mxu3 }
 0xc1b   :  { %v1114_v34 = vadd.f32 %v1111_v33, %v1091_v11 }
 0xc1d   :  { %v1115_v63 = vadd.f32 %v2676_v23, %v1114_v34 }
 0xc1f   :  { %2146 = vtanh.f32 %v1115_v63  ;;  %v1988_v38 = vmul.f32 -1.442695, %v1115_v63  ;;  %v1247_v63 = vadd.f32 %v1169_v52, %v2669_v21 }
 0xc21   :  { %2148 = vpow2.f32 %v1988_v38 }
 0xc25   :  { %v2147_v6 = vpop.eup %2146 }
 0xc26   :  { %1138 = vrot.lane.b32.xlu2 %v2147_v6, %s2293_s25 }
 0xc27   :  { %v2149_v42 = vpop.eup %2148 }
 0xc28   :  { %v1119_v14 = vadd.f32 1.0, %v2149_v42 }
 0xc2a   :  { %2150 = vrcp.f32 %v1119_v14  ;;  %v1131_v19 = vand.u32 2147483648, %v1119_v14  ;;  %vm1125_vm13 = vweird.f32 %v1119_v14  ;;  %v1129_v59 = vand.u32 2147483647, %v1119_v14 }
 0xc2c   :  { %v1132_v48 = vor.u32 1.1754944e-38, %v1131_v19  ;;  %vm1130_vm15 = vcmp.eq.f32.partialorder %v1129_v59, 8.507059e+37 }
 0xc30   :  { %v2151_v5 = vpop.eup %2150 }
 0xc31   :  { %v1121_v29 = vmul.f32 %v2151_v5, %v1119_v14  ;;  %vm1126_vm12 = vweird.f32 %v2151_v5 }
 0xc32   :  { %vm1127_vm14 = vmor %vm1125_vm13, %vm1126_vm12 }
 0xc33   :  { %v1122_v43 = vsub.f32 1.0, %v1121_v29 }
 0xc35   :  { %v1123_v44 = vmul.f32 %v2151_v5, %v1122_v43 }
 0xc37   :  { %v1124_v40 = vadd.f32 %v2151_v5, %v1123_v44 }
 0xc39   :  { %v1128_v24 = vsel %vm1127_vm14, %v2151_v5, %v1124_v40 }
 0xc3a   :  { %v1133_v36 = vsel %vm1130_vm15, %v1132_v48, %v1128_v24 }
 0xc3b   :  { %v1136_v58 = vmul.f32 %v1133_v36, %v1068_v10 }
 0xc80   :  { %v1139_v18 = vpop.permute.xlu2 %1138 }
 0xc81   :  { %v1141_v37 = vmul.f32 %v1139_v18, %v1133_v36 }
 0xc83   :  { %1143 = vrot.lane.b32.xlu0 %v1141_v37, %s2294_s6 }
 0xcf5   :  { %v1144_v49 = vpop.permute.xlu0 %1143 }
 0xcf6   :  { %v1146_v45 = vadd.f32 %v1144_v49, %v1136_v58 }
 0xcf8   :  { %2152 = vtanh.f32 %v1146_v45 }
 0xcfe   :  { %v2153_v47 = vpop.eup %2152 }
 0xcff   :  { %1149 = vrot.lane.b32.xlu1 %v2153_v47, %s2293_s25 }
 0xd71   :  { %v1150_v50 = vpop.permute.xlu1 %1149 }
 0xd72   :  { %v1152_v26 = vmul.f32 %v1150_v50, %v1133_v36 }
 0xd74   :  { %1154 = vrot.lane.b32.xlu2 %v1152_v26, %s2294_s6 }
 0xdce   :  { %v1155_v51 = vpop.permute.xlu2 %1154 }
 0xdcf   :  { %1158 = vst.msk [vmem:[#allocation3 + $0x20] sm:$0xff] %vm74_vm0, %v1155_v51  ;;  %1989 = vmatmul.msk.f32.vlgmr.msra.gmra.mxu3 %vm74_vm0, %v1155_v51 }
 0xdd0   :  { %1340 = vmatpush.msra.mxu3 %v2605_v62 }
 0xdd2   :  { %1341 = vmatpush.msra.mxu3 %v2611_v0 }
 0xdd4   :  { %1342 = vmatpush.msra.mxu3 %v2620_v3 }
 0xdd6   :  { %v2847_v27 = vld [vmem:[#allocation3 + $0x20] sm:$0xff]  ;;  %1343 = vmatpush.msra.mxu3 %v2626_v8 }
 0xdd7   :  { %1999 = vmatmul.msk.f32.gmra.mxu0 %vm74_vm0, %v2847_v27 }
 0xe52   :  { %v1189_v39 = vpop.f32.mrf.mxu3 }
 0xe53   :  { %v1192_v31 = vadd.f32 %v1189_v39, %v1169_v52 }
 0xe55   :  { %v1193_v32 = vadd.f32 %v2676_v23, %v1192_v31 }
 0xe57   :  { %2154 = vtanh.f32 %v1193_v32  ;;  %v1990_v62 = vmul.f32 -1.442695, %v1193_v32  ;;  %v1325_v32 = vadd.f32 %v1247_v63, %v2671_v22 }
 0xe59   :  { %2156 = vpow2.f32 %v1990_v62 }
 0xe5d   :  { %v2155_v56 = vpop.eup %2154 }
 0xe5e   :  { %1216 = vrot.lane.b32.xlu0 %v2155_v56, %s2293_s25 }
 0xe5f   :  { %v2157_v0 = vpop.eup %2156 }
 0xe60   :  { %v1197_v3 = vadd.f32 1.0, %v2157_v0 }
 0xe62   :  { %2158 = vrcp.f32 %v1197_v3  ;;  %v1209_v20 = vand.u32 2147483648, %v1197_v3  ;;  %vm1203_vm2 = vweird.f32 %v1197_v3  ;;  %v1207_v53 = vand.u32 2147483647, %v1197_v3 }
 0xe64   :  { %v1210_v61 = vor.u32 1.1754944e-38, %v1209_v20  ;;  %vm1208_vm4 = vcmp.eq.f32.partialorder %v1207_v53, 8.507059e+37 }
 0xe68   :  { %v2159_v13 = vpop.eup %2158 }
 0xe69   :  { %v1199_v8 = vmul.f32 %v2159_v13, %v1197_v3  ;;  %vm1204_vm1 = vweird.f32 %v2159_v13 }
 0xe6a   :  { %vm1205_vm3 = vmor %vm1203_vm2, %vm1204_vm1 }
 0xe6b   :  { %v1200_v57 = vsub.f32 1.0, %v1199_v8 }
 0xe6d   :  { %v1201_v55 = vmul.f32 %v2159_v13, %v1200_v57 }
 0xe6f   :  { %v1202_v60 = vadd.f32 %v2159_v13, %v1201_v55 }
 0xe71   :  { %v1206_v54 = vsel %vm1205_vm3, %v2159_v13, %v1202_v60 }
 0xe72   :  { %v1211_v2 = vsel %vm1208_vm4, %v1210_v61, %v1206_v54 }
 0xe73   :  { %v1214_v15 = vmul.f32 %v1211_v2, %v1146_v45 }
 0xed0   :  { %v1217_v1 = vpop.permute.xlu0 %1216 }
 0xed1   :  { %v1219_v10 = vmul.f32 %v1217_v1, %v1211_v2 }
 0xed3   :  { %1221 = vrot.lane.b32.xlu1 %v1219_v10, %s2294_s6 }
 0xf45   :  { %v1222_v12 = vpop.permute.xlu1 %1221 }
 0xf46   :  { %v1224_v28 = vadd.f32 %v1222_v12, %v1214_v15 }
 0xf48   :  { %2160 = vtanh.f32 %v1224_v28 }
 0xf4e   :  { %v2161_v30 = vpop.eup %2160 }
 0xf4f   :  { %1227 = vrot.lane.b32.xlu2 %v2161_v30, %s2293_s25 }
 0xfa9   :  { %v1228_v25 = vpop.permute.xlu2 %1227 }
 0xfaa   :  { %v1230_v11 = vmul.f32 %v1228_v25, %v1211_v2 }
 0xfac   :  { %1232 = vrot.lane.b32.xlu0 %v1230_v11, %s2294_s6 }
0x101e   :  { %v1233_v33 = vpop.permute.xlu0 %1232 }
0x101f   :  { %1236 = vst.msk [vmem:[#allocation3 + $0x28] sm:$0xff] %vm74_vm0, %v1233_v33  ;;  %1991 = vmatmul.msk.f32.vlgmr.msrb.gmra.mxu3 %vm74_vm0, %v1233_v33 }
0x1026   :  { %v2860_v34 = vld [vmem:[#allocation3 + $0x28] sm:$0xff] }
0x1027   :  { %2000 = vmatmul.msk.f32.gmra.mxu0 %vm74_vm0, %v2860_v34 }
0x10a2   :  { %v1267_v6 = vpop.f32.mrf.mxu3 }
0x10a3   :  { %v1270_v38 = vadd.f32 %v1267_v6, %v1247_v63 }
0x10a5   :  { %v1271_v42 = vadd.f32 %v2676_v23, %v1270_v38 }
0x10a7   :  { %2162 = vtanh.f32 %v1271_v42  ;;  %v1992_v5 = vmul.f32 -1.442695, %v1271_v42 }
0x10a9   :  { %2164 = vpow2.f32 %v1992_v5 }
0x10ad   :  { %v2163_v14 = vpop.eup %2162 }
0x10ae   :  { %1294 = vrot.lane.b32.xlu1 %v2163_v14, %s2293_s25 }
0x10af   :  { %v2165_v29 = vpop.eup %2164 }
0x10b0   :  { %v1275_v43 = vadd.f32 1.0, %v2165_v29 }
0x10b2   :  { %2166 = vrcp.f32 %v1275_v43  ;;  %v1287_v21 = vand.u32 2147483648, %v1275_v43  ;;  %vm1281_vm7 = vweird.f32 %v1275_v43  ;;  %v1285_v48 = vand.u32 2147483647, %v1275_v43 }
0x10b4   :  { %v1288_v36 = vor.u32 1.1754944e-38, %v1287_v21  ;;  %vm1286_vm9 = vcmp.eq.f32.partialorder %v1285_v48, 8.507059e+37 }
0x10b8   :  { %v2167_v44 = vpop.eup %2166 }
0x10b9   :  { %v1277_v40 = vmul.f32 %v2167_v44, %v1275_v43  ;;  %vm1282_vm5 = vweird.f32 %v2167_v44 }
0x10ba   :  { %vm1283_vm8 = vmor %vm1281_vm7, %vm1282_vm5 }
0x10bb   :  { %v1278_v19 = vsub.f32 1.0, %v1277_v40 }
0x10bd   :  { %v1279_v59 = vmul.f32 %v2167_v44, %v1278_v19 }
0x10bf   :  { %v1280_v24 = vadd.f32 %v2167_v44, %v1279_v59 }
0x10c1   :  { %v1284_v18 = vsel %vm1283_vm8, %v2167_v44, %v1280_v24 }
0x10c2   :  { %v1289_v58 = vsel %vm1286_vm9, %v1288_v36, %v1284_v18 }
0x10c3   :  { %v1292_v45 = vmul.f32 %v1289_v58, %v1224_v28 }
0x1120   :  { %v1295_v37 = vpop.permute.xlu1 %1294 }
0x1121   :  { %v1297_v49 = vmul.f32 %v1295_v37, %v1289_v58  ;;  %v1456_v37 = vpop.f32.mrf.mxu0 }
0x1123   :  { %1299 = vrot.lane.b32.xlu2 %v1297_v49, %s2294_s6 }
0x117d   :  { %v1300_v47 = vpop.permute.xlu2 %1299 }
0x117e   :  { %v1302_v50 = vadd.f32 %v1300_v47, %v1292_v45 }
0x1180   :  { %2168 = vtanh.f32 %v1302_v50 }
0x1186   :  { %v2169_v26 = vpop.eup %2168 }
0x1187   :  { %1305 = vrot.lane.b32.xlu0 %v2169_v26, %s2293_s25 }
0x11f9   :  { %v1306_v51 = vpop.permute.xlu0 %1305 }
0x11fa   :  { %v1308_v52 = vmul.f32 %v1306_v51, %v1289_v58  ;;  %v1459_v58 = vpop.f32.mrf.mxu0  ;;  %v1414_v51 = vstv %s3112_s8 }
0x11fc   :  { %1310 = vrot.lane.b32.xlu1 %v1308_v52, %s2294_s6 }
0x1202   :  { %v1462_v49 = vpop.f32.mrf.mxu0 }
0x120a   :  { %v1465_v45 = vpop.f32.mrf.mxu0 }
0x1212   :  { %v1468_v47 = vpop.f32.mrf.mxu0 }
0x126e   :  { %v1311_v39 = vpop.permute.xlu1 %1310 }
0x126f   :  { %1314 = vst.msk [vmem:[#allocation3 + $0x30] sm:$0xff] %vm74_vm0, %v1311_v39  ;;  %1993 = vmatmul.msk.f32.vlgmr.msra.gmra.mxu3 %vm74_vm0, %v1311_v39  ;;  %v1460_v39 = vadd.f32 %v1459_v58, %v1414_v51 }
0x1276   :  { %v2872_v31 = vld [vmem:[#allocation3 + $0x30] sm:$0xff] }
0x1277   :  { %2001 = vmatmul.msk.f32.gmra.mxu0 %vm74_vm0, %v2872_v31 }
0x12f2   :  { %v1345_v56 = vpop.f32.mrf.mxu3 }
0x12f3   :  { %v1348_v62 = vadd.f32 %v1345_v56, %v1325_v32  ;;  %v1469_v32 = vadd.f32 %v1468_v47, %v1414_v51 }
0x12f5   :  { %v1349_v0 = vadd.f32 %v2676_v23, %v1348_v62  ;;  %v1457_v62 = vadd.f32 %v1456_v37, %v1414_v51 }
0x12f7   :  { %2170 = vtanh.f32 %v1349_v0  ;;  %v1994_v13 = vmul.f32 -1.442695, %v1349_v0  ;;  %v1463_v0 = vadd.f32 %v1462_v49, %v1414_v51 }
0x12f9   :  { %2172 = vpow2.f32 %v1994_v13 }
0x12fd   :  { %v2171_v3 = vpop.eup %2170 }
0x12fe   :  { %1372 = vrot.lane.b32.xlu2 %v2171_v3, %s2293_s25  ;;  %v1466_v3 = vadd.f32 %v1465_v45, %v1414_v51 }
0x12ff   :  { %v2173_v8 = vpop.eup %2172 }
0x1300   :  { %v1353_v57 = vadd.f32 1.0, %v2173_v8 }
0x1302   :  { %2174 = vrcp.f32 %v1353_v57  ;;  %v1365_v22 = vand.u32 2147483648, %v1353_v57  ;;  %vm1359_vm11 = vweird.f32 %v1353_v57  ;;  %v1363_v61 = vand.u32 2147483647, %v1353_v57 }
0x1304   :  { %v1366_v1 = vor.u32 1.1754944e-38, %v1365_v22  ;;  %vm1364_vm13 = vcmp.eq.f32.partialorder %v1363_v61, 8.507059e+37  ;;  %v1482_v22 = vsel %vm302_vm6, %v1463_v0, -inf  ;;  %v1483_v61 = vsel %vm302_vm6, %v1466_v3, -inf }
0x1308   :  { %v2175_v55 = vpop.eup %2174 }
0x1309   :  { %v1355_v60 = vmul.f32 %v2175_v55, %v1353_v57  ;;  %vm1360_vm10 = vweird.f32 %v2175_v55  ;;  %v1481_v57 = vsel %vm302_vm6, %v1460_v39, -inf }
0x130a   :  { %vm1361_vm12 = vmor %vm1359_vm11, %vm1360_vm10 }
0x130b   :  { %v1356_v20 = vsub.f32 1.0, %v1355_v60 }
0x130d   :  { %v1357_v53 = vmul.f32 %v2175_v55, %v1356_v20 }
0x130f   :  { %v1358_v54 = vadd.f32 %v2175_v55, %v1357_v53 }
0x1311   :  { %v1362_v23 = vsel %vm1361_vm12, %v2175_v55, %v1358_v54  ;;  %v1484_v55 = vsel %vm302_vm6, %v1469_v32, -inf  ;;  %v1480_v54 = vsel %vm302_vm6, %v1457_v62, -inf }
0x1312   :  { %v1367_v10 = vsel %vm1364_vm13, %v1366_v1, %v1362_v23  ;;  %v1485_v1 = vmax.f32 %v1480_v54, %v1484_v55 }
0x1313   :  { %v1370_v12 = vmul.f32 %v1367_v10, %v1302_v50  ;;  %v1471_v50 = vpop.f32.mrf.mxu0 }
0x1314   :  { %v1472_v52 = vadd.f32 %v1471_v50, %v1414_v51  ;;  %v2295_v50 = vmov 0  }
0x1315   :  { %2043 = vset.pattern.permute.xlu2 %v2295_v50  ;;  %2045 = vset.pattern.permute.xlu1 %v2295_v50 }
0x1316   :  { %v1486_v13 = vsel %vm302_vm6, %v1472_v52, -inf  ;;  %2044 = vset.pattern.permute.xlu0 %v2295_v50 }
0x1317   :  { %v1487_v53 = vmax.f32 %v1481_v57, %v1486_v13 }
0x131b   :  { %v1474_v26 = vpop.f32.mrf.mxu0 }
0x131c   :  { %v1475_v56 = vadd.f32 %v1474_v26, %v1414_v51 }
0x131e   :  { %v1488_v60 = vsel %vm302_vm6, %v1475_v56, -inf }
0x1358   :  { %v1373_v2 = vpop.permute.xlu2 %1372 }
0x1359   :  { %v1375_v15 = vmul.f32 %v1373_v2, %v1367_v10  ;;  %v1489_v2 = vmax.f32 %v1482_v22, %v1488_v60 }
0x135b   :  { %1377 = vrot.lane.b32.xlu0 %v1375_v15, %s2294_s6  ;;  %v1492_v15 = vmax.f32 %v1485_v1, %v1487_v53 }
0x1363   :  { %740 = vrot.lane.b32.xlu0 %v2657_v9, %s2290_s15 }
0x136b   :  { %746 = vrot.lane.b32.xlu0 %v2789_v41, %s2290_s15 }
0x1373   :  { %752 = vrot.lane.b32.xlu0 %v2804_v16, %s2290_s15 }
0x13cd   :  { %v1378_v28 = vpop.permute.xlu0 %1377 }
0x13ce   :  { %v1380_v30 = vadd.f32 %v1378_v28, %v1370_v12 }
0x13d0   :  { %2176 = vtanh.f32 %v1380_v30 }
0x13d5   :  { %v741_v25 = vpop.permute.xlu0 %740 }
0x13d6   :  { %v2177_v11 = vpop.eup %2176  ;;  %764 = vst.msk [vmem:[#allocation5] sm:$0xff] %vm302_vm6, %v741_v25 }
0x13d7   :  { %1383 = vrot.lane.b32.xlu1 %v2177_v11, %s2293_s25 }
0x13dd   :  { %v852_v33 = vld [vmem:[#allocation5] sm:$0xff]  ;;  %v747_v63 = vpop.permute.xlu0 %746 }
0x13de   :  { %854 = vst.msk [vmem:[#allocation5] sm:$0xff] %vm302_vm6, %v852_v33 }
0x13df   :  { %767 = vst.msk [vmem:[#allocation5 + $0x18] sm:$0xff] %vm302_vm6, %v747_v63  ;;  %742 = vrot.lane.b32.xlu1 %v2695_v7, %s2290_s15 }
0x13e5   :  { %v753_v9 = vpop.permute.xlu0 %752  ;;  %v1543_v57 = vld [vmem:[#allocation5] sm:$0xff] }
0x13e6   :  { %770 = vst.msk [vmem:[#allocation5 + $0x30] sm:$0xff] %vm302_vm6, %v753_v9 }
0x13e7   :  { %748 = vrot.lane.b32.xlu1 %v2793_v4, %s2290_s15 }
0x13ed   :  { %v1320_v21 = vld [vmem:[#allocation5 + $0x30] sm:$0xff] }
0x13ef   :  { %754 = vrot.lane.b32.xlu1 %v2809_v46, %s2290_s15 }
0x1449   :  { %v1384_v41 = vpop.permute.xlu1 %1383 }
0x144a   :  { %v1386_v16 = vmul.f32 %v1384_v41, %v1367_v10 }
0x144c   :  { %1388 = vrot.lane.b32.xlu2 %v1386_v16, %s2294_s6 }
0x1451   :  { %v743_v6 = vpop.permute.xlu1 %742 }
0x1452   :  { %765 = vst.msk [vmem:[#allocation5 + $0x8] sm:$0xff] %vm302_vm6, %v743_v6 }
0x1454   :  { %744 = vrot.lane.b32.xlu2 %v2744_v35, %s2290_s15 }
0x1459   :  { %v930_v7 = vld [vmem:[#allocation5 + $0x8] sm:$0xff]  ;;  %v749_v38 = vpop.permute.xlu1 %748 }
0x145a   :  { %v931_v42 = vadd.f32 %v930_v7, %v852_v33  ;;  %768 = vst.msk [vmem:[#allocation5 + $0x20] sm:$0xff] %vm302_vm6, %v749_v38 }
0x145c   :  { %932 = vst.msk [vmem:[#allocation5 + $0x8] sm:$0xff] %vm302_vm6, %v931_v42  ;;  %750 = vrot.lane.b32.xlu2 %v2799_v17, %s2290_s15  ;;  %v1086_v17 = vld [vmem:[#allocation5 + $0x18] sm:$0xff] }
0x1461   :  { %v755_v4 = vpop.permute.xlu1 %754  ;;  %v1164_v40 = vld [vmem:[#allocation5 + $0x20] sm:$0xff] }
0x1462   :  { %771 = vst.msk [vmem:[#allocation5 + $0x38] sm:$0xff] %vm302_vm6, %v755_v4 }
0x1463   :  { %v1544_v55 = vld [vmem:[#allocation5 + $0x8] sm:$0xff] }
0x1469   :  { %v1398_v18 = vld [vmem:[#allocation5 + $0x38] sm:$0xff] }
0x14a6   :  { %v1389_v46 = vpop.permute.xlu2 %1388 }
0x14a7   :  { %1392 = vst.msk [vmem:[#allocation3 + $0x38] sm:$0xff] %vm74_vm0, %v1389_v46 }
0x14ae   :  { %v745_v14 = vpop.permute.xlu2 %744  ;;  %v2907_v5 = vld [vmem:[#allocation3 + $0x38] sm:$0xff] }
0x14af   :  { %766 = vst.msk [vmem:[#allocation5 + $0x10] sm:$0xff] %vm302_vm6, %v745_v14  ;;  %2002 = vmatmul.msk.f32.gmra.mxu0 %vm74_vm0, %v2907_v5 }
0x14b6   :  { %v1008_v35 = vld [vmem:[#allocation5 + $0x10] sm:$0xff]  ;;  %v751_v29 = vpop.permute.xlu2 %750 }
0x14b7   :  { %v1009_v43 = vadd.f32 %v1008_v35, %v931_v42  ;;  %769 = vst.msk [vmem:[#allocation5 + $0x28] sm:$0xff] %vm302_vm6, %v751_v29 }
0x14b9   :  { %1010 = vst.msk [vmem:[#allocation5 + $0x10] sm:$0xff] %vm302_vm6, %v1009_v43  ;;  %v1087_v44 = vadd.f32 %v1086_v17, %v1009_v43 }
0x14bb   :  { %1088 = vst.msk [vmem:[#allocation5 + $0x18] sm:$0xff] %vm302_vm6, %v1087_v44  ;;  %v1165_v19 = vadd.f32 %v1164_v40, %v1087_v44 }
0x14bd   :  { %1166 = vst.msk [vmem:[#allocation5 + $0x20] sm:$0xff] %vm302_vm6, %v1165_v19 }
0x14be   :  { %v1242_v59 = vld [vmem:[#allocation5 + $0x28] sm:$0xff] }
0x14bf   :  { %v1243_v24 = vadd.f32 %v1242_v59, %v1165_v19 }
0x14c0   :  { %v1545_v60 = vld [vmem:[#allocation5 + $0x10] sm:$0xff] }
0x14c1   :  { %1244 = vst.msk [vmem:[#allocation5 + $0x28] sm:$0xff] %vm302_vm6, %v1243_v24  ;;  %v1321_v48 = vadd.f32 %v1320_v21, %v1243_v24 }
0x14c3   :  { %1322 = vst.msk [vmem:[#allocation5 + $0x30] sm:$0xff] %vm302_vm6, %v1321_v48  ;;  %v1399_v36 = vadd.f32 %v1398_v18, %v1321_v48 }
0x14c5   :  { %1400 = vst.msk [vmem:[#allocation5 + $0x38] sm:$0xff] %vm302_vm6, %v1399_v36 }
0x152c   :  { %v1477_v8 = vpop.f32.mrf.mxu0 }
0x152d   :  { %v1478_v20 = vadd.f32 %v1477_v8, %v1414_v51 }
0x152f   :  { %v1490_v23 = vsel %vm302_vm6, %v1478_v20, -inf }
0x1530   :  { %v1491_v10 = vmax.f32 %v1483_v61, %v1490_v23  ;;  %v1546_v61 = vld [vmem:[#allocation5 + $0x18] sm:$0xff] }
0x1532   :  { %v1493_v12 = vmax.f32 %v1489_v2, %v1491_v10 }
0x1534   :  { %v1494_v28 = vmax.f32 %v1492_v15, %v1493_v12  ;;  %v1547_v15 = vld [vmem:[#allocation5 + $0x20] sm:$0xff] }
0x1536   :  { %v1495_v30 = vsub.f32 %v1457_v62, %v1494_v28  ;;  %v1496_v25 = vsub.f32 %v1460_v39, %v1494_v28  ;;  %v1497_v11 = vsub.f32 %v1463_v0, %v1494_v28  ;;  %v1498_v33 = vsub.f32 %v1466_v3, %v1494_v28 }
0x1537   :  { %v1499_v63 = vsub.f32 %v1469_v32, %v1494_v28  ;;  %v1500_v6 = vsub.f32 %v1472_v52, %v1494_v28  ;;  %v1501_v38 = vsub.f32 %v1475_v56, %v1494_v28  ;;  %v1502_v4 = vsub.f32 %v1478_v20, %v1494_v28 }
0x1538   :  { %v1503_v9 = vmul.f32 1.442695, %v1495_v30  ;;  %v1505_v41 = vmul.f32 1.442695, %v1496_v25  ;;  %v1507_v16 = vmul.f32 1.442695, %v1497_v11 }
0x1539   :  { %v1509_v7 = vmul.f32 1.442695, %v1498_v33  ;;  %v1511_v42 = vmul.f32 1.442695, %v1499_v63  ;;  %v1513_v46 = vmul.f32 1.442695, %v1500_v6 }
0x153a   :  { %2178 = vpow2.f32 %v1503_v9  ;;  %v1515_v14 = vmul.f32 1.442695, %v1501_v38  ;;  %v1517_v43 = vmul.f32 1.442695, %v1502_v4  ;;  %v1548_v11 = vld [vmem:[#allocation5 + $0x28] sm:$0xff] }
0x153b   :  { %2180 = vpow2.f32 %v1505_v41 }
0x153c   :  { %2182 = vpow2.f32 %v1507_v16  ;;  %v1549_v16 = vld [vmem:[#allocation5 + $0x30] sm:$0xff] }
0x153d   :  { %2184 = vpow2.f32 %v1509_v7 }
0x153e   :  { %2186 = vpow2.f32 %v1511_v42  ;;  %v1550_v42 = vld [vmem:[#allocation5 + $0x38] sm:$0xff] }
0x153f   :  { %2188 = vpow2.f32 %v1513_v46 }
0x1540   :  { %v2179_v35 = vpop.eup %2178  ;;  %2190 = vpow2.f32 %v1515_v14 }
0x1541   :  { %v2181_v29 = vpop.eup %2180  ;;  %v1519_v17 = vsel %vm302_vm6, %v2179_v35, 0.0  ;;  %2192 = vpow2.f32 %v1517_v43 }
0x1542   :  { %v2183_v44 = vpop.eup %2182  ;;  %v1520_v40 = vsel %vm302_vm6, %v2181_v29, 0.0 }
0x1543   :  { %v2185_v19 = vpop.eup %2184  ;;  %v1521_v59 = vadd.f32 %v1520_v40, %v1519_v17  ;;  %v1522_v24 = vsel %vm302_vm6, %v2183_v44, 0.0  ;;  %v1574_v40 = vld [vmem:[#allocation4] sm:$0xff] }
0x1544   :  { %v2187_v21 = vpop.eup %2186  ;;  %v1524_v18 = vsel %vm302_vm6, %v2185_v19, 0.0 }
0x1545   :  { %v1523_v48 = vadd.f32 %v1522_v24, %v1521_v59  ;;  %v2189_v36 = vpop.eup %2188  ;;  %v1526_v58 = vsel %vm302_vm6, %v2187_v21, 0.0  ;;  %v1591_v59 = vstv %s3113_s9  ;;  %v1575_v24 = vld [vmem:[#allocation4 + $0x8] sm:$0xff] }
0x1546   :  { %v2191_v49 = vpop.eup %2190  ;;  %v1528_v47 = vsel %vm302_vm6, %v2189_v36, 0.0 }
0x1547   :  { %v1525_v37 = vadd.f32 %v1524_v18, %v1523_v48  ;;  %v2193_v26 = vpop.eup %2192  ;;  %v1530_v52 = vsel %vm302_vm6, %v2191_v49, 0.0 }
0x1548   :  { %v1532_v32 = vsel %vm302_vm6, %v2193_v26, 0.0 }
0x1549   :  { %v1527_v45 = vadd.f32 %v1526_v58, %v1525_v37  ;;  %v1580_v58 = vld [vmem:[#allocation4 + $0x30] sm:$0xff] }
0x154b   :  { %v1529_v51 = vadd.f32 %v1528_v47, %v1527_v45 }
0x154d   :  { %v1531_v39 = vadd.f32 %v1530_v52, %v1529_v51 }
0x154f   :  { %v1533_v56 = vadd.f32 %v1532_v32, %v1531_v39 }
0x1551   :  { %2194 = vrcp.f32 %v1533_v56  ;;  %v1581_v56 = vld [vmem:[#allocation4 + $0x38] sm:$0xff] }
0x1557   :  { %v2195_v62 = vpop.eup %2194 }
0x1558   :  { %v1535_v0 = vmul.f32 %v2195_v62, %v2179_v35  ;;  %v1536_v3 = vmul.f32 %v2195_v62, %v2181_v29  ;;  %v1537_v13 = vmul.f32 %v2195_v62, %v2183_v44  ;;  %v1538_v8 = vmul.f32 %v2195_v62, %v2185_v19  ;;  %v1576_v19 = vld [vmem:[#allocation4 + $0x10] sm:$0xff] }
0x1559   :  { %v1539_v20 = vmul.f32 %v2195_v62, %v2187_v21  ;;  %v1540_v23 = vmul.f32 %v2195_v62, %v2189_v36  ;;  %v1541_v28 = vmul.f32 %v2195_v62, %v2191_v49  ;;  %v1542_v63 = vmul.f32 %v2195_v62, %v2193_v26  ;;  %v1578_v21 = vld [vmem:[#allocation4 + $0x20] sm:$0xff]  ;;  %v1577_v49 = vld [vmem:[#allocation4 + $0x18] sm:$0xff] }
0x155a   :  { %v1551_v53 = vmul.f32 %v1543_v57, %v1535_v0  ;;  %v1552_v54 = vmul.f32 %v1544_v55, %v1536_v3  ;;  %v1553_v22 = vmul.f32 %v1545_v60, %v1537_v13  ;;  %v1554_v1 = vmul.f32 %v1546_v61, %v1538_v8  ;;  %v1579_v57 = vld [vmem:[#allocation4 + $0x28] sm:$0xff] }
0x155b   :  { %v1555_v30 = vmul.f32 %v1547_v15, %v1539_v20  ;;  %v1556_v9 = vmul.f32 %v1548_v11, %v1540_v23  ;;  %v1557_v7 = vmul.f32 %v1549_v16, %v1541_v28  ;;  %v1558_v46 = vmul.f32 %v1550_v42, %v1542_v63 }
0x155c   :  { %v1559_v2 = vsel %vm302_vm6, %v1551_v53, 0.0  ;;  %v1560_v10 = vsel %vm302_vm6, %v1552_v54, 0.0  ;;  %v1562_v25 = vsel %vm302_vm6, %v1553_v22, 0.0  ;;  %v1564_v41 = vsel %vm302_vm6, %v1554_v1, 0.0 }
0x155d   :  { %v1561_v12 = vadd.f32 %v1560_v10, %v1559_v2  ;;  %v1566_v38 = vsel %vm302_vm6, %v1555_v30, 0.0  ;;  %v1568_v14 = vsel %vm302_vm6, %v1556_v9, 0.0  ;;  %v1570_v29 = vsel %vm302_vm6, %v1557_v7, 0.0  ;;  %v1802_v7 = vld [vmem:[%s3114_s10 + $0x10] sm:$0xff] }
0x155e   :  { %v1572_v17 = vsel %vm302_vm6, %v1558_v46, 0.0 }
0x155f   :  { %v1563_v33 = vadd.f32 %v1562_v25, %v1561_v12 }
0x1561   :  { %v1565_v6 = vadd.f32 %v1564_v41, %v1563_v33 }
0x1563   :  { %v1567_v4 = vadd.f32 %v1566_v38, %v1565_v6  ;;  %v1803_v6 = vld [vmem:[%s3114_s10 + $0x18] sm:$0xff] }
0x1564   :  { %1840 = vmatpush.msrb.mxu1 %v1803_v6 }
0x1565   :  { %v1569_v35 = vadd.f32 %v1568_v14, %v1567_v4  ;;  %v1801_v14 = vld [vmem:[%s3114_s10 + $0x8] sm:$0xff] }
0x1566   :  { %1841 = vmatpush.msrb.mxu1 %v1802_v7 }
0x1567   :  { %v1571_v43 = vadd.f32 %v1570_v29, %v1569_v35 }
0x1568   :  { %1842 = vmatpush.msrb.mxu1 %v1801_v14 }
0x1569   :  { %v1573_v44 = vadd.f32 %v1572_v17, %v1571_v43 }
0x156b   :  { %v1584_v48 = vadd.f32 %v1576_v19, %v1573_v44  ;;  %v1583_v18 = vadd.f32 %v1575_v24, %v1573_v44  ;;  %v1582_v36 = vadd.f32 %v1574_v40, %v1573_v44  ;;  %v1586_v37 = vadd.f32 %v1578_v21, %v1573_v44 }
0x156c   :  { %v1588_v45 = vadd.f32 %v1580_v58, %v1573_v44  ;;  %v1585_v47 = vadd.f32 %v1577_v49, %v1573_v44  ;;  %v1589_v8 = vadd.f32 %v1581_v56, %v1573_v44  ;;  %v1587_v60 = vadd.f32 %v1579_v57, %v1573_v44 }
0x156d   :  { %v1594_v50 = vadd.f32 %v1591_v59, %v1584_v48  ;;  %v1593_v26 = vadd.f32 %v1591_v59, %v1583_v18  ;;  %v1592_v51 = vadd.f32 %v1591_v59, %v1582_v36  ;;  %v1596_v52 = vadd.f32 %v1591_v59, %v1586_v37 }
0x156e   :  { %v1598_v39 = vadd.f32 %v1591_v59, %v1588_v45  ;;  %v1595_v32 = vadd.f32 %v1591_v59, %v1585_v47  ;;  %v1599_v53 = vadd.f32 %v1591_v59, %v1589_v8  ;;  %v1597_v54 = vadd.f32 %v1591_v59, %v1587_v60 }
0x156f   :  { %v2005_v62 = vmul.f32 -1.442695, %v1594_v50  ;;  %v2004_v0 = vmul.f32 -1.442695, %v1593_v26  ;;  %v2003_v3 = vmul.f32 -1.442695, %v1592_v51 }
0x1570   :  { %v2007_v13 = vmul.f32 -1.442695, %v1596_v52  ;;  %v2009_v55 = vmul.f32 -1.442695, %v1598_v39  ;;  %v2006_v20 = vmul.f32 -1.442695, %v1595_v32 }
0x1571   :  { %2196 = vpow2.f32 %v2005_v62  ;;  %v2010_v1 = vmul.f32 -1.442695, %v1599_v53  ;;  %v2008_v15 = vmul.f32 -1.442695, %v1597_v54 }
0x1572   :  { %2198 = vpow2.f32 %v2004_v0 }
0x1573   :  { %2200 = vpow2.f32 %v2003_v3 }
0x1574   :  { %2202 = vpow2.f32 %v2007_v13 }
0x1575   :  { %2204 = vpow2.f32 %v2009_v55 }
0x1576   :  { %2206 = vpow2.f32 %v2006_v20 }
0x1577   :  { %v2197_v22 = vpop.eup %2196 }
0x1578   :  { %v2199_v61 = vpop.eup %2198  ;;  %v2949_v23 = vadd.f32 1.0, %v2197_v22 }
0x1579   :  { %v2201_v2 = vpop.eup %2200  ;;  %v2951_v10 = vadd.f32 1.0, %v2199_v61 }
0x157a   :  { %v2203_v12 = vpop.eup %2202  ;;  %2208 = vrcp.f32 %v2949_v23  ;;  %v2955_v25 = vadd.f32 1.0, %v2201_v2  ;;  %v1671_v63 = vand.u32 2147483647, %v2949_v23  ;;  %v1673_v9 = vand.u32 2147483648, %v2949_v23 }
0x157b   :  { %v2205_v28 = vpop.eup %2204  ;;  %2210 = vrcp.f32 %v2951_v10  ;;  %v2957_v11 = vadd.f32 1.0, %v2203_v12  ;;  %v1656_v41 = vand.u32 2147483647, %v2951_v10  ;;  %v1658_v42 = vand.u32 2147483648, %v2951_v10 }
0x157c   :  { %v2207_v30 = vpop.eup %2206  ;;  %2212 = vpow2.f32 %v2010_v1  ;;  %v2959_v33 = vadd.f32 1.0, %v2205_v28  ;;  %vm1667_vm6 = vweird.f32 %v2949_v23  ;;  %vm1652_vm14 = vweird.f32 %v2951_v10 }
0x157d   :  { %2214 = vpow2.f32 %v2008_v15  ;;  %v2966_v16 = vadd.f32 1.0, %v2207_v30  ;;  %vm2982_vm15 = vcmp.eq.f32.partialorder %v1671_v63, 8.507059e+37  ;;  %v1674_v43 = vor.u32 1.1754944e-38, %v1673_v9 }
0x157e   :  { %2216 = vrcp.f32 %v2955_v25  ;;  %v1641_v44 = vand.u32 2147483647, %v2955_v25  ;;  %vm2988_vm1 = vcmp.eq.f32.partialorder %v1656_v41, 8.507059e+37  ;;  %v1643_v24 = vand.u32 2147483648, %v2955_v25 }
0x157f   :  { %2218 = vrcp.f32 %v2957_v11  ;;  %v1659_v18 = vor.u32 1.1754944e-38, %v1658_v42  ;;  %vm1637_vm2 = vweird.f32 %v2955_v25  ;;  %v1701_v36 = vand.u32 2147483647, %v2957_v11 }
0x1580   :  { %v2209_v38 = vpop.eup %2208  ;;  %2220 = vrcp.f32 %v2959_v33  ;;  %vm1697_vm4 = vweird.f32 %v2957_v11  ;;  %v1703_v45 = vand.u32 2147483648, %v2957_v11  ;;  %vm3003_vm7 = vcmp.eq.f32.partialorder %v1641_v44, 8.507059e+37 }
0x1581   :  { %v2211_v4 = vpop.eup %2210  ;;  %v1663_v46 = vmul.f32 %v2209_v38, %v2949_v23  ;;  %2222 = vrcp.f32 %v2966_v16  ;;  %vm1668_vm3 = vweird.f32 %v2209_v38  ;;  %v1644_v32 = vor.u32 1.1754944e-38, %v1643_v24 }
0x1582   :  { %v2213_v35 = vpop.eup %2212  ;;  %v1648_v17 = vmul.f32 %v2211_v4, %v2951_v10  ;;  %vm1653_vm5 = vweird.f32 %v2211_v4  ;;  %vm1669_vm8 = vmor %vm1667_vm6, %vm1668_vm3  ;;  %vm1727_vm6 = vweird.f32 %v2959_v33  ;;  %v1733_v28 = vand.u32 2147483648, %v2959_v33 }
0x1583   :  { %v2215_v40 = vpop.eup %2214  ;;  %v1664_v19 = vsub.f32 1.0, %v1663_v46  ;;  %v3013_v3 = vadd.f32 1.0, %v2213_v35  ;;  %vm1654_vm10 = vmor %vm1652_vm14, %vm1653_vm5  ;;  %v1731_v63 = vand.u32 2147483647, %v2959_v33  ;;  %vm1682_vm3 = vweird.f32 %v2966_v16 }
0x1584   :  { %v2217_v21 = vpop.eup %2216  ;;  %v1649_v48 = vsub.f32 1.0, %v1648_v17  ;;  %v3017_v60 = vadd.f32 1.0, %v2215_v40  ;;  %v1734_v42 = vor.u32 1.1754944e-38, %v1733_v28 }
0x1585   :  { %v2996_v37 = vpop.eup %2218  ;;  %v1665_v58 = vmul.f32 %v2209_v38, %v1664_v19  ;;  %v1633_v49 = vmul.f32 %v2217_v21, %v2955_v25  ;;  %vm1638_vm9 = vweird.f32 %v2217_v21  ;;  %2224 = vrcp.f32 %v3013_v3 }
0x1586   :  { %v3001_v47 = vpop.eup %2220  ;;  %v1650_v50 = vmul.f32 %v2211_v4, %v1649_v48  ;;  %v1693_v51 = vmul.f32 %v2996_v37, %v2957_v11  ;;  %vm1698_vm11 = vweird.f32 %v2996_v37  ;;  %vm1639_vm12 = vmor %vm1637_vm2, %vm1638_vm9  ;;  %2226 = vrcp.f32 %v3017_v60 }
0x1587   :  { %v1666_v52 = vadd.f32 %v2209_v38, %v1665_v58  ;;  %v1634_v39 = vsub.f32 1.0, %v1633_v49  ;;  %v1723_v56 = vmul.f32 %v3001_v47, %v2959_v33  ;;  %v2223_v13 = vpop.eup %2222  ;;  %vm1728_vm13 = vweird.f32 %v3001_v47  ;;  %vm3040_vm14 = vmor %vm1697_vm4, %vm1698_vm11 }
0x1588   :  { %v1651_v62 = vadd.f32 %v2211_v4, %v1650_v50  ;;  %v1694_v0 = vsub.f32 1.0, %v1693_v51  ;;  %v1678_v22 = vmul.f32 %v2223_v13, %v2966_v16  ;;  %v1704_v11 = vor.u32 1.1754944e-38, %v1703_v45 }
0x1589   :  { %v1670_v8 = vsel %vm1669_vm8, %v2209_v38, %v1666_v52  ;;  %v1635_v57 = vmul.f32 %v2217_v21, %v1634_v39  ;;  %v1724_v55 = vsub.f32 1.0, %v1723_v56  ;;  %v1688_v33 = vand.u32 2147483648, %v2966_v16  ;;  %v1800_v39 = vld [vmem:[%s3114_s10] sm:$0xff] }
0x158a   :  { %v1675_v20 = vsel %vm2982_vm15, %v1674_v43, %v1670_v8  ;;  %v1655_v53 = vsel %vm1654_vm10, %v2211_v4, %v1651_v62  ;;  %v1695_v54 = vmul.f32 %v2996_v37, %v1694_v0  ;;  %v1679_v10 = vsub.f32 1.0, %v1678_v22  ;;  %vm3049_vm15 = vmor %vm1727_vm6, %vm1728_vm13  ;;  %1843 = vmatpush.msrb.mxu1 %v1800_v39  ;;  %v2230_v56 = vld [vmem:[#allocation3] sm:$0xff] }
0x158b   :  { %1764 = vperm.xlu1 %2045, %v1675_v20   ;;  %v1660_v61 = vsel %vm2988_vm1, %v1659_v18, %v1655_v53  ;;  %v1636_v23 = vadd.f32 %v2217_v21, %v1635_v57  ;;  %v1725_v1 = vmul.f32 %v3001_v47, %v1724_v55  ;;  %vm1683_vm1 = vweird.f32 %v2223_v13  ;;  %v2225_v46 = vpop.eup %2224  ;;  %v2232_v57 = vld [vmem:[#allocation3 + $0x10] sm:$0xff]  ;;  %v2233_v20 = vld [vmem:[#allocation3 + $0x18] sm:$0xff] }
0x158c   :  { %1759 = vperm.xlu0 %2044, %v1660_v61   ;;  %v1696_v2 = vadd.f32 %v2996_v37, %v1695_v54  ;;  %v1680_v9 = vmul.f32 %v2223_v13, %v1679_v10  ;;  %vm1702_vm2 = vcmp.eq.f32.partialorder %v1701_v36, 8.507059e+37  ;;  %v1686_v4 = vand.u32 2147483647, %v2966_v16  ;;  %vm1684_vm5 = vmor %vm1682_vm3, %vm1683_vm1  ;;  %v2227_v17 = vpop.eup %2226 }
0x158d   :  { %v1640_v15 = vsel %vm1639_vm12, %v2217_v21, %v1636_v23  ;;  %v1726_v12 = vadd.f32 %v3001_v47, %v1725_v1  ;;  %vm1732_vm4 = vcmp.eq.f32.partialorder %v1731_v63, 8.507059e+37  ;;  %v1738_v43 = vmul.f32 %v2225_v46, %v3013_v3 }
0x158e   :  { %v1645_v30 = vsel %vm3003_vm7, %v1644_v32, %v1640_v15  ;;  %v1700_v41 = vsel %vm3040_vm14, %v2996_v37, %v1696_v2  ;;  %v1681_v38 = vadd.f32 %v2223_v13, %v1680_v9  ;;  %v1689_v44 = vor.u32 1.1754944e-38, %v1688_v33 }
0x158f   :  { %1754 = vperm.xlu2 %2043, %v1645_v30   ;;  %v1730_v7 = vsel %vm3049_vm15, %v3001_v47, %v1726_v12  ;;  %v1705_v14 = vsel %vm1702_vm2, %v1704_v11, %v1700_v41  ;;  %vm1687_vm7 = vcmp.eq.f32.partialorder %v1686_v4, 8.507059e+37  ;;  %v1739_v40 = vsub.f32 1.0, %v1738_v43 }
0x1590   :  { %v1735_v35 = vsel %vm1732_vm4, %v1734_v42, %v1730_v7  ;;  %v1685_v29 = vsel %vm1684_vm5, %v2223_v13, %v1681_v38  ;;  %v1708_v19 = vmul.f32 %v2227_v17, %v3017_v60  ;;  %v1748_v24 = vand.u32 2147483648, %v3013_v3 }
0x1591   :  { %v1690_v59 = vsel %vm1687_vm7, %v1689_v44, %v1685_v29  ;;  %v1740_v16 = vmul.f32 %v2225_v46, %v1739_v40  ;;  %vm1743_vm8 = vweird.f32 %v2225_v46  ;;  %v1746_v21 = vand.u32 2147483647, %v3013_v3 }
0x1592   :  { %v1709_v48 = vsub.f32 1.0, %v1708_v19  ;;  %vm1742_vm9 = vweird.f32 %v3013_v3  ;;  %v1718_v18 = vand.u32 2147483648, %v3017_v60  ;;  %vm1713_vm10 = vweird.f32 %v2227_v17  ;;  %v2231_v3 = vld [vmem:[#allocation3 + $0x8] sm:$0xff] }
0x1593   :  { %1774 = vperm.xlu1 %2045, %v1705_v14   ;;  %v1741_v36 = vadd.f32 %v2225_v46, %v1740_v16  ;;  %v1716_v58 = vand.u32 2147483647, %v3017_v60  ;;  %vm1744_vm11 = vmor %vm1742_vm9, %vm1743_vm8  ;;  %v1749_v49 = vor.u32 1.1754944e-38, %v1748_v24  ;;  %vm1747_vm12 = vcmp.eq.f32.partialorder %v1746_v21, 8.507059e+37 }
0x1594   :  { %1784 = vperm.xlu0 %2044, %v1735_v35   ;;  %v1710_v37 = vmul.f32 %v2227_v17, %v1709_v48  ;;  %vm1712_vm13 = vweird.f32 %v3017_v60  ;;  %v1719_v26 = vor.u32 1.1754944e-38, %v1718_v18  ;;  %vm1869_vm15 = vcmask 64512  }
0x1595   :  { %v1745_v45 = vsel %vm1744_vm11, %v2225_v46, %v1741_v36  ;;  %vm1714_vm6 = vmor %vm1712_vm13, %vm1713_vm10  ;;  %vm1717_vm14 = vcmp.eq.f32.partialorder %v1716_v58, 8.507059e+37 }
0x1596   :  { %v1711_v47 = vadd.f32 %v2227_v17, %v1710_v37  ;;  %v1750_v50 = vsel %vm1747_vm12, %v1749_v49, %v1745_v45 }
0x1597   :  { %1769 = vperm.xlu2 %2043, %v1690_v59  }
0x1598   :  { %v1715_v51 = vsel %vm1714_vm6, %v2227_v17, %v1711_v47 }
0x1599   :  { %v1720_v52 = vsel %vm1717_vm14, %v1719_v26, %v1715_v51 }
0x159b   :  { %1789 = vperm.xlu1 %2045, %v1750_v50  }
0x159f   :  { %1779 = vperm.xlu2 %2043, %v1720_v52  }
0x15e9   :  { %v1755_v32 = vpop.permute.xlu2 %1754 }
0x15ea   :  { %v1792_v62 = vmul.f32 %v2230_v56, %v1755_v32 }
0x15ec   :  { %2011 = vmatmul.msk.f32.vlgmr.msrb.gmra.mxu1 %vm74_vm0, %v1792_v62 }
0x15f1   :  { %v1770_v60 = vpop.permute.xlu2 %1769 }
0x15f2   :  { %v1795_v53 = vmul.f32 %v2233_v20, %v1770_v60 }
0x15f9   :  { %v1780_v61 = vpop.permute.xlu2 %1779 }
0x15fa   :  { %v1797_v23 = vmul.f32 %v1780_v61, %v2860_v34 }
0x15fd   :  { %v1765_v8 = vpop.permute.xlu1 %1764 }
0x15fe   :  { %v1760_v0 = vpop.permute.xlu0 %1759  ;;  %v1794_v55 = vmul.f32 %v2232_v57, %v1765_v8 }
0x15ff   :  { %v1793_v13 = vmul.f32 %v2231_v3, %v1760_v0 }
0x1601   :  { %2012 = vmatmul.msk.f32.gmra.mxu1 %vm74_vm0, %v1793_v13 }
0x1605   :  { %v1775_v54 = vpop.permute.xlu1 %1774 }
0x1606   :  { %v1796_v22 = vmul.f32 %v1775_v54, %v2847_v27  ;;  %v1785_v1 = vpop.permute.xlu0 %1784  ;;  %v2047_v27 = vld [vmem:[%s3115_s11] ss:$0 sm:$0xff]  ;;  %s2296_s11 = smov [#allocation13]  }
0x1607   :  { %v1798_v2 = vmul.f32 %v1785_v1, %v2872_v31  ;;  %s1925_s24 = sshll.u32 %s2296_s11, 4  ;;  %s1926_s24 = int_to_ptr.vmem [resolvable:$true] %s1925_s24 }
0x1609   :  { %2013 = vmatmul.msk.f32.gmra.mxu1 %vm74_vm0, %v1794_v55 }
0x160d   :  { %v1790_v10 = vpop.permute.xlu1 %1789 }
0x160e   :  { %v1799_v15 = vmul.f32 %v1790_v10, %v2907_v5 }
0x1611   :  { %2014 = vmatmul.msk.f32.gmra.mxu1 %vm74_vm0, %v1795_v53 }
0x1619   :  { %2015 = vmatmul.msk.f32.gmra.mxu1 %vm74_vm0, %v1796_v22 }
0x1621   :  { %2016 = vmatmul.msk.f32.gmra.mxu1 %vm74_vm0, %v1797_v23 }
0x1629   :  { %2017 = vmatmul.msk.f32.gmra.mxu1 %vm74_vm0, %v1798_v2 }
0x1631   :  { %2018 = vmatmul.msk.f32.gmra.mxu1 %vm74_vm0, %v1799_v15 }
0x1669   :  { %v1845_v12 = vpop.f32.mrf.mxu1 }
0x166a   :  { %1870 = vst.msk [vmem:[#allocation13] sm:$0xff] %vm1869_vm15, %v1845_v12 }
0x1671   :  { %v1879_v34 = vld [vmem:[#allocation13] sm:$0xff] }
0x1672   :  { %v1884_v28 = vadd.f32 %v2047_v27, %v1879_v34 }
0x1674   :  { %1885 = vst.msk [vmem:[#allocation13] sm:$0xff] %vm1869_vm15, %v1884_v28 }
0x167e   :  { %v1848_v31 = vpop.f32.mrf.mxu1 }
0x167f   :  { %1871 = vst.msk [vmem:[#allocation13 + $0x8] sm:$0xff] %vm1869_vm15, %v1848_v31 }
0x1686   :  { %v1887_v30 = vld [vmem:[#allocation13 + $0x8] sm:$0xff]  ;;  %v1851_v25 = vpop.f32.mrf.mxu1 }
0x1687   :  { %v1888_v5 = vadd.f32 %v1887_v30, %v1879_v34  ;;  %1872 = vst.msk [vmem:[#allocation13 + $0x10] sm:$0xff] %vm1869_vm15, %v1851_v25 }
0x1689   :  { %v1889_v63 = vadd.f32 %v2047_v27, %v1888_v5 }
0x168b   :  { %1890 = vst.msk [vmem:[#allocation13 + $0x8] sm:$0xff] %vm1869_vm15, %v1889_v63 }
0x168e   :  { %v1892_v9 = vld [vmem:[#allocation13 + $0x10] sm:$0xff]  ;;  %v1854_v41 = vpop.f32.mrf.mxu1 }
0x168f   :  { %v1893_v6 = vadd.f32 %v1892_v9, %v1888_v5  ;;  %1873 = vst.msk [vmem:[#allocation13 + $0x18] sm:$0xff] %vm1869_vm15, %v1854_v41 }
0x1691   :  { %v1894_v11 = vadd.f32 %v2047_v27, %v1893_v6 }
0x1693   :  { %1895 = vst.msk [vmem:[#allocation13 + $0x10] sm:$0xff] %vm1869_vm15, %v1894_v11 }
0x1696   :  { %v1897_v7 = vld [vmem:[#allocation13 + $0x18] sm:$0xff]  ;;  %v1857_v38 = vpop.f32.mrf.mxu1 }
0x1697   :  { %v1898_v33 = vadd.f32 %v1897_v7, %v1893_v6  ;;  %1874 = vst.msk [vmem:[#allocation13 + $0x20] sm:$0xff] %vm1869_vm15, %v1857_v38 }
0x1699   :  { %v1899_v42 = vadd.f32 %v2047_v27, %v1898_v33 }
0x169b   :  { %1900 = vst.msk [vmem:[#allocation13 + $0x18] sm:$0xff] %vm1869_vm15, %v1899_v42 }
0x169e   :  { %v1902_v4 = vld [vmem:[#allocation13 + $0x20] sm:$0xff]  ;;  %v1860_v46 = vpop.f32.mrf.mxu1 }
0x169f   :  { %v1903_v14 = vadd.f32 %v1902_v4, %v1898_v33  ;;  %1875 = vst.msk [vmem:[#allocation13 + $0x28] sm:$0xff] %vm1869_vm15, %v1860_v46 }
0x16a1   :  { %v1904_v35 = vadd.f32 %v2047_v27, %v1903_v14 }
0x16a3   :  { %1905 = vst.msk [vmem:[#allocation13 + $0x20] sm:$0xff] %vm1869_vm15, %v1904_v35 }
0x16a6   :  { %v1907_v29 = vld [vmem:[#allocation13 + $0x28] sm:$0xff]  ;;  %v1863_v43 = vpop.f32.mrf.mxu1 }
0x16a7   :  { %v1908_v17 = vadd.f32 %v1907_v29, %v1903_v14  ;;  %1876 = vst.msk [vmem:[#allocation13 + $0x30] sm:$0xff] %vm1869_vm15, %v1863_v43 }
0x16a9   :  { %v1909_v44 = vadd.f32 %v2047_v27, %v1908_v17 }
0x16ab   :  { %1910 = vst.msk [vmem:[#allocation13 + $0x28] sm:$0xff] %vm1869_vm15, %v1909_v44 }
0x16ae   :  { %v1912_v40 = vld [vmem:[#allocation13 + $0x30] sm:$0xff]  ;;  %v1866_v19 = vpop.f32.mrf.mxu1 }
0x16af   :  { %v1913_v59 = vadd.f32 %v1912_v40, %v1908_v17  ;;  %1877 = vst.msk [vmem:[#allocation13 + $0x38] sm:$0xff] %vm1869_vm15, %v1866_v19 }
0x16b1   :  { %v1914_v24 = vadd.f32 %v2047_v27, %v1913_v59 }
0x16b3   :  { %1915 = vst.msk [vmem:[#allocation13 + $0x30] sm:$0xff] %vm1869_vm15, %v1914_v24 }
0x16b6   :  { %v1917_v16 = vld [vmem:[#allocation13 + $0x38] sm:$0xff] }
0x16b7   :  { %v1918_v21 = vadd.f32 %v1917_v16, %v1913_v59 }
0x16b9   :  { %v1919_v48 = vadd.f32 %v2047_v27, %v1918_v21 }
0x16bb   :  { %1920 = vst.msk [vmem:[#allocation13 + $0x38] sm:$0xff] %vm1869_vm15, %v1919_v48 }
0x16bc   :  { %1933 = dma.vmem_to_hbm [thread:$0]  %s1926_s24, 1024, %s1928_s26, [#allocation12], %s2297_s27, %s2297_s27, %s2298_s28  }
0x16bd   :  { %2284 = dma.done.wait [#allocation12], 1024  }
0x16be   :  { %2285 = vsyncadd [#allocation12], 4294966272 }
0x16bf   :  { %1938 = vsyncpa [#allocation11], 1 }
0x16c0   :  { %1939 = vsyncpa [#allocation12], 1 }

</bundles_post_ra>
